<compile_context>
chip_gen: v6e
topology: v6e:2x2x1
jax: 0.10.0
libtpu: 0.0.40
codegen_flags: <defaults>
</compile_context>

<pallas_src>
import math

import jax
import jax.numpy as jnp
from jax.experimental import pallas as pl
from jax.experimental.pallas import tpu as pltpu


def _make_qgcn_kernel(approx_recip):
    """Factory so the reciprocal mode (EUP approx vs exact) is a static choice."""

    def qgcn_kernel(a_ref, x0_ref,
                    w1t_ref, b1_ref, w2t_ref, b2_ref,
                    wl_ref, bl_ref, wrt_ref, br_ref,
                    out_ref):
        """One grid step == TB graphs.

        Adjacency products run on the VPU (N is tiny); the shared-weight linear
        layers run on the flattened [TB*N, F] slab so the MXU sees >=128 useful
        rows. The QGCN last layer is reordered to
            u = (x1 @ Wl^T)^T @ (A @ x0) + bl * sum_n(x0)
        which reuses the layer-1 product A @ x0 (mathematically identical).
        """
        A = a_ref[...].astype(jnp.float32)      # [TB, N, N]  (f32 VPU math)
        x0 = x0_ref[...].astype(jnp.float32)    # [TB, N, D0]
        TB, N, _ = A.shape
        D0 = x0.shape[-1]
        dt = w1t_ref.dtype                      # MXU operand dtype (bf16 or f32)

        def act(x):                             # relu(x) - 2/(x^2 + 1), kept in f32
            return jnp.maximum(x, 0.0) - 2.0 * pl.reciprocal(x * x + 1.0,
                                                             approx=approx_recip)

        def adj_mm(adj, h):
            # adj: [TB, N, N], h: [TB, N, F]  ->  A @ h  on the VPU.
            # N is tiny (8): an MXU einsum would be TB separate 8-row pushes with a
            # serial result-FIFO pop per graph, so do an unrolled broadcast-multiply-
            # accumulate over the contraction dim instead (only sublane/lane
            # broadcasts of size-1 slices; no relayouts).
            acc = adj[:, :, 0:1] * h[:, 0:1, :]
            for m in range(1, N):
                acc = acc + adj[:, :, m:m + 1] * h[:, m:m + 1, :]
            return acc                          # [TB, N, F] f32

        # TODO(synk): Dropout is identity (eval mode); embeddings / log-softmax paths
        # are disabled by this config and not implemented.

        # ---- GCN layer 1 -------------------------------------------------------
        ax0 = adj_mm(A, x0)                                              # [TB,N,D0] f32, reused below
        x = jnp.dot(ax0.reshape(TB * N, D0).astype(dt), w1t_ref[...],
                    preferred_element_type=jnp.float32) + b1_ref[...]    # [TB*N, H1]
        h = act(x)
        H1 = h.shape[-1]

        # ---- GCN layer 2 -------------------------------------------------------
        ah = adj_mm(A, h.reshape(TB, N, H1))                             # [TB,N,H1] f32
        x = jnp.dot(ah.reshape(TB * N, H1).astype(dt), w2t_ref[...],
                    preferred_element_type=jnp.float32) + b2_ref[...]    # [TB*N, H2]
        x1 = act(x)                                                      # [TB*N, H2] f32

        # ---- QGCN last layer (f = 'x1_x0'), reordered to reuse A @ x0 ----------
        # wl has a single output column -> VPU multiply + XLU lane reduction
        # (no near-empty MXU push).
        v = jnp.sum(x1 * wl_ref[...], axis=-1, keepdims=True)            # [TB*N, 1]
        v = v.reshape(TB, N, 1)
        u = jnp.sum(v * ax0, axis=1)                                     # [TB, D0]
        u = u + bl_ref[...] * jnp.sum(x0, axis=1)                        # left-linear bias term
        out = jnp.dot(u.astype(dt), wrt_ref[...],
                      preferred_element_type=jnp.float32) + br_ref[...]  # [TB, C]
        out_ref[...] = out[None].astype(out_ref.dtype)                   # (1, TB, C) block

    return qgcn_kernel


def qgcn_forward(A, x0, params, *, tb=25, compute_dtype=jnp.bfloat16, approx_recip=True):
    """params: w1,b1,w2,b2,wl,bl,wr,br in PyTorch Linear layout ([out,in], bias [1,out])."""
    B, N, D0 = x0.shape
    cd = compute_dtype

    # Pre-transpose the MXU weights once (MXU-natural layout; no in-kernel transposes).
    w1t = params["w1"].T.astype(cd)            # [D0, H1]
    w2t = params["w2"].T.astype(cd)            # [H1, H2]
    wrt = params["wr"].T.astype(cd)            # [D0, C]
    wl = params["wl"].astype(jnp.float32)      # [1, H2] row, consumed on the VPU
    b1 = params["b1"].astype(jnp.float32)
    b2 = params["b2"].astype(jnp.float32)
    bl = params["bl"].astype(jnp.float32)
    br = params["br"].astype(jnp.float32)
    C = wrt.shape[1]

    # tb chosen to avoid batch padding (B=50 -> tb=25 -> grid=2) while keeping TB*N
    # sublane-aligned and the grid length >= 2 so v7x's two TensorCores both get work.
    # On single-TC v5e/v6e, biasing tb so TB*N is a multiple of 128/256 is also fine.
    n_tiles = pl.cdiv(B, tb)
    b_pad = n_tiles * tb
    if b_pad != B:   # padded graphs are all-zero; their outputs are sliced off below
        A = jnp.pad(A, ((0, b_pad - B), (0, 0), (0, 0)))
        x0 = jnp.pad(x0, ((0, b_pad - B), (0, 0), (0, 0)))
    A = A.astype(cd)     # bf16 halves the dominant A/x0 DMA; accumulation stays f32.
    x0 = x0.astype(cd)

    def full(arr):
        # TODO(synk): at production sizes single-buffer these constant operands
        # (pipeline_mode=pl.Buffered(1)) to reclaim VMEM for a bigger A tile; matters
        # most under v7x's 64 MiB VMEM.
        return pl.BlockSpec(arr.shape, lambda i: (0,) * arr.ndim)

    out = pl.pallas_call(
        _make_qgcn_kernel(approx_recip),
        out_shape=jax.ShapeDtypeStruct((n_tiles, tb, C), jnp.float32),
        grid=(n_tiles,),
        in_specs=[
            pl.BlockSpec((tb, N, N), lambda i: (i, 0, 0)),    # A   (dominant DMA, bf16)
            pl.BlockSpec((tb, N, D0), lambda i: (i, 0, 0)),   # x0
            full(w1t), full(b1), full(w2t), full(b2),
            full(wl), full(bl), full(wrt), full(br),
        ],
        out_specs=pl.BlockSpec((1, tb, C), lambda i: (i, 0, 0)),
        # TODO(synk): for realistic N (thousands of nodes) re-derive tb per generation
        # against VMEM (v7x: 64 MiB) -- budget double-buffered bf16 A/x0 plus the f32
        # ax0/h/x1 slabs, set pltpu.CompilerParams(vmem_limit_bytes=...), and tile the
        # adjacency contraction dim on a trailing 'arbitrary' grid axis with an f32
        # VMEM accumulator. Stay on bf16 operands on v7x (its MXU has no int8 path).
        compiler_params=pltpu.CompilerParams(
            dimension_semantics=("parallel",)),
    )(A, x0, w1t, b1, w2t, b2, wl, bl, wrt, br)
    return out.reshape(b_pad, C)[:B]   # [B, C]  (== .squeeze(dim=1) of the module)


def qgcn_reference(A, x0, p):
    """Pure-JAX f32 reference following the module's computation order exactly."""
    hp = jax.lax.Precision.HIGHEST
    act = lambda x: jnp.maximum(x, 0.0) - 2.0 / (x * x + 1.0)
    h = x0
    for w, b in ((p["w1"], p["b1"]), (p["w2"], p["b2"])):
        ax = jnp.einsum("bnm,bmd->bnd", A, h, precision=hp)
        h = act(jnp.einsum("bnd,od->bno", ax, w, precision=hp) + b[0])
    t = jnp.einsum("bmn,bmd->bnd", A, h, precision=hp)                        # A^T @ x1
    s = jnp.einsum("bnd,od->bno", t, p["wl"], precision=hp) + p["bl"][0]      # [B, N, 1]
    u = jnp.einsum("bnk,bnd->bkd", s, x0, precision=hp)                       # [B, 1, D0]
    o = jnp.einsum("bkd,cd->bkc", u, p["wr"], precision=hp) + p["br"][0]      # [B, 1, C]
    return o[:, 0, :]


def make_params(key, in_dim, h1, h2, num_classes):
    ks = jax.random.split(key, 8)

    def uni(k, shape, stdv):
        return jax.random.uniform(k, shape, jnp.float32, -stdv, stdv)

    # GCN layers: weight ~ U(-1/sqrt(out), 1/sqrt(out)) (reset_parameters);
    # biases keep the nn.Linear default U(-1/sqrt(in), 1/sqrt(in)).
    return {
        "w1": uni(ks[0], (h1, in_dim), 1.0 / math.sqrt(h1)),
        "b1": uni(ks[1], (1, h1), 1.0 / math.sqrt(in_dim)),
        "w2": uni(ks[2], (h2, h1), 1.0 / math.sqrt(h2)),
        "b2": uni(ks[3], (1, h2), 1.0 / math.sqrt(h1)),
        # last layer: left weight ~ U(-1, 1), right ~ U(-1/sqrt(out), 1/sqrt(out))
        "wl": uni(ks[4], (1, h2), 1.0),
        "bl": uni(ks[5], (1, 1), 1.0 / math.sqrt(h2)),
        "wr": uni(ks[6], (num_classes, in_dim), 1.0 / math.sqrt(num_classes)),
        "br": uni(ks[7], (1, num_classes), 1.0 / math.sqrt(in_dim)),
    }


if __name__ == "__main__":
    B, N, IN_DIM = 50, 8, 16          # tb=25 -> zero batch padding, grid=2
    H1, H2, NUM_CLASSES = 32, 16, 4

    key = jax.random.PRNGKey(0)
    k_a, k_x, k_p = jax.random.split(key, 3)

    A = jax.random.uniform(k_a, (B, N, N), jnp.float32)
    A = A / jnp.sum(A, axis=-1, keepdims=True)                 # row-normalized dense adjacency
    x0 = jax.random.normal(k_x, (B, N, IN_DIM), jnp.float32)   # node features
    params = make_params(k_p, IN_DIM, H1, H2, NUM_CLASSES)

    ref = qgcn_reference(A, x0, params)

    # Strict correctness gate: f32 operands + exact reciprocal vs. the f32 HIGHEST
    # reference. Tight enough to catch structural bugs (bias broadcast, the
    # bl*sum_n(x0) reorder term are all O(0.1-1) effects) while leaving headroom for
    # summation-order differences on O(5-15) outputs.
    out_f32 = qgcn_forward(A, x0, params, tb=25,
                           compute_dtype=jnp.float32, approx_recip=False)
    out_f32 = jax.block_until_ready(out_f32)
    assert out_f32.shape == (B, NUM_CLASSES)
    assert jnp.allclose(out_f32, ref, rtol=1e-2, atol=1e-1), "f32 kernel mismatch vs reference"

    # Fast path: bf16 MXU operands + EUP approx reciprocal. Expected error from bf16
    # rounding (~0.2% per operand) and the approx reciprocal compounds to roughly
    # 2-3% of the O(5-15) outputs (absolute <~0.3), hence the looser bound.
    out = qgcn_forward(A, x0, params, tb=25,
                       compute_dtype=jnp.bfloat16, approx_recip=True)
    out = jax.block_until_ready(out)
    assert out.shape == (B, NUM_CLASSES)
    assert jnp.allclose(out, ref, rtol=5e-2, atol=3e-1), "bf16 kernel mismatch vs reference"

    print("KERNEL_OK")
</pallas_src>

<mosaic_0001>
module attributes {stable_mosaic.version = 11 : i64} {
  func.func @qgcn_kernel(%arg0: i32, %arg1: memref<25x8x8xf32, #tpu.memory_space<vmem>>, %arg2: memref<25x8x16xf32, #tpu.memory_space<vmem>>, %arg3: memref<16x32xf32, #tpu.memory_space<vmem>>, %arg4: memref<1x32xf32, #tpu.memory_space<vmem>>, %arg5: memref<32x16xf32, #tpu.memory_space<vmem>>, %arg6: memref<1x16xf32, #tpu.memory_space<vmem>>, %arg7: memref<1x16xf32, #tpu.memory_space<vmem>>, %arg8: memref<1x1xf32, #tpu.memory_space<vmem>>, %arg9: memref<16x4xf32, #tpu.memory_space<vmem>>, %arg10: memref<1x4xf32, #tpu.memory_space<vmem>>, %arg11: memref<1x25x4xf32, #tpu.memory_space<vmem>>) attributes {dimension_semantics = [#tpu.dimension_semantics<parallel>], iteration_bounds = array<i64: 2>, scalar_prefetch = 0 : i64, scratch_operands = 0 : i64, tpu.core_type = #tpu.core_type<tc>, window_params = [{transform_indices = @transform_0, window_bounds = array<i64: 25, 8, 8>}, {transform_indices = @transform_1, window_bounds = array<i64: 25, 8, 16>}, {pipeline_mode = #tpu.pipeline_mode<synchronous>, transform_indices = @transform_2, window_bounds = array<i64: 16, 32>}, {pipeline_mode = #tpu.pipeline_mode<synchronous>, transform_indices = @transform_3, window_bounds = array<i64: 1, 32>}, {pipeline_mode = #tpu.pipeline_mode<synchronous>, transform_indices = @transform_4, window_bounds = array<i64: 32, 16>}, {pipeline_mode = #tpu.pipeline_mode<synchronous>, transform_indices = @transform_5, window_bounds = array<i64: 1, 16>}, {pipeline_mode = #tpu.pipeline_mode<synchronous>, transform_indices = @transform_6, window_bounds = array<i64: 1, 16>}, {pipeline_mode = #tpu.pipeline_mode<synchronous>, transform_indices = @transform_7, window_bounds = array<i64: 1, 1>}, {pipeline_mode = #tpu.pipeline_mode<synchronous>, transform_indices = @transform_8, window_bounds = array<i64: 16, 4>}, {pipeline_mode = #tpu.pipeline_mode<synchronous>, transform_indices = @transform_9, window_bounds = array<i64: 1, 4>}, {transform_indices = @transform_10, window_bounds = array<i64: 1, 25, 4>}]} {
    %c0 = arith.constant 0 : index
    %c0_0 = arith.constant 0 : index
    %c0_1 = arith.constant 0 : index
    %0 = vector.load %arg1[%c0, %c0_0, %c0_1] : memref<25x8x8xf32, #tpu.memory_space<vmem>>, vector<25x8x8xf32>
    %c0_2 = arith.constant 0 : index
    %c0_3 = arith.constant 0 : index
    %c0_4 = arith.constant 0 : index
    %1 = vector.load %arg2[%c0_2, %c0_3, %c0_4] : memref<25x8x16xf32, #tpu.memory_space<vmem>>, vector<25x8x16xf32>
    %2 = vector.extract_strided_slice %0 {offsets = [0, 0, 0], sizes = [25, 8, 1], strides = [1, 1, 1]} : vector<25x8x8xf32> to vector<25x8x1xf32>
    %3 = vector.extract_strided_slice %1 {offsets = [0, 0, 0], sizes = [25, 1, 16], strides = [1, 1, 1]} : vector<25x8x16xf32> to vector<25x1x16xf32>
    %4 = vector.broadcast %2 : vector<25x8x1xf32> to vector<25x8x16xf32>
    %5 = vector.broadcast %3 : vector<25x1x16xf32> to vector<25x8x16xf32>
    %6 = arith.mulf %4, %5 : vector<25x8x16xf32>
    %7 = vector.extract_strided_slice %0 {offsets = [0, 0, 1], sizes = [25, 8, 1], strides = [1, 1, 1]} : vector<25x8x8xf32> to vector<25x8x1xf32>
    %8 = vector.extract_strided_slice %1 {offsets = [0, 1, 0], sizes = [25, 1, 16], strides = [1, 1, 1]} : vector<25x8x16xf32> to vector<25x1x16xf32>
    %9 = vector.broadcast %7 : vector<25x8x1xf32> to vector<25x8x16xf32>
    %10 = vector.broadcast %8 : vector<25x1x16xf32> to vector<25x8x16xf32>
    %11 = arith.mulf %9, %10 : vector<25x8x16xf32>
    %12 = arith.addf %6, %11 : vector<25x8x16xf32>
    %13 = vector.extract_strided_slice %0 {offsets = [0, 0, 2], sizes = [25, 8, 1], strides = [1, 1, 1]} : vector<25x8x8xf32> to vector<25x8x1xf32>
    %14 = vector.extract_strided_slice %1 {offsets = [0, 2, 0], sizes = [25, 1, 16], strides = [1, 1, 1]} : vector<25x8x16xf32> to vector<25x1x16xf32>
    %15 = vector.broadcast %13 : vector<25x8x1xf32> to vector<25x8x16xf32>
    %16 = vector.broadcast %14 : vector<25x1x16xf32> to vector<25x8x16xf32>
    %17 = arith.mulf %15, %16 : vector<25x8x16xf32>
    %18 = arith.addf %12, %17 : vector<25x8x16xf32>
    %19 = vector.extract_strided_slice %0 {offsets = [0, 0, 3], sizes = [25, 8, 1], strides = [1, 1, 1]} : vector<25x8x8xf32> to vector<25x8x1xf32>
    %20 = vector.extract_strided_slice %1 {offsets = [0, 3, 0], sizes = [25, 1, 16], strides = [1, 1, 1]} : vector<25x8x16xf32> to vector<25x1x16xf32>
    %21 = vector.broadcast %19 : vector<25x8x1xf32> to vector<25x8x16xf32>
    %22 = vector.broadcast %20 : vector<25x1x16xf32> to vector<25x8x16xf32>
    %23 = arith.mulf %21, %22 : vector<25x8x16xf32>
    %24 = arith.addf %18, %23 : vector<25x8x16xf32>
    %25 = vector.extract_strided_slice %0 {offsets = [0, 0, 4], sizes = [25, 8, 1], strides = [1, 1, 1]} : vector<25x8x8xf32> to vector<25x8x1xf32>
    %26 = vector.extract_strided_slice %1 {offsets = [0, 4, 0], sizes = [25, 1, 16], strides = [1, 1, 1]} : vector<25x8x16xf32> to vector<25x1x16xf32>
    %27 = vector.broadcast %25 : vector<25x8x1xf32> to vector<25x8x16xf32>
    %28 = vector.broadcast %26 : vector<25x1x16xf32> to vector<25x8x16xf32>
    %29 = arith.mulf %27, %28 : vector<25x8x16xf32>
    %30 = arith.addf %24, %29 : vector<25x8x16xf32>
    %31 = vector.extract_strided_slice %0 {offsets = [0, 0, 5], sizes = [25, 8, 1], strides = [1, 1, 1]} : vector<25x8x8xf32> to vector<25x8x1xf32>
    %32 = vector.extract_strided_slice %1 {offsets = [0, 5, 0], sizes = [25, 1, 16], strides = [1, 1, 1]} : vector<25x8x16xf32> to vector<25x1x16xf32>
    %33 = vector.broadcast %31 : vector<25x8x1xf32> to vector<25x8x16xf32>
    %34 = vector.broadcast %32 : vector<25x1x16xf32> to vector<25x8x16xf32>
    %35 = arith.mulf %33, %34 : vector<25x8x16xf32>
    %36 = arith.addf %30, %35 : vector<25x8x16xf32>
    %37 = vector.extract_strided_slice %0 {offsets = [0, 0, 6], sizes = [25, 8, 1], strides = [1, 1, 1]} : vector<25x8x8xf32> to vector<25x8x1xf32>
    %38 = vector.extract_strided_slice %1 {offsets = [0, 6, 0], sizes = [25, 1, 16], strides = [1, 1, 1]} : vector<25x8x16xf32> to vector<25x1x16xf32>
    %39 = vector.broadcast %37 : vector<25x8x1xf32> to vector<25x8x16xf32>
    %40 = vector.broadcast %38 : vector<25x1x16xf32> to vector<25x8x16xf32>
    %41 = arith.mulf %39, %40 : vector<25x8x16xf32>
    %42 = arith.addf %36, %41 : vector<25x8x16xf32>
    %43 = vector.extract_strided_slice %0 {offsets = [0, 0, 7], sizes = [25, 8, 1], strides = [1, 1, 1]} : vector<25x8x8xf32> to vector<25x8x1xf32>
    %44 = vector.extract_strided_slice %1 {offsets = [0, 7, 0], sizes = [25, 1, 16], strides = [1, 1, 1]} : vector<25x8x16xf32> to vector<25x1x16xf32>
    %45 = vector.broadcast %43 : vector<25x8x1xf32> to vector<25x8x16xf32>
    %46 = vector.broadcast %44 : vector<25x1x16xf32> to vector<25x8x16xf32>
    %47 = arith.mulf %45, %46 : vector<25x8x16xf32>
    %48 = arith.addf %42, %47 : vector<25x8x16xf32>
    %49 = vector.shape_cast %48 : vector<25x8x16xf32> to vector<200x16xf32>
    %c0_5 = arith.constant 0 : index
    %c0_6 = arith.constant 0 : index
    %50 = vector.load %arg3[%c0_5, %c0_6] : memref<16x32xf32, #tpu.memory_space<vmem>>, vector<16x32xf32>
    %cst = arith.constant dense<0.000000e+00> : vector<200x32xf32>
    %51 = tpu.matmul %49, %50, %cst {dimension_numbers = #tpu.dot_dimension_numbers<[1], [0], [0], [1], [0, 0, 1, 1], [], []>} : vector<200x16xf32>, vector<16x32xf32>, vector<200x32xf32> -> vector<200x32xf32>
    %c0_7 = arith.constant 0 : index
    %c0_8 = arith.constant 0 : index
    %52 = vector.load %arg4[%c0_7, %c0_8] : memref<1x32xf32, #tpu.memory_space<vmem>>, vector<1x32xf32>
    %53 = vector.broadcast %52 : vector<1x32xf32> to vector<200x32xf32>
    %54 = arith.addf %51, %53 : vector<200x32xf32>
    %cst_9 = arith.constant 0.000000e+00 : f32
    %55 = vector.broadcast %cst_9 : f32 to vector<200x32xf32>
    %56 = arith.maximumf %54, %55 : vector<200x32xf32>
    %57 = arith.mulf %54, %54 : vector<200x32xf32>
    %cst_10 = arith.constant 1.000000e+00 : f32
    %58 = vector.broadcast %cst_10 : f32 to vector<200x32xf32>
    %59 = arith.addf %57, %58 : vector<200x32xf32>
    %60 = tpu.reciprocal %59 : vector<200x32xf32> -> vector<200x32xf32>
    %cst_11 = arith.constant 2.000000e+00 : f32
    %61 = vector.broadcast %cst_11 : f32 to vector<200x32xf32>
    %62 = arith.mulf %61, %60 : vector<200x32xf32>
    %63 = arith.subf %56, %62 : vector<200x32xf32>
    %64 = vector.shape_cast %63 : vector<200x32xf32> to vector<25x8x32xf32>
    %65 = vector.extract_strided_slice %0 {offsets = [0, 0, 0], sizes = [25, 8, 1], strides = [1, 1, 1]} : vector<25x8x8xf32> to vector<25x8x1xf32>
    %66 = vector.extract_strided_slice %64 {offsets = [0, 0, 0], sizes = [25, 1, 32], strides = [1, 1, 1]} : vector<25x8x32xf32> to vector<25x1x32xf32>
    %67 = vector.broadcast %65 : vector<25x8x1xf32> to vector<25x8x32xf32>
    %68 = vector.broadcast %66 : vector<25x1x32xf32> to vector<25x8x32xf32>
    %69 = arith.mulf %67, %68 : vector<25x8x32xf32>
    %70 = vector.extract_strided_slice %0 {offsets = [0, 0, 1], sizes = [25, 8, 1], strides = [1, 1, 1]} : vector<25x8x8xf32> to vector<25x8x1xf32>
    %71 = vector.extract_strided_slice %64 {offsets = [0, 1, 0], sizes = [25, 1, 32], strides = [1, 1, 1]} : vector<25x8x32xf32> to vector<25x1x32xf32>
    %72 = vector.broadcast %70 : vector<25x8x1xf32> to vector<25x8x32xf32>
    %73 = vector.broadcast %71 : vector<25x1x32xf32> to vector<25x8x32xf32>
    %74 = arith.mulf %72, %73 : vector<25x8x32xf32>
    %75 = arith.addf %69, %74 : vector<25x8x32xf32>
    %76 = vector.extract_strided_slice %0 {offsets = [0, 0, 2], sizes = [25, 8, 1], strides = [1, 1, 1]} : vector<25x8x8xf32> to vector<25x8x1xf32>
    %77 = vector.extract_strided_slice %64 {offsets = [0, 2, 0], sizes = [25, 1, 32], strides = [1, 1, 1]} : vector<25x8x32xf32> to vector<25x1x32xf32>
    %78 = vector.broadcast %76 : vector<25x8x1xf32> to vector<25x8x32xf32>
    %79 = vector.broadcast %77 : vector<25x1x32xf32> to vector<25x8x32xf32>
    %80 = arith.mulf %78, %79 : vector<25x8x32xf32>
    %81 = arith.addf %75, %80 : vector<25x8x32xf32>
    %82 = vector.extract_strided_slice %0 {offsets = [0, 0, 3], sizes = [25, 8, 1], strides = [1, 1, 1]} : vector<25x8x8xf32> to vector<25x8x1xf32>
    %83 = vector.extract_strided_slice %64 {offsets = [0, 3, 0], sizes = [25, 1, 32], strides = [1, 1, 1]} : vector<25x8x32xf32> to vector<25x1x32xf32>
    %84 = vector.broadcast %82 : vector<25x8x1xf32> to vector<25x8x32xf32>
    %85 = vector.broadcast %83 : vector<25x1x32xf32> to vector<25x8x32xf32>
    %86 = arith.mulf %84, %85 : vector<25x8x32xf32>
    %87 = arith.addf %81, %86 : vector<25x8x32xf32>
    %88 = vector.extract_strided_slice %0 {offsets = [0, 0, 4], sizes = [25, 8, 1], strides = [1, 1, 1]} : vector<25x8x8xf32> to vector<25x8x1xf32>
    %89 = vector.extract_strided_slice %64 {offsets = [0, 4, 0], sizes = [25, 1, 32], strides = [1, 1, 1]} : vector<25x8x32xf32> to vector<25x1x32xf32>
    %90 = vector.broadcast %88 : vector<25x8x1xf32> to vector<25x8x32xf32>
    %91 = vector.broadcast %89 : vector<25x1x32xf32> to vector<25x8x32xf32>
    %92 = arith.mulf %90, %91 : vector<25x8x32xf32>
    %93 = arith.addf %87, %92 : vector<25x8x32xf32>
    %94 = vector.extract_strided_slice %0 {offsets = [0, 0, 5], sizes = [25, 8, 1], strides = [1, 1, 1]} : vector<25x8x8xf32> to vector<25x8x1xf32>
    %95 = vector.extract_strided_slice %64 {offsets = [0, 5, 0], sizes = [25, 1, 32], strides = [1, 1, 1]} : vector<25x8x32xf32> to vector<25x1x32xf32>
    %96 = vector.broadcast %94 : vector<25x8x1xf32> to vector<25x8x32xf32>
    %97 = vector.broadcast %95 : vector<25x1x32xf32> to vector<25x8x32xf32>
    %98 = arith.mulf %96, %97 : vector<25x8x32xf32>
    %99 = arith.addf %93, %98 : vector<25x8x32xf32>
    %100 = vector.extract_strided_slice %0 {offsets = [0, 0, 6], sizes = [25, 8, 1], strides = [1, 1, 1]} : vector<25x8x8xf32> to vector<25x8x1xf32>
    %101 = vector.extract_strided_slice %64 {offsets = [0, 6, 0], sizes = [25, 1, 32], strides = [1, 1, 1]} : vector<25x8x32xf32> to vector<25x1x32xf32>
    %102 = vector.broadcast %100 : vector<25x8x1xf32> to vector<25x8x32xf32>
    %103 = vector.broadcast %101 : vector<25x1x32xf32> to vector<25x8x32xf32>
    %104 = arith.mulf %102, %103 : vector<25x8x32xf32>
    %105 = arith.addf %99, %104 : vector<25x8x32xf32>
    %106 = vector.extract_strided_slice %0 {offsets = [0, 0, 7], sizes = [25, 8, 1], strides = [1, 1, 1]} : vector<25x8x8xf32> to vector<25x8x1xf32>
    %107 = vector.extract_strided_slice %64 {offsets = [0, 7, 0], sizes = [25, 1, 32], strides = [1, 1, 1]} : vector<25x8x32xf32> to vector<25x1x32xf32>
    %108 = vector.broadcast %106 : vector<25x8x1xf32> to vector<25x8x32xf32>
    %109 = vector.broadcast %107 : vector<25x1x32xf32> to vector<25x8x32xf32>
    %110 = arith.mulf %108, %109 : vector<25x8x32xf32>
    %111 = arith.addf %105, %110 : vector<25x8x32xf32>
    %112 = vector.shape_cast %111 : vector<25x8x32xf32> to vector<200x32xf32>
    %c0_12 = arith.constant 0 : index
    %c0_13 = arith.constant 0 : index
    %113 = vector.load %arg5[%c0_12, %c0_13] : memref<32x16xf32, #tpu.memory_space<vmem>>, vector<32x16xf32>
    %cst_14 = arith.constant dense<0.000000e+00> : vector<200x16xf32>
    %114 = tpu.matmul %112, %113, %cst_14 {dimension_numbers = #tpu.dot_dimension_numbers<[1], [0], [0], [1], [0, 0, 1, 1], [], []>} : vector<200x32xf32>, vector<32x16xf32>, vector<200x16xf32> -> vector<200x16xf32>
    %c0_15 = arith.constant 0 : index
    %c0_16 = arith.constant 0 : index
    %115 = vector.load %arg6[%c0_15, %c0_16] : memref<1x16xf32, #tpu.memory_space<vmem>>, vector<1x16xf32>
    %116 = vector.broadcast %115 : vector<1x16xf32> to vector<200x16xf32>
    %117 = arith.addf %114, %116 : vector<200x16xf32>
    %cst_17 = arith.constant 0.000000e+00 : f32
    %118 = vector.broadcast %cst_17 : f32 to vector<200x16xf32>
    %119 = arith.maximumf %117, %118 : vector<200x16xf32>
    %120 = arith.mulf %117, %117 : vector<200x16xf32>
    %cst_18 = arith.constant 1.000000e+00 : f32
    %121 = vector.broadcast %cst_18 : f32 to vector<200x16xf32>
    %122 = arith.addf %120, %121 : vector<200x16xf32>
    %123 = tpu.reciprocal %122 : vector<200x16xf32> -> vector<200x16xf32>
    %cst_19 = arith.constant 2.000000e+00 : f32
    %124 = vector.broadcast %cst_19 : f32 to vector<200x16xf32>
    %125 = arith.mulf %124, %123 : vector<200x16xf32>
    %126 = arith.subf %119, %125 : vector<200x16xf32>
    %c0_20 = arith.constant 0 : index
    %c0_21 = arith.constant 0 : index
    %127 = vector.load %arg7[%c0_20, %c0_21] : memref<1x16xf32, #tpu.memory_space<vmem>>, vector<1x16xf32>
    %128 = vector.broadcast %127 : vector<1x16xf32> to vector<200x16xf32>
    %129 = arith.mulf %126, %128 : vector<200x16xf32>
    %cst_22 = arith.constant dense<0.000000e+00> : vector<200xf32>
    %130 = vector.multi_reduction <add>, %129, %cst_22 [1] : vector<200x16xf32> to vector<200xf32>
    %131 = vector.shape_cast %130 : vector<200xf32> to vector<200x1xf32>
    %132 = vector.shape_cast %131 : vector<200x1xf32> to vector<25x8x1xf32>
    %133 = vector.broadcast %132 : vector<25x8x1xf32> to vector<25x8x16xf32>
    %134 = arith.mulf %133, %48 : vector<25x8x16xf32>
    %cst_23 = arith.constant dense<0.000000e+00> : vector<25x16xf32>
    %135 = vector.multi_reduction <add>, %134, %cst_23 [1] : vector<25x8x16xf32> to vector<25x16xf32>
    %c0_24 = arith.constant 0 : index
    %c0_25 = arith.constant 0 : index
    %136 = vector.load %arg8[%c0_24, %c0_25] : memref<1x1xf32, #tpu.memory_space<vmem>>, vector<1x1xf32>
    %cst_26 = arith.constant dense<0.000000e+00> : vector<25x16xf32>
    %137 = vector.multi_reduction <add>, %1, %cst_26 [1] : vector<25x8x16xf32> to vector<25x16xf32>
    %138 = vector.broadcast %136 : vector<1x1xf32> to vector<25x16xf32>
    %139 = arith.mulf %138, %137 : vector<25x16xf32>
    %140 = arith.addf %135, %139 : vector<25x16xf32>
    %c0_27 = arith.constant 0 : index
    %c0_28 = arith.constant 0 : index
    %141 = vector.load %arg9[%c0_27, %c0_28] : memref<16x4xf32, #tpu.memory_space<vmem>>, vector<16x4xf32>
    %cst_29 = arith.constant dense<0.000000e+00> : vector<25x4xf32>
    %142 = tpu.matmul %140, %141, %cst_29 {dimension_numbers = #tpu.dot_dimension_numbers<[1], [0], [0], [1], [0, 0, 1, 1], [], []>} : vector<25x16xf32>, vector<16x4xf32>, vector<25x4xf32> -> vector<25x4xf32>
    %c0_30 = arith.constant 0 : index
    %c0_31 = arith.constant 0 : index
    %143 = vector.load %arg10[%c0_30, %c0_31] : memref<1x4xf32, #tpu.memory_space<vmem>>, vector<1x4xf32>
    %144 = vector.broadcast %143 : vector<1x4xf32> to vector<25x4xf32>
    %145 = arith.addf %142, %144 : vector<25x4xf32>
    %146 = vector.shape_cast %145 : vector<25x4xf32> to vector<1x25x4xf32>
    %c0_32 = arith.constant 0 : index
    %c0_33 = arith.constant 0 : index
    %c0_34 = arith.constant 0 : index
    %147 = vector.load %arg11[%c0_32, %c0_33, %c0_34] : memref<1x25x4xf32, #tpu.memory_space<vmem>>, vector<1x25x4xf32>
    tpu.vector_store %arg11[%c0_32, %c0_33, %c0_34], %146 {strides = array<i32>} : memref<1x25x4xf32, #tpu.memory_space<vmem>>, vector<1x25x4xf32>,
    return
  }
  func.func @transform_0(%arg0: i32) -> (i32, i32, i32) {
    %c0_i32 = arith.constant 0 : i32
    %c0_i32_0 = arith.constant 0 : i32
    %c0_i32_1 = arith.constant 0 : i32
    return %arg0, %c0_i32, %c0_i32_0 : i32, i32, i32
  }
  func.func @transform_1(%arg0: i32) -> (i32, i32, i32) {
    %c0_i32 = arith.constant 0 : i32
    %c0_i32_0 = arith.constant 0 : i32
    %c0_i32_1 = arith.constant 0 : i32
    return %arg0, %c0_i32, %c0_i32_0 : i32, i32, i32
  }
  func.func @transform_2(%arg0: i32) -> (i32, i32) {
    %c0_i32 = arith.constant 0 : i32
    %c0_i32_0 = arith.constant 0 : i32
    %c0_i32_1 = arith.constant 0 : i32
    return %c0_i32, %c0_i32_0 : i32, i32
  }
  func.func @transform_3(%arg0: i32) -> (i32, i32) {
    %c0_i32 = arith.constant 0 : i32
    %c0_i32_0 = arith.constant 0 : i32
    %c0_i32_1 = arith.constant 0 : i32
    return %c0_i32, %c0_i32_0 : i32, i32
  }
  func.func @transform_4(%arg0: i32) -> (i32, i32) {
    %c0_i32 = arith.constant 0 : i32
    %c0_i32_0 = arith.constant 0 : i32
    %c0_i32_1 = arith.constant 0 : i32
    return %c0_i32, %c0_i32_0 : i32, i32
  }
  func.func @transform_5(%arg0: i32) -> (i32, i32) {
    %c0_i32 = arith.constant 0 : i32
    %c0_i32_0 = arith.constant 0 : i32
    %c0_i32_1 = arith.constant 0 : i32
    return %c0_i32, %c0_i32_0 : i32, i32
  }
  func.func @transform_6(%arg0: i32) -> (i32, i32) {
    %c0_i32 = arith.constant 0 : i32
    %c0_i32_0 = arith.constant 0 : i32
    %c0_i32_1 = arith.constant 0 : i32
    return %c0_i32, %c0_i32_0 : i32, i32
  }
  func.func @transform_7(%arg0: i32) -> (i32, i32) {
    %c0_i32 = arith.constant 0 : i32
    %c0_i32_0 = arith.constant 0 : i32
    %c0_i32_1 = arith.constant 0 : i32
    return %c0_i32, %c0_i32_0 : i32, i32
  }
  func.func @transform_8(%arg0: i32) -> (i32, i32) {
    %c0_i32 = arith.constant 0 : i32
    %c0_i32_0 = arith.constant 0 : i32
    %c0_i32_1 = arith.constant 0 : i32
    return %c0_i32, %c0_i32_0 : i32, i32
  }
  func.func @transform_9(%arg0: i32) -> (i32, i32) {
    %c0_i32 = arith.constant 0 : i32
    %c0_i32_0 = arith.constant 0 : i32
    %c0_i32_1 = arith.constant 0 : i32
    return %c0_i32, %c0_i32_0 : i32, i32
  }
  func.func @transform_10(%arg0: i32) -> (i32, i32, i32) {
    %c0_i32 = arith.constant 0 : i32
    %c0_i32_0 = arith.constant 0 : i32
    %c0_i32_1 = arith.constant 0 : i32
    return %arg0, %c0_i32, %c0_i32_0 : i32, i32, i32
  }
}

</mosaic_0001>

<bundles_post_ra>
// kernel: tpu_custom_call.1
= control target key start
LH: loop header
LB: loop body
LE: loop exit
PB: predicated region body
PF: predicated region fallthrough
CT: control target
= control target key end

     0   :  { %s5922_s15 = smov 0   ;;  %s8801_s0 = inlined_call_operand.vmem [shape: f32[50,8,8], index: 0, kind: input, shape index: {}]   ;;  %s8802_s1 = inlined_call_operand.vmem [shape: f32[50,8,16], index: 1, kind: input, shape index: {}]   ;;  %s8803_s2 = inlined_call_operand.vmem [shape: f32[16,32], index: 2, kind: input, shape index: {}]   ;;  %s8804_s3 = inlined_call_operand.vmem [shape: f32[1,32], index: 3, kind: input, shape index: {}]   ;;  %s8805_s4 = inlined_call_operand.vmem [shape: f32[32,16], index: 4, kind: input, shape index: {}]   ;;  %s8806_s5 = inlined_call_operand.vmem [shape: f32[1,16], index: 5, kind: input, shape index: {}]   ;;  %s8807_s6 = inlined_call_operand.vmem [shape: f32[1,16], index: 6, kind: input, shape index: {}]   ;;  %s8808_s7 = inlined_call_operand.<no memory space> [shape: f32[1,1], index: 7, kind: input, shape index: {}]   ;;  %s8809_s8 = inlined_call_operand.vmem [shape: f32[16,4], index: 8, kind: input, shape index: {}]   ;;  %s8810_s9 = inlined_call_operand.vmem [shape: f32[1,4], index: 9, kind: input, shape index: {}]   ;;  %s8811_s10 = inlined_call_operand.vmem [shape: f32[2,25,4], index: 10, kind: output, shape index: {}]  }
   0x1   :  { %v15_v0 = vstv %s8808_s7 }
   0x2   :  { %16 = vst [vmem:[#allocation2] sm:$0x1] %v15_v0 }
   0x3 LB: > { %s5928_s16 = sadd.s32 4294967295, %s5852_s15   ;;  %p5237_p0 = scmp.ge.s32.totalorder %s5852_s15, 1  ;;  %s5852_s15 = sphi %s5922_s15, %s22_s15  }
   0x4   : > { %p326_p1 = scmp.lt.s32.totalorder %s5852_s15, 3 }
   0x6   : > { %p327_p2 = pnand %p5237_p0, %p326_p1 }
   0x8   : > { %330 = sbr.rel (%p327_p2) target bundleno = 1625 (0x659), region = 60 }
   0xd   : > { %s369_s17 = smul.u32 25, %s5928_s16  ;;  %v8831_v1 = vmov 6   ;;  %v8816_v2 = vmov 2   ;;  %v8814_v6 = vmov 0   ;;  %v8822_v7 = vmov 1   ;;  %v2437_v51 = vld [vmem:[%s8803_s2 + $0x8] sm:$0xff] }
   0xe   : > { %5565 = vset.pattern.permute.xlu0 %v8831_v1  ;;  %5556 = vset.pattern.permute.xlu1 %v8816_v2  ;;  %v8826_v11 = vmov 4   ;;  %v8820_v13 = vmov 3   ;;  %v8818_v19 = vmov 5   ;;  %v8824_v20 = vmov 7   ;;  %v2436_v53 = vld [vmem:[%s8803_s2] sm:$0xff]  ;;  %p381_p4 = scmp.lt.s32.totalorder %s5928_s16, 1 }
   0xf   : > { %p370_p3 = scmp.lt.s32.totalorder %s369_s17, 49  ;;  %v8812_v50 = vmov 0.0   ;;  %vm5863_vm0 = vmmov 0   ;;  %vm2445_vm1 = vcmask 130048   ;;  %vm4047_vm2 = vcmask 261120  }
  0x10   : > { %5366 = vmatprep.subr.mxu0 %v8812_v50  ;;  %5445 = vmatprep.subr.mxu1 %v8812_v50  ;;  %vm5039_vm3 = vcmask 1041409   ;;  %vm5041_vm4 = vcmask 1042434   ;;  %vm5043_vm5 = vcmask 1043459   ;;  %vm5045_vm6 = vcmask 1044484   ;;  %s9551_s16 = smov (!%p381_p4, %s5928_s16), 1 }
  0x11   : > { %s9549_s17 = smov (!%p370_p3, %s369_s17), 49  ;;  %5367 = vmatpush3.msra.mxu0 %v2437_v51  ;;  %5370 = vmatprep.mubr.msk.f32.mxu0 %vm5863_vm0, %v8812_v50  ;;  %vm5047_vm7 = vcmask 1045509   ;;  %vm5049_vm8 = vcmask 1046534   ;;  %vm5051_vm9 = vcmask 1047559   ;;  %vm5160_vm10 = vcmask 31744  }
  0x12   : > { %s5238_s7 = sshll.u32 %s9549_s17, 3  ;;  %5368 = vmatprep.subr.mxu0 %v8812_v50  ;;  %5453 = vmatprep.mubr.msk.f32.mxu1 %vm5863_vm0, %v8812_v50  ;;  %vm5164_vm11 = vcmask 24576  }
  0x13   : > { %s5943_s20 = scalar_lea.vmem %s8801_s0, %s5238_s7  ;;  %5369 = vmatpush3.msra.mxu0 %v2436_v53  ;;  %s6331_s27 = scalar_lea.vmem %s8802_s1, %s5238_s7 }
  0x14   : > { %v5946_v3 = vld [vmem:[%s5943_s20] sm:$0xff]  ;;  %v5951_v4 = vld [vmem:[%s5943_s20 + $0x18] sm:$0xff]  ;;  %v5954_v5 = vld [vmem:[%s5943_s20 + $0x8] sm:$0xff] }
  0x15   : > { %1937 = vperm.xlu0 %5565, %v5946_v3   ;;  %937 = vperm.xlu1 %5556, %v5946_v3   ;;  %v5964_v8 = vld [vmem:[%s5943_s20 + $0x30] sm:$0xff]  ;;  %v5969_v9 = vld [vmem:[%s5943_s20 + $0x48] sm:$0xff]  ;;  %v5974_v10 = vld [vmem:[%s5943_s20 + $0x60] sm:$0xff] }
  0x16   : > { %v5980_v12 = vld [vmem:[%s5943_s20 + $0x10] sm:$0xff]  ;;  %v5990_v14 = vld [vmem:[%s5943_s20 + $0x28] sm:$0xff]  ;;  %v5996_v15 = vld [vmem:[%s5943_s20 + $0x40] sm:$0xff] }
  0x17   : > { %v6001_v16 = vld [vmem:[%s5943_s20 + $0x58] sm:$0xff]  ;;  %v6006_v17 = vld [vmem:[%s5943_s20 + $0x70] sm:$0xff]  ;;  %v6012_v18 = vld [vmem:[%s5943_s20 + $0x88] sm:$0xff] }
  0x18   : > { %9040 = vst [vmem:[#allocation3_spill] sm:$0xff] %v6001_v16  ;;  %9041 = vst [vmem:[#allocation4_spill] sm:$0xff] %v6006_v17  ;;  %v6025_v21 = vld [vmem:[%s5943_s20 + $0x20] sm:$0xff]  ;;  %v6030_v22 = vld [vmem:[%s5943_s20 + $0x38] sm:$0xff] }
  0x19   : > { %1949 = vperm.xlu0 %5565, %v5951_v4   ;;  %5557 = vset.pattern.permute.xlu1 %v8814_v6  ;;  %v6035_v23 = vld [vmem:[%s5943_s20 + $0x50] sm:$0xff]  ;;  %v6041_v24 = vld [vmem:[%s5943_s20 + $0x68] sm:$0xff]  ;;  %v402_v25 = vld [vmem:[%s5943_s20 + $0x80] sm:$0xff] }
  0x1a   : > { %443 = vperm.xlu1 %5557, %v5954_v5   ;;  %9042 = vst [vmem:[#allocation5_spill] sm:$0xff] %v6041_v24  ;;  %v405_v26 = vld [vmem:[%s5943_s20 + $0x98] sm:$0xff]  ;;  %v408_v27 = vld [vmem:[%s5943_s20 + $0xb0] sm:$0xff]  ;;  %v6074_v28 = vld [vmem:[%s5943_s20 + $0xa0] sm:$0xff] }
  0x1b   : > { %v6107_v37 = vld [vmem:[%s5943_s20 + $0x78] sm:$0xff]  ;;  %v6115_v39 = vld [vmem:[%s5943_s20 + $0x90] sm:$0xff]  ;;  %v6125_v42 = vld [vmem:[%s5943_s20 + $0xa8] sm:$0xff] }
  0x1c   : > { %9050 = vst [vmem:[#allocation13_spill] sm:$0xff] %v6107_v37  ;;  %v6193_v61 = vld [vmem:[%s5943_s20 + $0xb8] sm:$0xff] }
  0x1d   : > { %5582 = vset.pattern.permute.xlu0 %v8816_v2  ;;  %9067 = vst [vmem:[#allocation30_spill] sm:$0xff] %v6193_v61 }
  0x1e   : > { %949 = vperm.xlu0 %5582, %v5951_v4   ;;  %5558 = vset.pattern.permute.xlu1 %v8822_v7 }
  0x1f   : > { %691 = vperm.xlu1 %5558, %v5954_v5  }
  0x22   : > { %961 = vperm.xlu0 %5582, %v5964_v8  }
  0x23   : > { %5559 = vset.pattern.permute.xlu1 %v8816_v2 }
  0x24   : > { %941 = vperm.xlu1 %5559, %v5954_v5  }
  0x26   : > { %973 = vperm.xlu0 %5582, %v5969_v9  }
  0x28   : > { %5560 = vset.pattern.permute.xlu1 %v8826_v11 }
  0x29   : > { %1437 = vperm.xlu1 %5560, %v5946_v3  }
  0x2a   : > { %985 = vperm.xlu0 %5582, %v5974_v10  }
  0x2d   : > { %5561 = vset.pattern.permute.xlu1 %v8822_v7 }
  0x2e   : > { %5619 = vset.pattern.permute.xlu0 %v8820_v13  ;;  %695 = vperm.xlu1 %5561, %v5980_v12  }
  0x2f   : > { %1187 = vperm.xlu0 %5619, %v5946_v3  }
  0x32   : > { %5562 = vset.pattern.permute.xlu1 %v8820_v13 }
  0x33   : > { %1195 = vperm.xlu0 %5619, %v5980_v12   ;;  %1191 = vperm.xlu1 %5562, %v5954_v5  }
  0x37   : > { %1207 = vperm.xlu0 %5619, %v5990_v14   ;;  %5563 = vset.pattern.permute.xlu1 %v8816_v2 }
  0x38   : > { %945 = vperm.xlu1 %5563, %v5980_v12  }
  0x3b   : > { %1219 = vperm.xlu0 %5619, %v5996_v15  }
  0x3c   : > { %5564 = vset.pattern.permute.xlu1 %v8826_v11 }
  0x3d   : > { %1441 = vperm.xlu1 %5564, %v5954_v5  }
  0x3f   : > { %1231 = vperm.xlu0 %5619, %v6001_v16  }
  0x41   : > { %5566 = vset.pattern.permute.xlu1 %v8814_v6 }
  0x42   : > { %453 = vperm.xlu1 %5566, %v5951_v4  }
  0x43   : > { %1243 = vperm.xlu0 %5619, %v6006_v17  }
  0x46   : > { %5567 = vset.pattern.permute.xlu1 %v8822_v7 }
  0x47   : > { %1255 = vperm.xlu0 %5619, %v6012_v18   ;;  %699 = vperm.xlu1 %5567, %v5951_v4  }
  0x4b   : > { %5650 = vset.pattern.permute.xlu0 %v8814_v6  ;;  %5568 = vset.pattern.permute.xlu1 %v8818_v19 }
  0x4c   : > { %438 = vperm.xlu0 %5650, %v5946_v3   ;;  %1691 = vperm.xlu1 %5568, %v5954_v5  }
  0x50   : > { %448 = vperm.xlu0 %5650, %v5980_v12   ;;  %5569 = vset.pattern.permute.xlu1 %v8824_v20 }
  0x51   : > { %2187 = vperm.xlu1 %5569, %v5946_v3  }
  0x54   : > { %458 = vperm.xlu0 %5650, %v6025_v21  }
  0x55   : > { %5570 = vset.pattern.permute.xlu1 %v8826_v11 }
  0x56   : > { %1445 = vperm.xlu1 %5570, %v5980_v12  }
  0x58   : > { %473 = vperm.xlu0 %5650, %v6030_v22  }
  0x5a   : > { %5571 = vset.pattern.permute.xlu1 %v8831_v1 }
  0x5b   : > { %1941 = vperm.xlu1 %5571, %v5954_v5  }
  0x5c   : > { %488 = vperm.xlu0 %5650, %v6035_v23  }
  0x5f   : > { %5572 = vset.pattern.permute.xlu1 %v8822_v7 }
  0x60   : > { %503 = vperm.xlu0 %5650, %v6041_v24   ;;  %703 = vperm.xlu1 %5572, %v6025_v21  }
  0x64   : > { %518 = vperm.xlu0 %5650, %v402_v25   ;;  %5573 = vset.pattern.permute.xlu1 %v8820_v13 }
  0x65   : > { %1199 = vperm.xlu1 %5573, %v5951_v4  }
  0x68   : > { %533 = vperm.xlu0 %5650, %v405_v26  }
  0x69   : > { %5574 = vset.pattern.permute.xlu1 %v8824_v20 }
  0x6a   : > { %2191 = vperm.xlu1 %5574, %v5954_v5  }
  0x6c   : > { %548 = vperm.xlu0 %5650, %v408_v27  }
  0x6e   : > { %5575 = vset.pattern.permute.xlu1 %v8816_v2 }
  0x6f   : > { %953 = vperm.xlu1 %5575, %v6025_v21  }
  0x70   : > { %5671 = vset.pattern.permute.xlu0 %v8818_v19 }
  0x71   : > { %1687 = vperm.xlu0 %5671, %v5946_v3  }
  0x73   : > { %5576 = vset.pattern.permute.xlu1 %v8831_v1 }
  0x74   : > { %1945 = vperm.xlu1 %5576, %v5980_v12  }
  0x75   : > { %1695 = vperm.xlu0 %5671, %v5980_v12  }
  0x78   : > { %5577 = vset.pattern.permute.xlu1 %v8814_v6 }
  0x79   : > { %1707 = vperm.xlu0 %5671, %v5990_v14   ;;  %463 = vperm.xlu1 %5577, %v5990_v14  }
  0x7d   : > { %1719 = vperm.xlu0 %5671, %v5996_v15   ;;  %5578 = vset.pattern.permute.xlu1 %v8820_v13 }
  0x7e   : > { %1203 = vperm.xlu1 %5578, %v6025_v21  }
  0x81   : > { %1731 = vperm.xlu0 %5671, %v6001_v16  }
  0x82   : > { %5579 = vset.pattern.permute.xlu1 %v8818_v19 }
  0x83   : > { %1699 = vperm.xlu1 %5579, %v5951_v4  }
  0x85   : > { %1743 = vperm.xlu0 %5671, %v6006_v17  }
  0x87   : > { %5580 = vset.pattern.permute.xlu1 %v8816_v2 }
  0x88   : > { %957 = vperm.xlu1 %5580, %v5990_v14  }
  0x89   : > { %1755 = vperm.xlu0 %5671, %v6012_v18  }
  0x8c   : > { %5581 = vset.pattern.permute.xlu1 %v8826_v11 }
  0x8d   : > { %1767 = vperm.xlu0 %5671, %v6074_v28   ;;  %1453 = vperm.xlu1 %5581, %v6025_v21  }
  0x90   : > { %v6079_v29 = vpop.permute.xlu1 %937  ;;  %v6081_v30 = vpop.permute.xlu0 %1937 }
  0x91   : > { %9043 = vst [vmem:[#allocation6_spill] sm:$0xff] %v6079_v29  ;;  %5674 = vset.pattern.permute.xlu0 %v8826_v11  ;;  %5583 = vset.pattern.permute.xlu1 %v8814_v6 }
  0x92   : > { %1449 = vperm.xlu0 %5674, %v5951_v4   ;;  %468 = vperm.xlu1 %5583, %v5964_v8  }
  0x94   : > { %v6087_v31 = vpop.permute.xlu0 %1949 }
  0x95   : > { %9044 = vst [vmem:[#allocation7_spill] sm:$0xff] %v6087_v31  ;;  %v6089_v32 = vpop.permute.xlu1 %443 }
  0x96   : > { %9045 = vst [vmem:[#allocation8_spill] sm:$0xff] %v6089_v32  ;;  %1461 = vperm.xlu0 %5674, %v5964_v8   ;;  %5584 = vset.pattern.permute.xlu1 %v8822_v7 }
  0x97   : > { %711 = vperm.xlu1 %5584, %v5964_v8  }
  0x99   : > { %v6094_v33 = vpop.permute.xlu0 %949 }
  0x9a   : > { %9046 = vst [vmem:[#allocation9_spill] sm:$0xff] %v6094_v33  ;;  %1473 = vperm.xlu0 %5674, %v5969_v9   ;;  %v6097_v34 = vpop.permute.xlu1 %691 }
  0x9b   : > { %9047 = vst [vmem:[#allocation10_spill] sm:$0xff] %v6097_v34  ;;  %5585 = vset.pattern.permute.xlu1 %v8818_v19 }
  0x9c   : > { %1703 = vperm.xlu1 %5585, %v6025_v21  }
  0x9d   : > { %v6101_v35 = vpop.permute.xlu0 %961 }
  0x9e   : > { %9048 = vst [vmem:[#allocation11_spill] sm:$0xff] %v6101_v35  ;;  %1485 = vperm.xlu0 %5674, %v5974_v10  }
  0x9f   : > { %v6104_v36 = vpop.permute.xlu1 %941 }
  0xa0   : > { %9049 = vst [vmem:[#allocation12_spill] sm:$0xff] %v6104_v36  ;;  %5586 = vset.pattern.permute.xlu1 %v8824_v20 }
  0xa1   : > { %2199 = vperm.xlu1 %5586, %v5951_v4   ;;  %v6111_v38 = vpop.permute.xlu0 %973 }
  0xa2   : > { %9051 = vst [vmem:[#allocation14_spill] sm:$0xff] %v6111_v38  ;;  %1497 = vperm.xlu0 %5674, %v6107_v37  }
  0xa4   : > { %v6117_v40 = vpop.permute.xlu1 %1437 }
  0xa5   : > { %9052 = vst [vmem:[#allocation15_spill] sm:$0xff] %v6117_v40  ;;  %5587 = vset.pattern.permute.xlu1 %v8826_v11  ;;  %v6120_v41 = vpop.permute.xlu0 %985 }
  0xa6   : > { %9053 = vst [vmem:[#allocation16_spill] sm:$0xff] %v6120_v41  ;;  %1509 = vperm.xlu0 %5674, %v6115_v39   ;;  %1457 = vperm.xlu1 %5587, %v5990_v14   ;;  %v9097_v41 = vmov 7  }
  0xa9   : > { %v6127_v43 = vpop.permute.xlu1 %695 }
  0xaa   : > { %9054 = vst [vmem:[#allocation17_spill] sm:$0xff] %v6127_v43  ;;  %1521 = vperm.xlu0 %5674, %v6125_v42   ;;  %5588 = vset.pattern.permute.xlu1 %v8831_v1  ;;  %v6131_v44 = vpop.permute.xlu0 %1187 }
  0xab   : > { %9055 = vst [vmem:[#allocation18_spill] sm:$0xff] %v6131_v44  ;;  %1953 = vperm.xlu1 %5588, %v6025_v21  }
  0xae   : > { %5677 = vset.pattern.permute.xlu0 %v8822_v7  ;;  %v6135_v45 = vpop.permute.xlu1 %1191  ;;  %v6137_v46 = vpop.permute.xlu0 %1195 }
  0xaf   : > { %9056 = vst [vmem:[#allocation19_spill] sm:$0xff] %v6135_v45  ;;  %9057 = vst [vmem:[#allocation20_spill] sm:$0xff] %v6137_v46  ;;  %687 = vperm.xlu0 %5677, %v5946_v3   ;;  %5589 = vset.pattern.permute.xlu1 %v8822_v7 }
  0xb0   : > { %715 = vperm.xlu1 %5589, %v6030_v22  }
  0xb2   : > { %v6142_v47 = vpop.permute.xlu0 %1207 }
  0xb3   : > { %9058 = vst [vmem:[#allocation21_spill] sm:$0xff] %v6142_v47  ;;  %707 = vperm.xlu0 %5677, %v5990_v14   ;;  %v6145_v48 = vpop.permute.xlu1 %945 }
  0xb4   : > { %9059 = vst [vmem:[#allocation22_spill] sm:$0xff] %v6145_v48  ;;  %5590 = vset.pattern.permute.xlu1 %v8820_v13 }
  0xb5   : > { %1211 = vperm.xlu1 %5590, %v5964_v8  }
  0xb6   : > { %v6149_v49 = vpop.permute.xlu0 %1219 }
  0xb7   : > { %9060 = vst [vmem:[#allocation23_spill] sm:$0xff] %v6149_v49  ;;  %719 = vperm.xlu0 %5677, %v5996_v15   ;;  %v9111_v49 = vmov 5  }
  0xb8   : > { %v6156_v52 = vpop.permute.xlu1 %1441 }
  0xb9   : > { %5591 = vset.pattern.permute.xlu1 %v8824_v20 }
  0xba   : > { %2203 = vperm.xlu1 %5591, %v6025_v21   ;;  %v6165_v54 = vpop.permute.xlu0 %1231 }
  0xbb   : > { %9061 = vst [vmem:[#allocation24_spill] sm:$0xff] %v6165_v54  ;;  %731 = vperm.xlu0 %5677, %v6001_v16   ;;  %v9102_v54 = vmov 6  }
  0xbd   : > { %v6172_v55 = vpop.permute.xlu1 %453 }
  0xbe   : > { %9062 = vst [vmem:[#allocation25_spill] sm:$0xff] %v6172_v55  ;;  %5592 = vset.pattern.permute.xlu1 %v8816_v2  ;;  %v6175_v56 = vpop.permute.xlu0 %1243 }
  0xbf   : > { %9063 = vst [vmem:[#allocation26_spill] sm:$0xff] %v6175_v56  ;;  %743 = vperm.xlu0 %5677, %v6006_v17   ;;  %965 = vperm.xlu1 %5592, %v6030_v22  }
  0xc2   : > { %v6179_v57 = vpop.permute.xlu1 %699  ;;  %v6181_v58 = vpop.permute.xlu0 %1255 }
  0xc3   : > { %9064 = vst [vmem:[#allocation27_spill] sm:$0xff] %v6179_v57  ;;  %9065 = vst [vmem:[#allocation28_spill] sm:$0xff] %v6181_v58  ;;  %755 = vperm.xlu0 %5677, %v6012_v18   ;;  %5593 = vset.pattern.permute.xlu1 %v8831_v1  ;;  %v9092_v58 = vmov 3  }
  0xc4   : > { %1957 = vperm.xlu1 %5593, %v5990_v14  }
  0xc7   : > { %767 = vperm.xlu0 %5677, %v6074_v28   ;;  %v6187_v59 = vpop.permute.xlu0 %438  ;;  %v6189_v60 = vpop.permute.xlu1 %1691 }
  0xc8   : > { %9066 = vst [vmem:[#allocation29_spill] sm:$0xff] %v6187_v59  ;;  %5594 = vset.pattern.permute.xlu1 %v8814_v6 }
  0xc9   : > { %478 = vperm.xlu1 %5594, %v5996_v15  }
  0xcb   : > { %779 = vperm.xlu0 %5677, %v6193_v61   ;;  %v6197_v62 = vpop.permute.xlu0 %448  ;;  %v561_v61 = vlaneseq }
  0xcc   : > { %9068 = vst [vmem:[#allocation31_spill] sm:$0xff] %v6197_v62  ;;  %v6199_v63 = vpop.permute.xlu1 %2187 }
  0xcd   : > { %5595 = vset.pattern.permute.xlu1 %v8820_v13 }
  0xce   : > { %1215 = vperm.xlu1 %5595, %v6030_v22  }
  0xcf   : > { %5680 = vset.pattern.permute.xlu0 %v8824_v20  ;;  %v6204_v0 = vpop.permute.xlu0 %458 }
  0xd0   : > { %9069 = vst [vmem:[#allocation32_spill] sm:$0xff] %v6204_v0  ;;  %2195 = vperm.xlu0 %5680, %v5980_v12  }
  0xd1   : > { %v6207_v3 = vpop.permute.xlu1 %1445 }
  0xd2   : > { %9070 = vst [vmem:[#allocation33_spill] sm:$0xff] %v6207_v3  ;;  %5596 = vset.pattern.permute.xlu1 %v8818_v19 }
  0xd3   : > { %1711 = vperm.xlu1 %5596, %v5964_v8   ;;  %v6211_v4 = vpop.permute.xlu0 %473 }
  0xd4   : > { %9071 = vst [vmem:[#allocation34_spill] sm:$0xff] %v6211_v4  ;;  %2207 = vperm.xlu0 %5680, %v5990_v14  }
  0xd6   : > { %v6214_v5 = vpop.permute.xlu1 %1941 }
  0xd7   : > { %5597 = vset.pattern.permute.xlu1 %v8816_v2  ;;  %v6217_v21 = vpop.permute.xlu0 %488 }
  0xd8   : > { %9072 = vst [vmem:[#allocation35_spill] sm:$0xff] %v6217_v21  ;;  %2219 = vperm.xlu0 %5680, %v5996_v15   ;;  %969 = vperm.xlu1 %5597, %v5996_v15   ;;  %v9105_v21 = vmov 0  }
  0xdb   : > { %v6221_v12 = vpop.permute.xlu1 %703  ;;  %v6223_v25 = vpop.permute.xlu0 %503 }
  0xdc   : > { %9073 = vst [vmem:[#allocation36_spill] sm:$0xff] %v6221_v12  ;;  %9074 = vst [vmem:[#allocation37_spill] sm:$0xff] %v6223_v25  ;;  %2231 = vperm.xlu0 %5680, %v6001_v16   ;;  %5598 = vset.pattern.permute.xlu1 %v8826_v11 }
  0xdd   : > { %1465 = vperm.xlu1 %5598, %v6030_v22  }
  0xdf   : > { %v6228_v14 = vpop.permute.xlu0 %518 }
  0xe0   : > { %9075 = vst [vmem:[#allocation38_spill] sm:$0xff] %v6228_v14  ;;  %2243 = vperm.xlu0 %5680, %v6006_v17   ;;  %v6231_v26 = vpop.permute.xlu1 %1199  ;;  %v9094_v14 = vmov 2  }
  0xe1   : > { %9076 = vst [vmem:[#allocation39_spill] sm:$0xff] %v6231_v26  ;;  %5599 = vset.pattern.permute.xlu1 %v8814_v6 }
  0xe2   : > { %483 = vperm.xlu1 %5599, %v5969_v9  }
  0xe3   : > { %v6235_v27 = vpop.permute.xlu0 %533 }
  0xe4   : > { %9077 = vst [vmem:[#allocation40_spill] sm:$0xff] %v6235_v27  ;;  %2255 = vperm.xlu0 %5680, %v6012_v18  }
  0xe5   : > { %v6238_v51 = vpop.permute.xlu1 %2191 }
  0xe6   : > { %5600 = vset.pattern.permute.xlu1 %v8822_v7 }
  0xe7   : > { %723 = vperm.xlu1 %5600, %v5969_v9   ;;  %v6242_v53 = vpop.permute.xlu0 %548 }
  0xe8   : > { %9078 = vst [vmem:[#allocation41_spill] sm:$0xff] %v6242_v53  ;;  %2267 = vperm.xlu0 %5680, %v6074_v28  }
  0xea   : > { %v6245_v50 = vpop.permute.xlu1 %953 }
  0xeb   : > { %9079 = vst [vmem:[#allocation42_spill] sm:$0xff] %v6245_v50  ;;  %5601 = vset.pattern.permute.xlu1 %v8818_v19 }
  0xec   : > { %5683 = vset.pattern.permute.xlu0 %v8831_v1  ;;  %v6249_v6 = vpop.permute.xlu0 %1687  ;;  %1715 = vperm.xlu1 %5601, %v6030_v22  }
  0xed   : > { %9080 = vst [vmem:[#allocation43_spill] sm:$0xff] %v6249_v6  ;;  %1961 = vperm.xlu0 %5683, %v5964_v8  }
  0xef   : > { %v6253_v18 = vpop.permute.xlu1 %1945 }
  0xf0   : > { %9081 = vst [vmem:[#allocation44_spill] sm:$0xff] %v6253_v18  ;;  %v6255_v2 = vpop.permute.xlu0 %1695  ;;  %5602 = vset.pattern.permute.xlu1 %v8824_v20  ;;  %v9116_v18 = vmov 4  }
  0xf1   : > { %9082 = vst [vmem:[#allocation45_spill] sm:$0xff] %v6255_v2  ;;  %2211 = vperm.xlu1 %5602, %v5964_v8   ;;  %1973 = vperm.xlu0 %5683, %v5969_v9  }
  0xf4   : > { %v6260_v28 = vpop.permute.xlu1 %463  ;;  %v6262_v19 = vpop.permute.xlu0 %1707 }
  0xf5   : > { %9083 = vst [vmem:[#allocation46_spill] sm:$0xff] %v6260_v28  ;;  %9084 = vst [vmem:[#allocation47_spill] sm:$0xff] %v6262_v19  ;;  %5603 = vset.pattern.permute.xlu1 %v8826_v11  ;;  %1985 = vperm.xlu0 %5683, %v5974_v10   ;;  %v9089_v11 = vmov 1  }
  0xf6   : > { %1469 = vperm.xlu1 %5603, %v5996_v15  }
  0xf8   : > { %v6267_v13 = vpop.permute.xlu0 %1719 }
  0xf9   : > { %9085 = vst [vmem:[#allocation48_spill] sm:$0xff] %v6267_v13  ;;  %v6269_v7 = vpop.permute.xlu1 %1203  ;;  %1997 = vperm.xlu0 %5683, %v6107_v37  }
  0xfa   : > { %9086 = vst [vmem:[#allocation49_spill] sm:$0xff] %v6269_v7  ;;  %5604 = vset.pattern.permute.xlu1 %v8831_v1 }
  0xfb   : > { %1965 = vperm.xlu1 %5604, %v6030_v22  }
  0xfc   : > { %v6274_v8 = vpop.permute.xlu0 %1731 }
  0xfd   : > { %9087 = vst [vmem:[#allocation50_spill] sm:$0xff] %v6274_v8  ;;  %2009 = vperm.xlu0 %5683, %v6115_v39  }
  0xfe   : > { %v6277_v20 = vpop.permute.xlu1 %1699 }
  0xff   : > { %9088 = vst [vmem:[#allocation51_spill] sm:$0xff] %v6277_v20  ;;  %5605 = vset.pattern.permute.xlu1 %v9089_v11 }
 0x100   : > { %727 = vperm.xlu1 %5605, %v6035_v23   ;;  %v6281_v53 = vpop.permute.xlu0 %1743 }
 0x101   : > { %9090 = vst [vmem:[#allocation52_spill] sm:$0xff] %v6281_v53  ;;  %2021 = vperm.xlu0 %5683, %v6125_v42  }
 0x103   : > { %v6284_v27 = vpop.permute.xlu1 %957 }
 0x104   : > { %9091 = vst [vmem:[#allocation53_spill] sm:$0xff] %v6284_v27  ;;  %5606 = vset.pattern.permute.xlu1 %v9092_v58  ;;  %v6287_v1 = vpop.permute.xlu0 %1755 }
 0x105   : > { %9093 = vst [vmem:[#allocation54_spill] sm:$0xff] %v6287_v1  ;;  %1223 = vperm.xlu1 %5606, %v5969_v9   ;;  %5686 = vset.pattern.permute.xlu0 %v9094_v14 }
 0x106   : > { %997 = vperm.xlu0 %5686, %v6107_v37  }
 0x108   : > { %v6292_v25 = vpop.permute.xlu1 %1453  ;;  %v6294_v56 = vpop.permute.xlu0 %1767 }
 0x109   : > { %9095 = vst [vmem:[#allocation55_spill] sm:$0xff] %v6292_v25  ;;  %9096 = vst [vmem:[#allocation56_spill] sm:$0xff] %v6294_v56  ;;  %5607 = vset.pattern.permute.xlu1 %v9097_v41 }
 0x10a   : > { %2215 = vperm.xlu1 %5607, %v6030_v22   ;;  %1009 = vperm.xlu0 %5686, %v6115_v39  }
 0x10d   : > { %v6299_v53 = vpop.permute.xlu0 %1449  ;;  %v6301_v8 = vpop.permute.xlu1 %468 }
 0x10e   : > { %9098 = vst [vmem:[#allocation57_spill] sm:$0xff] %v6299_v53  ;;  %9099 = vst [vmem:[#allocation58_spill] sm:$0xff] %v6301_v8  ;;  %5608 = vset.pattern.permute.xlu1 %v9094_v14  ;;  %1021 = vperm.xlu0 %5686, %v6125_v42  }
 0x10f   : > { %977 = vperm.xlu1 %5608, %v6035_v23  }
 0x111   : > { %v6306_v1 = vpop.permute.xlu0 %1461 }
 0x112   : > { %9100 = vst [vmem:[#allocation59_spill] sm:$0xff] %v6306_v1  ;;  %v6308_v56 = vpop.permute.xlu1 %711 }
 0x113   : > { %9101 = vst [vmem:[#allocation60_spill] sm:$0xff] %v6308_v56  ;;  %5609 = vset.pattern.permute.xlu1 %v9102_v54 }
 0x114   : > { %1969 = vperm.xlu1 %5609, %v5996_v15   ;;  %v562_v15 = vshrl.u32 %v561_v61, 7 }
 0x115   : > { %v6312_v22 = vpop.permute.xlu0 %1473 }
 0x116   : > { %9103 = vst [vmem:[#allocation61_spill] sm:$0xff] %v6312_v22  ;;  %v6338_v37 = vsub.s32 0, %v562_v15  ;;  %v6344_v4 = vsub.s32 1, %v562_v15  ;;  %v6346_v17 = vsub.s32 2, %v562_v15  ;;  %v6357_v8 = vsub.s32 3, %v562_v15 }
 0x117   : > { %v6314_v39 = vpop.permute.xlu1 %1703  ;;  %v6364_v19 = vsub.s32 4, %v562_v15  ;;  %v6383_v54 = vsub.s32 6, %v562_v15 }
 0x118   : > { %9104 = vst [vmem:[#allocation62_spill] sm:$0xff] %v6314_v39  ;;  %5610 = vset.pattern.permute.xlu1 %v9105_v21  ;;  %v6378_v39 = vsub.s32 5, %v562_v15 }
 0x119   : > { %493 = vperm.xlu1 %5610, %v6001_v16   ;;  %v6318_v42 = vpop.permute.xlu0 %1485 }
 0x11a   : > { %9106 = vst [vmem:[#allocation63_spill] sm:$0xff] %v6318_v42 }
 0x11c   : > { %v6320_v38 = vpop.permute.xlu1 %2199 }
 0x11d   : > { %9107 = vst [vmem:[#allocation64_spill] sm:$0xff] %v6320_v38  ;;  %5611 = vset.pattern.permute.xlu1 %v9092_v58  ;;  %v6323_v13 = vpop.permute.xlu0 %1497 }
 0x11e   : > { %9108 = vst [vmem:[#allocation65_spill] sm:$0xff] %v6323_v13  ;;  %1227 = vperm.xlu1 %5611, %v6035_v23   ;;  %v6342_v13 = vld [vmem:[%s6331_s27] sm:$0xff] }
 0x11f   : > { %v564_v1 = vrot.slane %v6342_v13, %v6338_v37  ;;  %v789_v56 = vrot.slane %v6342_v13, %v6344_v4  ;;  %v1289_v24 = vrot.slane %v6342_v13, %v6357_v8  ;;  %v2039_v27 = vrot.slane %v6342_v13, %v6383_v54 }
 0x121   : > { %v6333_v22 = vpop.permute.xlu1 %1457  ;;  %v6335_v42 = vpop.permute.xlu0 %1509  ;;  %v1386_v7 = vmul.f32 %v1289_v24, %v6131_v44 }
 0x122   : > { %9109 = vst [vmem:[#allocation66_spill] sm:$0xff] %v6333_v22  ;;  %9110 = vst [vmem:[#allocation67_spill] sm:$0xff] %v6335_v42  ;;  %5612 = vset.pattern.permute.xlu1 %v9111_v49  ;;  %v6355_v42 = vld [vmem:[%s6331_s27 + $0x8] sm:$0xff] }
 0x123   : > { %1723 = vperm.xlu1 %5612, %v5969_v9   ;;  %v793_v58 = vrot.slane %v6355_v42, %v6344_v4  ;;  %v1043_v38 = vrot.slane %v6355_v42, %v6346_v17  ;;  %v1543_v24 = vrot.slane %v6355_v42, %v6364_v19 }
 0x125   : > { %v6350_v61 = vpop.permute.xlu0 %1521  ;;  %v887_v20 = vmul.f32 %v793_v58, %v6097_v34  ;;  %v6397_v34 = vsub.s32 7, %v562_v15  ;;  %v6412_v15 = vld [vmem:[%s6331_s27 + $0x10] sm:$0xff] }
 0x126   : > { %9112 = vst [vmem:[#allocation68_spill] sm:$0xff] %v6350_v61  ;;  %v6352_v35 = vpop.permute.xlu1 %1953  ;;  %v1039_v61 = vrot.slane %v6342_v13, %v6346_v17 }
 0x127   : > { %9113 = vst [vmem:[#allocation69_spill] sm:$0xff] %v6352_v35  ;;  %5613 = vset.pattern.permute.xlu1 %v9094_v14  ;;  %v661_v35 = vmul.f32 %v564_v1, %v6187_v59  ;;  %v568_v14 = vrot.slane %v6355_v42, %v6338_v37  ;;  %v1539_v1 = vrot.slane %v6342_v13, %v6364_v19 }
 0x128   : > { %981 = vperm.xlu1 %5613, %v6001_v16   ;;  %v1293_v59 = vrot.slane %v6355_v42, %v6357_v8  ;;  %v1136_v47 = vmul.f32 %v1039_v61, %v6079_v29  ;;  %v1137_v61 = vmul.f32 %v1043_v38, %v6104_v36  ;;  %v572_v38 = vrot.slane %v6412_v15, %v6338_v37 }
 0x129   : > { %v662_v58 = vmul.f32 %v568_v14, %v6089_v32  ;;  %v1636_v14 = vmul.f32 %v1539_v1, %v6117_v40 }
 0x12a   : > { %v6374_v22 = vpop.permute.xlu0 %687  ;;  %v1387_v32 = vmul.f32 %v1293_v59, %v6135_v45  ;;  %v2136_v59 = vmul.f32 %v2039_v27, %v6081_v30  ;;  %v2293_v45 = vrot.slane %v6355_v42, %v6397_v34  ;;  %v663_v40 = vmul.f32 %v572_v38, %v6197_v62  ;;  %v6440_v27 = vld [vmem:[%s6331_s27 + $0x18] sm:$0xff] }
 0x12b   : > { %9114 = vst [vmem:[#allocation70_spill] sm:$0xff] %v6374_v22  ;;  %v886_v25 = vmul.f32 %v789_v56, %v6374_v22  ;;  %v6381_v31 = vpop.permute.xlu1 %715  ;;  %v1789_v56 = vrot.slane %v6342_v13, %v6378_v39  ;;  %v912_v29 = vadd.f32 %v887_v20, %v662_v58  ;;  %v2289_v20 = vrot.slane %v6342_v13, %v6397_v34 }
 0x12c   : > { %9115 = vst [vmem:[#allocation71_spill] sm:$0xff] %v6381_v31  ;;  %5614 = vset.pattern.permute.xlu1 %v9116_v18  ;;  %v2387_v38 = vmul.f32 %v2293_v45, %v6238_v51  ;;  %v1051_v45 = vrot.slane %v6440_v27, %v6346_v17 }
 0x12d   : > { %v911_v22 = vadd.f32 %v886_v25, %v661_v35  ;;  %1477 = vperm.xlu1 %5614, %v6035_v23   ;;  %v1793_v35 = vrot.slane %v6355_v42, %v6378_v39  ;;  %v1886_v50 = vmul.f32 %v1789_v56, %v6249_v6  ;;  %v1162_v1 = vadd.f32 %v1137_v61, %v912_v29 }
 0x12e   : > { %v6399_v31 = vpop.permute.xlu0 %707  ;;  %v797_v56 = vrot.slane %v6412_v15, %v6344_v4  ;;  %v2386_v61 = vmul.f32 %v2289_v20, %v6199_v63  ;;  %v1297_v20 = vrot.slane %v6412_v15, %v6357_v8 }
 0x12f   : > { %9117 = vst [vmem:[#allocation72_spill] sm:$0xff] %v6399_v31  ;;  %v1161_v44 = vadd.f32 %v1136_v47, %v911_v22  ;;  %v2043_v47 = vrot.slane %v6355_v42, %v6383_v54  ;;  %v1412_v58 = vadd.f32 %v1387_v32, %v1162_v1  ;;  %v1887_v13 = vmul.f32 %v1793_v35, %v6189_v60 }
 0x130   : > { %v6408_v25 = vpop.permute.xlu1 %1211  ;;  %v888_v42 = vmul.f32 %v797_v56, %v6127_v43  ;;  %v801_v35 = vrot.slane %v6440_v27, %v6344_v4  ;;  %v6467_v56 = vld [vmem:[%s6331_s27 + $0x28] sm:$0xff] }
 0x131   : > { %9118 = vst [vmem:[#allocation73_spill] sm:$0xff] %v6408_v25  ;;  %v1411_v16 = vadd.f32 %v1386_v7, %v1161_v44  ;;  %5615 = vset.pattern.permute.xlu1 %v9105_v21  ;;  %v1637_v7 = vmul.f32 %v1543_v24, %v6156_v52  ;;  %v2137_v32 = vmul.f32 %v2043_v47, %v6214_v5 }
 0x132   : > { %498 = vperm.xlu1 %5615, %v5974_v10   ;;  %v6424_v22 = vpop.permute.xlu0 %719  ;;  %v913_v47 = vadd.f32 %v888_v42, %v663_v40  ;;  %v889_v40 = vmul.f32 %v801_v35, %v6179_v57  ;;  %v809_v35 = vrot.slane %v6467_v56, %v6344_v4  ;;  %v1797_v57 = vrot.slane %v6412_v15, %v6378_v39 }
 0x133   : > { %9119 = vst [vmem:[#allocation74_spill] sm:$0xff] %v6424_v22  ;;  %v1661_v44 = vadd.f32 %v1636_v14, %v1411_v16  ;;  %v1662_v16 = vadd.f32 %v1637_v7, %v1412_v58  ;;  %v1559_v62 = vrot.slane %v6467_v56, %v6364_v19 }
 0x135   : > { %v6433_v36 = vpop.permute.xlu1 %2203  ;;  %v1911_v6 = vadd.f32 %v1886_v50, %v1661_v44  ;;  %v1047_v50 = vrot.slane %v6412_v15, %v6346_v17  ;;  %v1912_v14 = vadd.f32 %v1887_v13, %v1662_v16  ;;  %v9125_v13 = vmov 0.0  }
 0x136   : > { %9120 = vst [vmem:[#allocation75_spill] sm:$0xff] %v6433_v36  ;;  %5616 = vset.pattern.permute.xlu1 %v9089_v11  ;;  %v6437_v29 = vpop.permute.xlu0 %731  ;;  %v1547_v16 = vrot.slane %v6412_v15, %v6364_v19 }
 0x137   : > { %9121 = vst [vmem:[#allocation76_spill] sm:$0xff] %v6437_v29  ;;  %735 = vperm.xlu1 %5616, %v5974_v10   ;;  %v2161_v24 = vadd.f32 %v2136_v59, %v1911_v6  ;;  %v576_v6 = vrot.slane %v6440_v27, %v6338_v37  ;;  %v2162_v44 = vadd.f32 %v2137_v32, %v1912_v14  ;;  %v6483_v14 = vld [vmem:[%s6331_s27 + $0x20] sm:$0xff] }
 0x138   : > { %v1138_v58 = vmul.f32 %v1047_v50, %v6145_v48  ;;  %v584_v48 = vrot.slane %v6467_v56, %v6338_v37 }
 0x139   : > { %v6451_v1 = vadd.f32 %v2386_v61, %v2161_v24  ;;  %v1301_v61 = vrot.slane %v6440_v27, %v6357_v8  ;;  %v6478_v32 = vadd.f32 %v2387_v38, %v2162_v44  ;;  %v1388_v24 = vmul.f32 %v1297_v20, %v6137_v46 }
 0x13a   : > { %v6457_v59 = vpop.permute.xlu1 %965  ;;  %v6459_v7 = vpop.permute.xlu0 %743  ;;  %v664_v42 = vmul.f32 %v576_v6, %v6172_v55  ;;  %v1163_v50 = vadd.f32 %v1138_v58, %v913_v47  ;;  %v1139_v20 = vmul.f32 %v1051_v45, %v6094_v33  ;;  %v1551_v47 = vrot.slane %v6440_v27, %v6364_v19 }
 0x13b   : > { %9122 = vst [vmem:[#allocation77_spill] sm:$0xff] %v6451_v1  ;;  %9123 = vst [vmem:[#allocation78_spill] sm:$0xff] %v6457_v59  ;;  %5617 = vset.pattern.permute.xlu1 %v9111_v49  ;;  %5371 = vmatmul.mubr.msk.f32.vlgmr.msra.gmra.mxu0 %vm2445_vm1, %v6451_v1  ;;  %v580_v44 = vrot.slane %v6483_v14, %v6338_v37  ;;  %v805_v58 = vrot.slane %v6483_v14, %v6344_v4 }
 0x13c   : > { %9124 = vst [vmem:[#allocation79_spill] sm:$0xff] %v6459_v7  ;;  %1727 = vperm.xlu1 %5617, %v6035_v23   ;;  %5373 = vmatprep.mubr.msk.f32.mxu0 %vm5863_vm0, %v9125_v13  ;;  %9126 = vst [vmem:[#allocation80_spill] sm:$0xff] %v6478_v32  ;;  %v914_v6 = vadd.f32 %v889_v40, %v664_v42  ;;  %v1638_v45 = vmul.f32 %v1547_v16, %v6207_v3 }
 0x13d   : > { %v1389_v40 = vmul.f32 %v1301_v61, %v6231_v26  ;;  %v891_v42 = vmul.f32 %v809_v35, %v6399_v31  ;;  %v1309_v33 = vrot.slane %v6467_v56, %v6357_v8  ;;  %v1055_v55 = vrot.slane %v6483_v14, %v6346_v17  ;;  %v9134_v26 = vld [vmem:[#allocation53_spill] sm:$0xff] }
 0x13e   : > { %v6487_v1 = vpop.permute.xlu0 %755  ;;  %v1059_v46 = vrot.slane %v6467_v56, %v6346_v17  ;;  %v1164_v43 = vadd.f32 %v1139_v20, %v914_v6  ;;  %v666_v16 = vmul.f32 %v584_v48, %v6260_v28  ;;  %v1639_v61 = vmul.f32 %v1551_v47, %v6299_v53  ;;  %v9131_v47 = vld [vmem:[#allocation3_spill] sm:$0xff] }
 0x13f   : > { %9127 = vst [vmem:[#allocation81_spill] sm:$0xff] %v6487_v1  ;;  %5374 = vmatmul.mubr.msk.f32.gmra.mxu0 %vm2445_vm1, %v6478_v32  ;;  %v6495_v38 = vpop.permute.xlu1 %1957  ;;  %v1413_v32 = vadd.f32 %v1388_v24, %v1163_v50  ;;  %v665_v50 = vmul.f32 %v580_v44, %v6204_v0  ;;  %v890_v35 = vmul.f32 %v805_v58, %v6221_v12  ;;  %v9133_v58 = vld [vmem:[#allocation42_spill] sm:$0xff] }
 0x140   : > { %9128 = vst [vmem:[#allocation82_spill] sm:$0xff] %v6495_v38  ;;  %5618 = vset.pattern.permute.xlu1 %v9097_v41  ;;  %5376 = vmatprep.mubr.msk.f32.mxu0 %vm5863_vm0, %v9125_v13  ;;  %v1305_v31 = vrot.slane %v6483_v14, %v6357_v8  ;;  %v1801_v48 = vrot.slane %v6440_v27, %v6378_v39 }
 0x141   : > { %2223 = vperm.xlu1 %5618, %v5969_v9   ;;  %v1888_v9 = vmul.f32 %v1797_v57, %v6255_v2  ;;  %v1663_v20 = vadd.f32 %v1638_v45, %v1413_v32  ;;  %v1414_v57 = vadd.f32 %v1389_v40, %v1164_v43  ;;  %v916_v6 = vadd.f32 %v891_v42, %v666_v16  ;;  %v9135_v42 = vld [vmem:[#allocation49_spill] sm:$0xff] }
 0x142   : > { %v6511_v1 = vpop.permute.xlu0 %767  ;;  %v2051_v44 = vrot.slane %v6440_v27, %v6383_v54  ;;  %v1140_v12 = vmul.f32 %v1055_v55, %v9133_v58  ;;  %v1555_v0 = vrot.slane %v6483_v14, %v6364_v19  ;;  %v1141_v32 = vmul.f32 %v1059_v46, %v9134_v26  ;;  %v9137_v58 = vld [vmem:[#allocation21_spill] sm:$0xff]  ;;  %v9139_v46 = vld [vmem:[#allocation51_spill] sm:$0xff] }
 0x143   : > { %9129 = vst [vmem:[#allocation83_spill] sm:$0xff] %v6511_v1  ;;  %v2047_v1 = vrot.slane %v6412_v15, %v6383_v54  ;;  %v1913_v53 = vadd.f32 %v1888_v9, %v1663_v20  ;;  %v1664_v43 = vadd.f32 %v1639_v61, %v1414_v57  ;;  %v2297_v45 = vrot.slane %v6412_v15, %v6397_v34  ;;  %v9138_v9 = vld [vmem:[#allocation44_spill] sm:$0xff]  ;;  %v9141_v15 = vld [vmem:[#allocation7_spill] sm:$0xff] }
 0x144   : > { %v6522_v24 = vpop.permute.xlu1 %478  ;;  %v915_v40 = vadd.f32 %v890_v35, %v665_v50  ;;  %v1390_v16 = vmul.f32 %v1305_v31, %v9135_v42  ;;  %v2301_v2 = vrot.slane %v6440_v27, %v6397_v34  ;;  %v1391_v3 = vmul.f32 %v1309_v33, %v9137_v58  ;;  %v9142_v35 = vld [vmem:[#allocation55_spill] sm:$0xff]  ;;  %v9145_v58 = vld [vmem:[#allocation64_spill] sm:$0xff] }
 0x145   : > { %9130 = vst [vmem:[#allocation84_spill] sm:$0xff] %v6522_v24  ;;  %5620 = vset.pattern.permute.xlu1 %v9116_v18  ;;  %v2138_v20 = vmul.f32 %v2047_v1, %v9138_v9  ;;  %v1889_v61 = vmul.f32 %v1801_v48, %v9139_v46  ;;  %v1166_v57 = vadd.f32 %v1141_v32, %v916_v6  ;;  %v9140_v26 = vmov 6   ;;  %v9144_v32 = vld [vmem:[#allocation62_spill] sm:$0xff] }
 0x146   : > { %1481 = vperm.xlu1 %5620, %v9131_v47   ;;  %v6534_v28 = vpop.permute.xlu0 %779  ;;  %v2139_v50 = vmul.f32 %v2051_v44, %v9141_v15  ;;  %v1165_v31 = vadd.f32 %v1140_v12, %v915_v40  ;;  %v1640_v42 = vmul.f32 %v1555_v0, %v9142_v35  ;;  %v2055_v1 = vrot.slane %v6483_v14, %v6383_v54 }
 0x147   : > { %9132 = vst [vmem:[#allocation3_spill] sm:$0xff] %v6534_v28  ;;  %v1805_v28 = vrot.slane %v6483_v14, %v6378_v39  ;;  %v1914_v33 = vadd.f32 %v1889_v61, %v1664_v43  ;;  %v2163_v48 = vadd.f32 %v2138_v20, %v1913_v53  ;;  %v1809_v44 = vrot.slane %v6467_v56, %v6378_v39  ;;  %v9149_v20 = vld [vmem:[#allocation66_spill] sm:$0xff] }
 0x148   : > { %v1415_v12 = vadd.f32 %v1390_v16, %v1165_v31  ;;  %v2305_v0 = vrot.slane %v6483_v14, %v6397_v34  ;;  %v2389_v35 = vmul.f32 %v2301_v2, %v9145_v58  ;;  %v1416_v15 = vadd.f32 %v1391_v3, %v1166_v57  ;;  %v9150_v31 = vld [vmem:[#allocation69_spill] sm:$0xff]  ;;  %v9152_v2 = vld [vmem:[#allocation47_spill] sm:$0xff] }
 0x149   : > { %v6549_v55 = vpop.permute.xlu1 %1215  ;;  %v1890_v40 = vmul.f32 %v1805_v28, %v9144_v32  ;;  %v2059_v53 = vrot.slane %v6467_v56, %v6383_v54  ;;  %v2164_v16 = vadd.f32 %v2139_v50, %v1914_v33  ;;  %v1641_v14 = vmul.f32 %v1559_v62, %v9149_v20  ;;  %v9151_v32 = vld [vmem:[#allocation5_spill] sm:$0xff] }
 0x14a   : > { %9136 = vst [vmem:[#allocation85_spill] sm:$0xff] %v6549_v55  ;;  %5621 = vset.pattern.permute.xlu1 %v9140_v26  ;;  %v1665_v61 = vadd.f32 %v1640_v42, %v1415_v12  ;;  %v2140_v28 = vmul.f32 %v2055_v1, %v9150_v31  ;;  %v1891_v3 = vmul.f32 %v1809_v44, %v9152_v2  ;;  %v9156_v44 = vmov 3  }
 0x14b   : > { %v6559_v27 = vpop.permute.xlu0 %2195  ;;  %1977 = vperm.xlu1 %5621, %v6035_v23   ;;  %v2309_v42 = vrot.slane %v6467_v56, %v6397_v34  ;;  %v6590_v50 = vadd.f32 %v2389_v35, %v2164_v16  ;;  %v2390_v62 = vmul.f32 %v2305_v0, %v6433_v36  ;;  %v1666_v33 = vadd.f32 %v1641_v14, %v1416_v15  ;;  %v417_v56 = vld [vmem:[%s6331_s27 + $0x30] sm:$0xff] }
 0x14c   : > { %9143 = vst [vmem:[#allocation86_spill] sm:$0xff] %v6559_v27  ;;  %v2388_v6 = vmul.f32 %v2297_v45, %v6559_v27  ;;  %v1915_v57 = vadd.f32 %v1890_v40, %v1665_v61  ;;  %v2141_v12 = vmul.f32 %v2059_v53, %v6495_v38  ;;  %v813_v40 = vrot.slane %v417_v56, %v6344_v4 }
 0x14d   : > { %9153 = vst [vmem:[#allocation5_spill] sm:$0xff] %v6590_v50  ;;  %v1916_v15 = vadd.f32 %v1891_v3, %v1666_v33  ;;  %v9161_v3 = vld [vmem:[#allocation60_spill] sm:$0xff] }
 0x14e   : > { %v6571_v46 = vadd.f32 %v2388_v6, %v2163_v48  ;;  %v6573_v43 = vpop.permute.xlu1 %1711  ;;  %v2165_v6 = vadd.f32 %v2140_v28, %v1915_v57  ;;  %v1063_v28 = vrot.slane %v417_v56, %v6346_v17 }
 0x14f   : > { %9147 = vst [vmem:[#allocation88_spill] sm:$0xff] %v6573_v43  ;;  %v6577_v45 = vpop.permute.xlu0 %2207  ;;  %5622 = vset.pattern.permute.xlu1 %v9089_v11  ;;  %v2166_v53 = vadd.f32 %v2141_v12, %v1916_v15  ;;  %v9165_v15 = vmov 2  }
 0x150   : > { %9146 = vst [vmem:[#allocation87_spill] sm:$0xff] %v6571_v46  ;;  %9148 = vst [vmem:[#allocation89_spill] sm:$0xff] %v6577_v45  ;;  %739 = vperm.xlu1 %5622, %v9151_v32   ;;  %5377 = vmatmul.mubr.msk.f32.gmra.mxu0 %vm2445_vm1, %v6571_v46  ;;  %v6605_v35 = vadd.f32 %v2390_v62, %v2165_v6  ;;  %v2391_v0 = vmul.f32 %v2309_v42, %v6577_v45  ;;  %v9163_v62 = vld [vmem:[#allocation58_spill] sm:$0xff] }
 0x151   : > { %5379 = vmatprep.mubr.msk.f32.mxu0 %vm5863_vm0, %v9125_v13  ;;  %v892_v42 = vmul.f32 %v813_v40, %v9161_v3  ;;  %v1313_v6 = vrot.slane %v417_v56, %v6357_v8  ;;  %v1813_v46 = vrot.slane %v417_v56, %v6378_v39 }
 0x152   : > { %9157 = vst [vmem:[#allocation92_spill] sm:$0xff] %v6605_v35  ;;  %v6619_v14 = vadd.f32 %v2391_v0, %v2166_v53 }
 0x153   : > { %v6593_v1 = vpop.permute.xlu1 %969  ;;  %v6595_v48 = vpop.permute.xlu0 %2219 }
 0x154   : > { %9154 = vst [vmem:[#allocation90_spill] sm:$0xff] %v6593_v1  ;;  %9155 = vst [vmem:[#allocation91_spill] sm:$0xff] %v6595_v48  ;;  %5623 = vset.pattern.permute.xlu1 %v9156_v44  ;;  %5380 = vmatmul.mubr.msk.f32.gmra.mxu0 %vm2445_vm1, %v6590_v50 }
 0x155   : > { %1235 = vperm.xlu1 %5623, %v5974_v10   ;;  %5382 = vmatprep.mubr.msk.f32.mxu0 %vm5863_vm0, %v9125_v13  ;;  %v588_v10 = vrot.slane %v417_v56, %v6338_v37  ;;  %9160 = vst [vmem:[#allocation95_spill] sm:$0xff] %v6619_v14 }
 0x157   : > { %v6609_v61 = vpop.permute.xlu0 %2231  ;;  %v667_v33 = vmul.f32 %v588_v10, %v9163_v62  ;;  %v1392_v10 = vmul.f32 %v1313_v6, %v6408_v25 }
 0x158   : > { %9158 = vst [vmem:[#allocation93_spill] sm:$0xff] %v6609_v61  ;;  %5383 = vmatmul.mubr.msk.f32.gmra.mxu0 %vm2445_vm1, %v6605_v35  ;;  %v6613_v16 = vpop.permute.xlu1 %1465 }
 0x159   : > { %9159 = vst [vmem:[#allocation94_spill] sm:$0xff] %v6613_v16  ;;  %5624 = vset.pattern.permute.xlu1 %v9097_v41  ;;  %5385 = vmatprep.mubr.msk.f32.mxu0 %vm5863_vm0, %v9125_v13  ;;  %v917_v53 = vadd.f32 %v892_v42, %v667_v33 }
 0x15a   : > { %2227 = vperm.xlu1 %5624, %v6035_v23   ;;  %v9166_v23 = vld [vmem:[#allocation11_spill] sm:$0xff] }
 0x15b   : > { %v6624_v57 = vpop.permute.xlu0 %2243  ;;  %v1142_v0 = vmul.f32 %v1063_v28, %v9166_v23  ;;  %v9170_v28 = vld [vmem:[#allocation59_spill] sm:$0xff]  ;;  %v1892_v23 = vmul.f32 %v1813_v46, %v6573_v43 }
 0x15c   : > { %9162 = vst [vmem:[#allocation96_spill] sm:$0xff] %v6624_v57  ;;  %5386 = vmatmul.mubr.msk.f32.gmra.mxu0 %vm2445_vm1, %v6619_v14  ;;  %v1563_v14 = vrot.slane %v417_v56, %v6364_v19 }
 0x15d   : > { %v6630_v12 = vpop.permute.xlu1 %483  ;;  %5388 = vmatprep.mubr.msk.f32.mxu0 %vm5863_vm0, %v9125_v13  ;;  %v1167_v50 = vadd.f32 %v1142_v0, %v917_v53 }
 0x15e   : > { %9164 = vst [vmem:[#allocation97_spill] sm:$0xff] %v6630_v12  ;;  %5625 = vset.pattern.permute.xlu1 %v9165_v15  ;;  %v1642_v42 = vmul.f32 %v1563_v14, %v9170_v28 }
 0x15f   : > { %989 = vperm.xlu1 %5625, %v9151_v32   ;;  %v6637_v40 = vpop.permute.xlu0 %2255  ;;  %v1417_v33 = vadd.f32 %v1392_v10, %v1167_v50 }
 0x160   : > { %9167 = vst [vmem:[#allocation98_spill] sm:$0xff] %v6637_v40  ;;  %v2063_v40 = vrot.slane %v417_v56, %v6383_v54 }
 0x161   : > { %v1667_v0 = vadd.f32 %v1642_v42, %v1417_v33  ;;  %v418_v42 = vld [vmem:[%s6331_s27 + $0x38] sm:$0xff] }
 0x162   : > { %v6641_v35 = vpop.permute.xlu1 %723  ;;  %v817_v33 = vrot.slane %v418_v42, %v6344_v4  ;;  %v1567_v28 = vrot.slane %v418_v42, %v6364_v19 }
 0x163   : > { %9168 = vst [vmem:[#allocation99_spill] sm:$0xff] %v6641_v35  ;;  %5626 = vset.pattern.permute.xlu1 %v9140_v26  ;;  %v6645_v3 = vpop.permute.xlu0 %2267  ;;  %v1917_v50 = vadd.f32 %v1892_v23, %v1667_v0  ;;  %v592_v23 = vrot.slane %v418_v42, %v6338_v37  ;;  %v1067_v0 = vrot.slane %v418_v42, %v6346_v17 }
 0x164   : > { %9169 = vst [vmem:[#allocation100_spill] sm:$0xff] %v6645_v3  ;;  %1981 = vperm.xlu1 %5626, %v9131_v47   ;;  %v9173_v3 = vld [vmem:[#allocation4_spill] sm:$0xff]  ;;  %v2313_v47 = vrot.slane %v417_v56, %v6397_v34  ;;  %v6675_v56 = vld [vmem:[%s5943_s20 + $0x60] sm:$0xff] }
 0x167   : > { %v6651_v6 = vpop.permute.xlu1 %1715 }
 0x168   : > { %9171 = vst [vmem:[#allocation101_spill] sm:$0xff] %v6651_v6  ;;  %v6653_v25 = vpop.permute.xlu0 %1961  ;;  %5627 = vset.pattern.permute.xlu1 %v9105_v21 }
 0x169   : > { %9172 = vst [vmem:[#allocation102_spill] sm:$0xff] %v6653_v25  ;;  %v2142_v53 = vmul.f32 %v2063_v40, %v6653_v25  ;;  %508 = vperm.xlu1 %5627, %v9173_v3   ;;  %v1143_v25 = vmul.f32 %v1067_v0, %v6457_v59  ;;  %v1643_v0 = vmul.f32 %v1567_v28, %v6613_v16  ;;  %v9182_v28 = vld [vmem:[#allocation13_spill] sm:$0xff] }
 0x16a   : > { %v2067_v59 = vrot.slane %v418_v42, %v6383_v54 }
 0x16b   : > { %v2167_v10 = vadd.f32 %v2142_v53, %v1917_v50  ;;  %v9178_v50 = vld [vmem:[#allocation34_spill] sm:$0xff] }
 0x16c   : > { %v6659_v14 = vpop.permute.xlu1 %2211 }
 0x16d   : > { %9174 = vst [vmem:[#allocation4_spill] sm:$0xff] %v6659_v14  ;;  %v2392_v46 = vmul.f32 %v2313_v47, %v6659_v14  ;;  %5628 = vset.pattern.permute.xlu1 %v9156_v44  ;;  %v419_v47 = vld [vmem:[%s6331_s27 + $0x40] sm:$0xff]  ;;  %v1317_v14 = vrot.slane %v418_v42, %v6357_v8 }
 0x16e   : > { %1239 = vperm.xlu1 %5628, %v9151_v32   ;;  %v821_v62 = vrot.slane %v419_v47, %v6344_v4  ;;  %v596_v2 = vrot.slane %v419_v47, %v6338_v37 }
 0x16f   : > { %v6664_v43 = vadd.f32 %v2392_v46, %v2167_v10  ;;  %v668_v10 = vmul.f32 %v592_v23, %v9178_v50  ;;  %v9179_v46 = vld [vmem:[#allocation71_spill] sm:$0xff]  ;;  %v1393_v36 = vmul.f32 %v1317_v14, %v6549_v55  ;;  %v1817_v23 = vrot.slane %v418_v42, %v6378_v39 }
 0x170   : > { %v1321_v50 = vrot.slane %v419_v47, %v6357_v8 }
 0x171   : > { %9175 = vst [vmem:[#allocation103_spill] sm:$0xff] %v6664_v43  ;;  %5389 = vmatmul.mubr.msk.f32.gmra.mxu0 %vm2445_vm1, %v6664_v43  ;;  %v6669_v40 = vpop.permute.xlu1 %1469  ;;  %v893_v43 = vmul.f32 %v817_v33, %v9179_v46  ;;  %v1071_v33 = vrot.slane %v419_v47, %v6346_v17  ;;  %v894_v46 = vmul.f32 %v821_v62, %v6424_v22 }
 0x172   : > { %9176 = vst [vmem:[#allocation104_spill] sm:$0xff] %v6669_v40  ;;  %5629 = vset.pattern.permute.xlu1 %v9111_v49  ;;  %5391 = vmatprep.mubr.msk.f32.mxu0 %vm5863_vm0, %v9125_v13  ;;  %v1893_v14 = vmul.f32 %v1817_v23, %v6651_v6  ;;  %v2317_v62 = vrot.slane %v418_v42, %v6397_v34 }
 0x173   : > { %1735 = vperm.xlu1 %5629, %v6675_v56   ;;  %v918_v38 = vadd.f32 %v893_v43, %v668_v10  ;;  %v669_v43 = vmul.f32 %v596_v2, %v6522_v24 }
 0x175   : > { %v919_v22 = vadd.f32 %v894_v46, %v669_v43 }
 0x176   : > { %v6681_v53 = vpop.permute.xlu1 %1965 }
 0x177   : > { %9177 = vst [vmem:[#allocation105_spill] sm:$0xff] %v6681_v53  ;;  %5630 = vset.pattern.permute.xlu1 %v9165_v15 }
 0x178   : > { %993 = vperm.xlu1 %5630, %v9173_v3   ;;  %v1168_v3 = vadd.f32 %v1143_v25, %v918_v38  ;;  %v1144_v25 = vmul.f32 %v1071_v33, %v6593_v1 }
 0x17a   : > { %v1418_v10 = vadd.f32 %v1393_v36, %v1168_v3  ;;  %v1571_v36 = vrot.slane %v419_v47, %v6364_v19  ;;  %v9184_v3 = vld [vmem:[#allocation23_spill] sm:$0xff]  ;;  %v1169_v6 = vadd.f32 %v1144_v25, %v919_v22  ;;  %v9187_v22 = vld [vmem:[#allocation48_spill] sm:$0xff] }
 0x17b   : > { %v6692_v45 = vpop.permute.xlu1 %727  ;;  %v1394_v24 = vmul.f32 %v1321_v50, %v9184_v3 }
 0x17c   : > { %9180 = vst [vmem:[#allocation106_spill] sm:$0xff] %v6692_v45  ;;  %5631 = vset.pattern.permute.xlu1 %v9116_v18  ;;  %v1668_v38 = vadd.f32 %v1643_v0, %v1418_v10  ;;  %v1644_v42 = vmul.f32 %v1571_v36, %v6669_v40  ;;  %v2321_v10 = vrot.slane %v419_v47, %v6397_v34  ;;  %v410_v36 = vld [vmem:[%s5943_s20 + $0xc0] sm:$0xff] }
 0x17d   : > { %1489 = vperm.xlu1 %5631, %v9151_v32   ;;  %v2143_v32 = vmul.f32 %v2067_v59, %v6681_v53  ;;  %v1821_v59 = vrot.slane %v419_v47, %v6378_v39  ;;  %v1419_v0 = vadd.f32 %v1394_v24, %v1169_v6  ;;  %v2071_v24 = vrot.slane %v419_v47, %v6383_v54  ;;  %v5805_v47 = vld [vmem:[%s5943_s20 + $0x70] sm:$0xff] }
 0x17e   : > { %v1918_v2 = vadd.f32 %v1893_v14, %v1668_v38  ;;  %v2394_v25 = vmul.f32 %v2321_v10, %v6595_v48  ;;  %1033 = vperm.xlu0 %5686, %v410_v36   ;;  %v4038_v10 = vld [vmem:[%s8805_s4 + $0x10] sm:$0xff] }
 0x17f   : > { %v1894_v43 = vmul.f32 %v1821_v59, %v9187_v22  ;;  %v1669_v14 = vadd.f32 %v1644_v42, %v1419_v0  ;;  %v4039_v42 = vld [vmem:[%s8805_s4 + $0x18] sm:$0xff] }
 0x180   : > { %v6705_v55 = vpop.permute.xlu1 %1223  ;;  %v2168_v16 = vadd.f32 %v2143_v32, %v1918_v2  ;;  %v9193_v0 = vld [vmem:[#allocation30_spill] sm:$0xff]  ;;  %5446 = vmatpush3.msra.mxu1 %v4039_v42 }
 0x181   : > { %9181 = vst [vmem:[#allocation107_spill] sm:$0xff] %v6705_v55  ;;  %5632 = vset.pattern.permute.xlu1 %v9105_v21  ;;  %v1919_v38 = vadd.f32 %v1894_v43, %v1669_v14  ;;  %v6768_v43 = vld [vmem:[%s5943_s20 + $0x80] sm:$0xff]  ;;  %5447 = vmatprep.subr.mxu1 %v9125_v13  ;;  %v4037_v14 = vld [vmem:[%s8805_s4 + $0x8] sm:$0xff] }
 0x182   : > { %513 = vperm.xlu1 %5632, %v9182_v28   ;;  %5691 = vset.pattern.permute.xlu0 %v9156_v44 }
 0x183   : > { %5448 = vmatpush3.msra.mxu1 %v4038_v10 }
 0x184   : > { %5449 = vmatprep.subr.mxu1 %v9125_v13 }
 0x185   : > { %v6714_v23 = vpop.permute.xlu1 %2215  ;;  %5450 = vmatpush3.msra.mxu1 %v4037_v14 }
 0x186   : > { %9183 = vst [vmem:[#allocation13_spill] sm:$0xff] %v6714_v23  ;;  %v2393_v33 = vmul.f32 %v2317_v62, %v6714_v23  ;;  %5633 = vset.pattern.permute.xlu1 %v9089_v11  ;;  %5451 = vmatprep.subr.mxu1 %v9125_v13 }
 0x187   : > { %747 = vperm.xlu1 %5633, %v9182_v28  }
 0x188   : > { %v6722_v46 = vadd.f32 %v2393_v33, %v2168_v16  ;;  %v5804_v16 = vld [vmem:[%s5943_s20 + $0x68] sm:$0xff] }
 0x18a   : > { %9185 = vst [vmem:[#allocation108_spill] sm:$0xff] %v6722_v46  ;;  %5392 = vmatmul.mubr.msk.f32.gmra.mxu0 %vm2445_vm1, %v6722_v46  ;;  %v6726_v50 = vpop.permute.xlu1 %977 }
 0x18b   : > { %9186 = vst [vmem:[#allocation109_spill] sm:$0xff] %v6726_v50  ;;  %5634 = vset.pattern.permute.xlu1 %v9111_v49  ;;  %5394 = vmatprep.mubr.msk.f32.mxu0 %vm5863_vm0, %v9125_v13 }
 0x18c   : > { %1739 = vperm.xlu1 %5634, %v5804_v16  }
 0x18f   : > { %v6735_v6 = vpop.permute.xlu1 %1969 }
 0x190   : > { %9188 = vst [vmem:[#allocation110_spill] sm:$0xff] %v6735_v6  ;;  %v2144_v32 = vmul.f32 %v2071_v24, %v6735_v6  ;;  %5635 = vset.pattern.permute.xlu1 %v9097_v41 }
 0x191   : > { %2235 = vperm.xlu1 %5635, %v6675_v56   ;;  %v6757_v56 = vld [vmem:[%s5943_s20 + $0xa0] sm:$0xff] }
 0x192   : > { %v2169_v28 = vadd.f32 %v2144_v32, %v1919_v38  ;;  %1267 = vperm.xlu0 %5691, %v6757_v56   ;;  %v4036_v38 = vld [vmem:[%s8805_s4] sm:$0xff] }
 0x193   : > { %5452 = vmatpush3.msra.mxu1 %v4036_v38  ;;  %v9196_v38 = vld [vmem:[#allocation14_spill] sm:$0xff] }
 0x194   : > { %v6741_v62 = vpop.permute.xlu1 %493  ;;  %v6743_v2 = vadd.f32 %v2394_v25, %v2169_v28  ;;  %v420_v25 = vld [vmem:[%s6331_s27 + $0x48] sm:$0xff]  ;;  %v6789_v28 = vld [vmem:[%s5943_s20 + $0x78] sm:$0xff] }
 0x195   : > { %9189 = vst [vmem:[#allocation111_spill] sm:$0xff] %v6741_v62  ;;  %5636 = vset.pattern.permute.xlu1 %v9116_v18  ;;  %v825_v32 = vrot.slane %v420_v25, %v6344_v4  ;;  %v600_v42 = vrot.slane %v420_v25, %v6338_v37  ;;  %v1075_v14 = vrot.slane %v420_v25, %v6346_v17 }
 0x196   : > { %9190 = vst [vmem:[#allocation112_spill] sm:$0xff] %v6743_v2  ;;  %1493 = vperm.xlu1 %5636, %v5805_v47   ;;  %5395 = vmatmul.mubr.msk.f32.gmra.mxu0 %vm2445_vm1, %v6743_v2  ;;  %v1325_v48 = vrot.slane %v420_v25, %v6357_v8 }
 0x197   : > { %5397 = vmatprep.mubr.msk.f32.mxu0 %vm5863_vm0, %v9125_v13  ;;  %1279 = vperm.xlu0 %5691, %v9193_v0   ;;  %v895_v2 = vmul.f32 %v825_v32, %v6641_v35  ;;  %v670_v46 = vmul.f32 %v600_v42, %v6630_v12  ;;  %v1145_v6 = vmul.f32 %v1075_v14, %v9196_v38  ;;  %v9199_v14 = vld [vmem:[#allocation61_spill] sm:$0xff] }
 0x198   : > { %v1575_v32 = vrot.slane %v420_v25, %v6364_v19  ;;  %v1395_v35 = vmul.f32 %v1325_v48, %v6705_v55  ;;  %v1825_v42 = vrot.slane %v420_v25, %v6378_v39  ;;  %v2075_v48 = vrot.slane %v420_v25, %v6383_v54  ;;  %v6818_v55 = vpop.permute.xlu0 %1973 }
 0x199   : > { %v6752_v33 = vpop.permute.xlu1 %1227  ;;  %9200 = vst [vmem:[#allocation118_spill] sm:$0xff] %v6818_v55 }
 0x19a   : > { %9191 = vst [vmem:[#allocation113_spill] sm:$0xff] %v6752_v33  ;;  %5637 = vset.pattern.permute.xlu1 %v9140_v26 }
 0x19b   : > { %1989 = vperm.xlu1 %5637, %v5804_v16   ;;  %1283 = vperm.xlu0 %5691, %v410_v36  }
 0x19e   : > { %v6760_v59 = vpop.permute.xlu1 %1723 }
 0x19f   : > { %9192 = vst [vmem:[#allocation114_spill] sm:$0xff] %v6760_v59  ;;  %5638 = vset.pattern.permute.xlu1 %v9089_v11  ;;  %5696 = vset.pattern.permute.xlu0 %v9116_v18  ;;  %v1895_v38 = vmul.f32 %v1825_v42, %v6760_v59 }
 0x1a0   : > { %751 = vperm.xlu1 %5638, %v6768_v43   ;;  %1533 = vperm.xlu0 %5696, %v410_v36   ;;  %v920_v36 = vadd.f32 %v895_v2, %v670_v46  ;;  %v1645_v46 = vmul.f32 %v1575_v32, %v9199_v14  ;;  %v6825_v32 = vld [vmem:[%s5943_s20 + $0x88] sm:$0xff] }
 0x1a3   : > { %v6779_v24 = vpop.permute.xlu1 %981 }
 0x1a4   : > { %9194 = vst [vmem:[#allocation30_spill] sm:$0xff] %v6779_v24  ;;  %5639 = vset.pattern.permute.xlu1 %v9156_v44  ;;  %5699 = vset.pattern.permute.xlu0 %v9097_v41 }
 0x1a5   : > { %1247 = vperm.xlu1 %5639, %v6789_v28   ;;  %2279 = vperm.xlu0 %5699, %v9193_v0  }
 0x1a8   : > { %v6794_v10 = vpop.permute.xlu1 %1477 }
 0x1a9   : > { %9195 = vst [vmem:[#allocation115_spill] sm:$0xff] %v6794_v10  ;;  %5640 = vset.pattern.permute.xlu1 %v9097_v41  ;;  %5702 = vset.pattern.permute.xlu0 %v9105_v21 }
 0x1aa   : > { %2239 = vperm.xlu1 %5640, %v5804_v16   ;;  %v1170_v16 = vadd.f32 %v1145_v6, %v920_v36  ;;  %v2145_v36 = vmul.f32 %v2075_v48, %v6818_v55 }
 0x1ac   : > { %v1420_v2 = vadd.f32 %v1395_v35, %v1170_v16  ;;  %v2325_v35 = vrot.slane %v420_v25, %v6397_v34 }
 0x1ad   : > { %v6804_v22 = vpop.permute.xlu1 %498 }
 0x1ae   : > { %9197 = vst [vmem:[#allocation116_spill] sm:$0xff] %v6804_v22  ;;  %5641 = vset.pattern.permute.xlu1 %v9165_v15  ;;  %v1670_v12 = vadd.f32 %v1645_v46, %v1420_v2 }
 0x1af   : > { %1001 = vperm.xlu1 %5641, %v6768_v43  }
 0x1b0   : > { %v1920_v6 = vadd.f32 %v1895_v38, %v1670_v12  ;;  %v421_v12 = vld [vmem:[%s6331_s27 + $0x50] sm:$0xff] }
 0x1b1   : > { %v604_v25 = vrot.slane %v421_v12, %v6338_v37  ;;  %v829_v2 = vrot.slane %v421_v12, %v6344_v4  ;;  %v1079_v48 = vrot.slane %v421_v12, %v6346_v17  ;;  %v1579_v55 = vrot.slane %v421_v12, %v6364_v19 }
 0x1b2   : > { %v6812_v0 = vpop.permute.xlu1 %735  ;;  %v2170_v16 = vadd.f32 %v2145_v36, %v1920_v6  ;;  %v422_v36 = vld [vmem:[%s6331_s27 + $0x58] sm:$0xff] }
 0x1b3   : > { %9198 = vst [vmem:[#allocation117_spill] sm:$0xff] %v6812_v0  ;;  %5642 = vset.pattern.permute.xlu1 %v9140_v26  ;;  %v833_v59 = vrot.slane %v422_v36, %v6344_v4  ;;  %v608_v1 = vrot.slane %v422_v36, %v6338_v37  ;;  %v1333_v53 = vrot.slane %v422_v36, %v6357_v8 }
 0x1b4   : > { %1993 = vperm.xlu1 %5642, %v5805_v47  }
 0x1b7   : > { %v6820_v40 = vpop.permute.xlu1 %1727 }
 0x1b8   : > { %9201 = vst [vmem:[#allocation119_spill] sm:$0xff] %v6820_v40  ;;  %5643 = vset.pattern.permute.xlu1 %v9105_v21 }
 0x1b9   : > { %523 = vperm.xlu1 %5643, %v6825_v32  }
 0x1bc   : > { %v6829_v47 = vpop.permute.xlu1 %2223 }
 0x1bd   : > { %9202 = vst [vmem:[#allocation120_spill] sm:$0xff] %v6829_v47  ;;  %v2395_v42 = vmul.f32 %v2325_v35, %v6829_v47  ;;  %5644 = vset.pattern.permute.xlu1 %v9156_v44  ;;  %v9206_v35 = vld [vmem:[#allocation35_spill] sm:$0xff]  ;;  %v1146_v47 = vmul.f32 %v1079_v48, %v6726_v50  ;;  %v1083_v48 = vrot.slane %v422_v36, %v6346_v17 }
 0x1be   : > { %1251 = vperm.xlu1 %5644, %v6768_v43   ;;  %v1646_v50 = vmul.f32 %v1579_v55, %v6794_v10  ;;  %v6879_v10 = vld [vmem:[%s5943_s20 + $0x90] sm:$0xff] }
 0x1bf   : > { %v6834_v46 = vadd.f32 %v2395_v42, %v2170_v16  ;;  %v671_v16 = vmul.f32 %v604_v25, %v9206_v35  ;;  %v896_v42 = vmul.f32 %v829_v2, %v6692_v45  ;;  %v1829_v25 = vrot.slane %v421_v12, %v6378_v39 }
 0x1c0   : > { %v2079_v45 = vrot.slane %v421_v12, %v6383_v54 }
 0x1c1   : > { %9203 = vst [vmem:[#allocation121_spill] sm:$0xff] %v6834_v46  ;;  %5398 = vmatmul.mubr.msk.f32.gmra.mxu0 %vm2445_vm1, %v6834_v46  ;;  %v6839_v38 = vpop.permute.xlu1 %1481  ;;  %v1329_v46 = vrot.slane %v421_v12, %v6357_v8  ;;  %v921_v3 = vadd.f32 %v896_v42, %v671_v16  ;;  %v897_v16 = vmul.f32 %v833_v59, %v6437_v29  ;;  %v9210_v29 = vld [vmem:[#allocation24_spill] sm:$0xff] }
 0x1c2   : > { %9204 = vst [vmem:[#allocation122_spill] sm:$0xff] %v6839_v38  ;;  %5645 = vset.pattern.permute.xlu1 %v9111_v49  ;;  %5400 = vmatprep.mubr.msk.f32.mxu0 %vm5863_vm0, %v9125_v13  ;;  %v672_v42 = vmul.f32 %v608_v1, %v6741_v62  ;;  %v2329_v1 = vrot.slane %v421_v12, %v6397_v34 }
 0x1c3   : > { %1747 = vperm.xlu1 %5645, %v6789_v28   ;;  %v1396_v23 = vmul.f32 %v1329_v46, %v6752_v33  ;;  %v1171_v2 = vadd.f32 %v1146_v47, %v921_v3  ;;  %v1896_v46 = vmul.f32 %v1829_v25, %v6820_v40  ;;  %v1147_v3 = vmul.f32 %v1083_v48, %v6779_v24 }
 0x1c4   : > { %v1583_v25 = vrot.slane %v422_v36, %v6364_v19  ;;  %v1397_v62 = vmul.f32 %v1333_v53, %v9210_v29  ;;  %v9213_v53 = vld [vmem:[#allocation50_spill] sm:$0xff]  ;;  %v6982_v29 = vld [vmem:[%s6331_s27 + $0x68] sm:$0xff] }
 0x1c5   : > { %v1421_v35 = vadd.f32 %v1396_v23, %v1171_v2  ;;  %v922_v23 = vadd.f32 %v897_v16, %v672_v42  ;;  %v1341_v24 = vrot.slane %v6982_v29, %v6357_v8 }
 0x1c6   : > { %v6848_v6 = vpop.permute.xlu1 %1977  ;;  %v1647_v12 = vmul.f32 %v1583_v25, %v6839_v38  ;;  %v6929_v25 = vld [vmem:[%s5943_s20 + $0x98] sm:$0xff] }
 0x1c7   : > { %9205 = vst [vmem:[#allocation123_spill] sm:$0xff] %v6848_v6  ;;  %5646 = vset.pattern.permute.xlu1 %v9165_v15  ;;  %v1671_v47 = vadd.f32 %v1646_v50, %v1421_v35  ;;  %v2146_v55 = vmul.f32 %v2079_v45, %v6848_v6  ;;  %v1172_v40 = vadd.f32 %v1147_v3, %v922_v23 }
 0x1c8   : > { %1005 = vperm.xlu1 %5646, %v6825_v32   ;;  %v1833_v45 = vrot.slane %v422_v36, %v6378_v39 }
 0x1c9   : > { %v1921_v59 = vadd.f32 %v1896_v46, %v1671_v47  ;;  %v1422_v48 = vadd.f32 %v1397_v62, %v1172_v40  ;;  %v2333_v46 = vrot.slane %v422_v36, %v6397_v34 }
 0x1ca   : > { %v1897_v42 = vmul.f32 %v1833_v45, %v9213_v53  ;;  %v423_v45 = vld [vmem:[%s6331_s27 + $0x60] sm:$0xff] }
 0x1cb   : > { %v6859_v14 = vpop.permute.xlu1 %739  ;;  %v2171_v20 = vadd.f32 %v2146_v55, %v1921_v59  ;;  %v1672_v3 = vadd.f32 %v1647_v12, %v1422_v48  ;;  %v2397_v62 = vmul.f32 %v2333_v46, %v6609_v61  ;;  %v837_v12 = vrot.slane %v423_v45, %v6344_v4 }
 0x1cc   : > { %9207 = vst [vmem:[#allocation124_spill] sm:$0xff] %v6859_v14  ;;  %5647 = vset.pattern.permute.xlu1 %v9116_v18  ;;  %v612_v48 = vrot.slane %v423_v45, %v6338_v37  ;;  %v1087_v46 = vrot.slane %v423_v45, %v6346_v17 }
 0x1cd   : > { %1501 = vperm.xlu1 %5647, %v6768_v43   ;;  %v1922_v47 = vadd.f32 %v1897_v42, %v1672_v3  ;;  %v898_v3 = vmul.f32 %v837_v12, %v6812_v0 }
 0x1d0   : > { %v6872_v33 = vpop.permute.xlu1 %1235 }
 0x1d1   : > { %9208 = vst [vmem:[#allocation125_spill] sm:$0xff] %v6872_v33  ;;  %5648 = vset.pattern.permute.xlu1 %v9105_v21 }
 0x1d2   : > { %528 = vperm.xlu1 %5648, %v6879_v10  }
 0x1d5   : > { %v6884_v2 = vpop.permute.xlu1 %2227 }
 0x1d6   : > { %9209 = vst [vmem:[#allocation126_spill] sm:$0xff] %v6884_v2  ;;  %v2396_v50 = vmul.f32 %v2329_v1, %v6884_v2  ;;  %5649 = vset.pattern.permute.xlu1 %v9089_v11 }
 0x1d7   : > { %759 = vperm.xlu1 %5649, %v6879_v10  }
 0x1d8   : > { %v6892_v35 = vadd.f32 %v2396_v50, %v2171_v20  ;;  %v2083_v20 = vrot.slane %v422_v36, %v6383_v54 }
 0x1da   : > { %9211 = vst [vmem:[#allocation127_spill] sm:$0xff] %v6892_v35  ;;  %5401 = vmatmul.mubr.msk.f32.gmra.mxu0 %vm2445_vm1, %v6892_v35  ;;  %v6896_v16 = vpop.permute.xlu1 %989 }
 0x1db   : > { %9212 = vst [vmem:[#allocation128_spill] sm:$0xff] %v6896_v16  ;;  %5651 = vset.pattern.permute.xlu1 %v9111_v49  ;;  %5403 = vmatprep.mubr.msk.f32.mxu0 %vm5863_vm0, %v9125_v13 }
 0x1dc   : > { %1751 = vperm.xlu1 %5651, %v6768_v43  }
 0x1df   : > { %v6905_v40 = vpop.permute.xlu1 %1981 }
 0x1e0   : > { %9214 = vst [vmem:[#allocation129_spill] sm:$0xff] %v6905_v40  ;;  %v2147_v55 = vmul.f32 %v2083_v20, %v6905_v40  ;;  %5652 = vset.pattern.permute.xlu1 %v9097_v41  ;;  %v6947_v20 = vld [vmem:[%s8804_s3] ss:$0 sm:$0xff] }
 0x1e1   : > { %2247 = vperm.xlu1 %5652, %v6789_v28  }
 0x1e2   : > { %v2172_v1 = vadd.f32 %v2147_v55, %v1922_v47  ;;  %v1337_v47 = vrot.slane %v423_v45, %v6357_v8 }
 0x1e4   : > { %v6911_v23 = vpop.permute.xlu1 %508  ;;  %v6913_v59 = vadd.f32 %v2397_v62, %v2172_v1  ;;  %v673_v62 = vmul.f32 %v612_v48, %v6804_v22  ;;  %v1398_v48 = vmul.f32 %v1337_v47, %v6872_v33  ;;  %v9223_v47 = vld [vmem:[#allocation63_spill] sm:$0xff] }
 0x1e5   : > { %9215 = vst [vmem:[#allocation130_spill] sm:$0xff] %v6911_v23  ;;  %5653 = vset.pattern.permute.xlu1 %v9116_v18 }
 0x1e6   : > { %9216 = vst [vmem:[#allocation131_spill] sm:$0xff] %v6913_v59  ;;  %1505 = vperm.xlu1 %5653, %v6825_v32   ;;  %5404 = vmatmul.mubr.msk.f32.gmra.mxu0 %vm2445_vm1, %v6913_v59  ;;  %v9220_v59 = vld [vmem:[#allocation16_spill] sm:$0xff]  ;;  %v923_v12 = vadd.f32 %v898_v3, %v673_v62 }
 0x1e7   : > { %5406 = vmatprep.mubr.msk.f32.mxu0 %vm5863_vm0, %v9125_v13  ;;  %v1148_v35 = vmul.f32 %v1087_v46, %v9220_v59 }
 0x1e9   : > { %v6921_v36 = vpop.permute.xlu1 %1239  ;;  %v1173_v46 = vadd.f32 %v1148_v35, %v923_v12  ;;  %v2087_v35 = vrot.slane %v423_v45, %v6383_v54  ;;  %v6977_v12 = vpop.permute.xlu0 %1985 }
 0x1ea   : > { %9217 = vst [vmem:[#allocation132_spill] sm:$0xff] %v6921_v36  ;;  %5654 = vset.pattern.permute.xlu1 %v9140_v26  ;;  %9224 = vst [vmem:[#allocation137_spill] sm:$0xff] %v6977_v12 }
 0x1eb   : > { %2001 = vperm.xlu1 %5654, %v6768_v43   ;;  %v1423_v38 = vadd.f32 %v1398_v48, %v1173_v46  ;;  %v2148_v46 = vmul.f32 %v2087_v35, %v6977_v12  ;;  %v9226_v35 = vld [vmem:[#allocation26_spill] sm:$0xff] }
 0x1ee   : > { %v6925_v28 = vpop.permute.xlu1 %1735 }
 0x1ef   : > { %9218 = vst [vmem:[#allocation133_spill] sm:$0xff] %v6925_v28  ;;  %5655 = vset.pattern.permute.xlu1 %v9089_v11 }
 0x1f0   : > { %763 = vperm.xlu1 %5655, %v6929_v25  }
 0x1f3   : > { %v6932_v50 = vpop.permute.xlu1 %993 }
 0x1f4   : > { %9219 = vst [vmem:[#allocation134_spill] sm:$0xff] %v6932_v50  ;;  %5656 = vset.pattern.permute.xlu1 %v9156_v44 }
 0x1f5   : > { %1259 = vperm.xlu1 %5656, %v6879_v10  }
 0x1f8   : > { %v6939_v42 = vpop.permute.xlu1 %1489 }
 0x1f9   : > { %5657 = vset.pattern.permute.xlu1 %v9097_v41 }
 0x1fa   : > { %2251 = vperm.xlu1 %5657, %v6768_v43   ;;  %v1587_v43 = vrot.slane %v423_v45, %v6364_v19 }
 0x1fb   : > { %v2587_v55 = vpop.f32.mrf.mxu0 }
 0x1fc   : > { %v6953_v1 = vadd.f32 %v6947_v20, %v2587_v55  ;;  %v1648_v33 = vmul.f32 %v1587_v43, %v9223_v47  ;;  %v6986_v43 = vld [vmem:[%s6331_s27 + $0x70] sm:$0xff] }
 0x1fd   : > { %v5372_v0 = vpop.f32.mrf.mxu0  ;;  %v6956_v61 = vpop.permute.xlu1 %513 }
 0x1fe   : > { %9221 = vst [vmem:[#allocation135_spill] sm:$0xff] %v6956_v61  ;;  %v2736_v40 = vmul.f32 %v6953_v1, %v6953_v1  ;;  %5658 = vset.pattern.permute.xlu1 %v9165_v15  ;;  %v1837_v0 = vrot.slane %v423_v45, %v6378_v39 }
 0x1ff   : > { %v2592_v22 = vpop.f32.mrf.mxu0  ;;  %1013 = vperm.xlu1 %5658, %v6929_v25  }
 0x200   : > { %v2761_v55 = vadd.f32 1.0, %v2736_v40  ;;  %v6965_v53 = vadd.f32 %v6947_v20, %v2592_v22  ;;  %v1898_v22 = vmul.f32 %v1837_v0, %v6925_v28  ;;  %v1345_v0 = vrot.slane %v6986_v43, %v6357_v8  ;;  %v9227_v28 = vld [vmem:[#allocation37_spill] sm:$0xff] }
 0x201   : > { %v5375_v3 = vpop.f32.mrf.mxu0 }
 0x202   : > { %5703 = vrcp.f32 %v2761_v55  ;;  %v2737_v62 = vmul.f32 %v6965_v53, %v6965_v53  ;;  %v6970_v59 = vpop.permute.xlu1 %747  ;;  %v1673_v55 = vadd.f32 %v1648_v33, %v1423_v38  ;;  %v616_v33 = vrot.slane %v6982_v29, %v6338_v37 }
 0x203   : > { %9222 = vst [vmem:[#allocation136_spill] sm:$0xff] %v6970_v59  ;;  %5659 = vset.pattern.permute.xlu1 %v9140_v26  ;;  %v845_v38 = vrot.slane %v6986_v43, %v6344_v4  ;;  %v9230_v26 = vld [vmem:[#allocation70_spill] sm:$0xff] }
 0x204   : > { %v2762_v40 = vadd.f32 1.0, %v2737_v62  ;;  %2005 = vperm.xlu1 %5659, %v6825_v32   ;;  %v1923_v48 = vadd.f32 %v1898_v22, %v1673_v55  ;;  %v2337_v32 = vrot.slane %v423_v45, %v6397_v34  ;;  %v7002_v55 = vmul.f32 %v1345_v0, %v9226_v35 }
 0x205   : > { %v674_v47 = vmul.f32 %v616_v33, %v9227_v28  ;;  %v1091_v0 = vrot.slane %v6982_v29, %v6346_v17  ;;  %v2711_v45 = vmax.f32 %v6953_v1, 0.0  ;;  %v620_v33 = vrot.slane %v6986_v43, %v6338_v37 }
 0x206   : > { %5705 = vrcp.f32 %v2762_v40  ;;  %v2173_v40 = vadd.f32 %v2148_v46, %v1923_v48  ;;  %v841_v48 = vrot.slane %v6982_v29, %v6344_v4  ;;  %v1591_v1 = vrot.slane %v6982_v29, %v6364_v19 }
 0x207   : > { %v6979_v3 = vpop.permute.xlu1 %1739 }
 0x208   : > { %5660 = vset.pattern.permute.xlu1 %v9105_v21  ;;  %v899_v2 = vmul.f32 %v841_v48, %v6859_v14  ;;  %v1149_v14 = vmul.f32 %v1091_v0, %v6896_v16  ;;  %v9232_v16 = vld [vmem:[#allocation18_spill] sm:$0xff] }
 0x209   : > { %538 = vperm.xlu1 %5660, %v6757_v56  }
 0x20a   : > { %v924_v0 = vadd.f32 %v899_v2, %v674_v47 }
 0x20c   : > { %v6997_v62 = vpop.permute.xlu1 %2235  ;;  %v1174_v47 = vadd.f32 %v1149_v14, %v924_v0  ;;  %v1649_v0 = vmul.f32 %v1591_v1, %v6939_v42 }
 0x20d   : > { %9225 = vst [vmem:[#allocation138_spill] sm:$0xff] %v6997_v62  ;;  %v2398_v22 = vmul.f32 %v2337_v32, %v6997_v62  ;;  %5661 = vset.pattern.permute.xlu1 %v9156_v44  ;;  %v7015_v32 = vmul.f32 %v845_v38, %v6459_v7  ;;  %v9229_v44 = vld [vmem:[#allocation29_spill] sm:$0xff] }
 0x20e   : > { %1263 = vperm.xlu1 %5661, %v6929_v25  }
 0x20f   : > { %v5704_v12 = vpop.eup %5703  ;;  %v7012_v46 = vadd.f32 %v2398_v22, %v2173_v40  ;;  %v1095_v40 = vrot.slane %v6986_v43, %v6346_v17 }
 0x210   : > { %v2811_v35 = vmul.f32 2.0, %v5704_v12  ;;  %v2597_v62 = vpop.f32.mrf.mxu0 }
 0x211   : > { %9228 = vst [vmem:[#allocation139_spill] sm:$0xff] %v7012_v46  ;;  %v7027_v22 = vadd.f32 %v6947_v20, %v2597_v62  ;;  %5407 = vmatmul.mubr.msk.f32.gmra.mxu0 %vm2445_vm1, %v7012_v46  ;;  %v7031_v38 = vpop.permute.xlu1 %1493 }
 0x212   : > { %v7035_v12 = vsub.f32 %v2711_v45, %v2811_v35  ;;  %v5378_v28 = vpop.f32.mrf.mxu0  ;;  %5662 = vset.pattern.permute.xlu1 %v9111_v49  ;;  %5409 = vmatprep.mubr.msk.f32.mxu0 %vm5863_vm0, %v9125_v13 }
 0x213   : > { %v5706_v62 = vpop.eup %5705  ;;  %v2738_v46 = vmul.f32 %v7027_v22, %v7027_v22  ;;  %1759 = vperm.xlu1 %5662, %v6879_v10   ;;  %v2712_v28 = vmax.f32 %v6965_v53, 0.0 }
 0x214   : > { %v2812_v45 = vmul.f32 2.0, %v5706_v62  ;;  %v2602_v7 = vpop.f32.mrf.mxu0  ;;  %v2864_v61 = vrot.slane %v7035_v12, %v6338_v37  ;;  %v2989_v48 = vrot.slane %v7035_v12, %v6344_v4  ;;  %v3139_v31 = vrot.slane %v7035_v12, %v6346_v17 }
 0x215   : > { %v2763_v59 = vadd.f32 1.0, %v2738_v46  ;;  %v7057_v6 = vadd.f32 %v6947_v20, %v2602_v7  ;;  %v3289_v9 = vrot.slane %v7035_v12, %v6357_v8  ;;  %v1399_v46 = vmul.f32 %v1341_v24, %v6921_v36 }
 0x216   : > { %v7061_v35 = vsub.f32 %v2712_v28, %v2812_v45  ;;  %v5381_v53 = vpop.f32.mrf.mxu0  ;;  %v7063_v62 = vpop.permute.xlu1 %1989  ;;  %v2961_v58 = vmul.f32 %v2864_v61, %v9229_v44  ;;  %v3086_v27 = vmul.f32 %v2989_v48, %v9230_v26  ;;  %v9231_v26 = vld [vmem:[#allocation6_spill] sm:$0xff]  ;;  %v3439_v2 = vrot.slane %v7035_v12, %v6364_v19 }
 0x217   : > { %5707 = vrcp.f32 %v2763_v59  ;;  %v2739_v7 = vmul.f32 %v7057_v6, %v7057_v6  ;;  %5663 = vset.pattern.permute.xlu1 %v9165_v15  ;;  %v3236_v45 = vmul.f32 %v3139_v31, %v9231_v26  ;;  %v675_v24 = vmul.f32 %v620_v33, %v6911_v23  ;;  %v9235_v26 = vld [vmem:[#allocation8_spill] sm:$0xff] }
 0x218   : > { %v2607_v28 = vpop.f32.mrf.mxu0  ;;  %1017 = vperm.xlu1 %5663, %v6757_v56   ;;  %v3111_v61 = vadd.f32 %v3086_v27, %v2961_v58  ;;  %v3386_v15 = vmul.f32 %v3289_v9, %v9232_v16  ;;  %v3589_v44 = vrot.slane %v7035_v12, %v6378_v39  ;;  %v2868_v58 = vrot.slane %v7061_v35, %v6338_v37  ;;  %v9234_v16 = vld [vmem:[#allocation15_spill] sm:$0xff] }
 0x219   : > { %v2764_v59 = vadd.f32 1.0, %v2739_v7  ;;  %v7081_v48 = vadd.f32 %v6947_v20, %v2607_v28  ;;  %v1424_v27 = vadd.f32 %v1399_v46, %v1174_v47  ;;  %v1150_v31 = vmul.f32 %v1095_v40, %v6932_v50  ;;  %v7132_v23 = vld [vmem:[%s5943_s20 + $0xa8] sm:$0xff] }
 0x21a   : > { %v5384_v53 = vpop.f32.mrf.mxu0  ;;  %v3261_v36 = vadd.f32 %v3236_v45, %v3111_v61  ;;  %v3536_v28 = vmul.f32 %v3439_v2, %v9234_v16  ;;  %v3739_v46 = vrot.slane %v7035_v12, %v6383_v54  ;;  %v2962_v45 = vmul.f32 %v2868_v58, %v9235_v26 }
 0x21b   : > { %5709 = vrcp.f32 %v2764_v59  ;;  %v2740_v14 = vmul.f32 %v7081_v48, %v7081_v48  ;;  %v7091_v33 = vpop.permute.xlu1 %751  ;;  %v2993_v1 = vrot.slane %v7061_v35, %v6344_v4  ;;  %v9236_v53 = vld [vmem:[#allocation43_spill] sm:$0xff]  ;;  %v3143_v2 = vrot.slane %v7061_v35, %v6346_v17 }
 0x21c   : > { %9233 = vst [vmem:[#allocation29_spill] sm:$0xff] %v7091_v33  ;;  %v2612_v7 = vpop.f32.mrf.mxu0  ;;  %5664 = vset.pattern.permute.xlu1 %v9116_v18  ;;  %v3411_v9 = vadd.f32 %v3386_v15, %v3261_v36  ;;  %v3686_v15 = vmul.f32 %v3589_v44, %v9236_v53  ;;  %v3889_v36 = vrot.slane %v7035_v12, %v6397_v34 }
 0x21d   : > { %v2765_v61 = vadd.f32 1.0, %v2740_v14  ;;  %v7099_v40 = vadd.f32 %v6947_v20, %v2612_v7  ;;  %1513 = vperm.xlu1 %5664, %v6929_v25   ;;  %v9237_v7 = vld [vmem:[#allocation10_spill] sm:$0xff]  ;;  %v3293_v16 = vrot.slane %v7061_v35, %v6357_v8  ;;  %v9238_v44 = vrot.slane %v6982_v29, %v6378_v39 }
 0x21e   : > { %v5387_v47 = vpop.f32.mrf.mxu0  ;;  %v3561_v59 = vadd.f32 %v3536_v28, %v3411_v9  ;;  %v3087_v58 = vmul.f32 %v2993_v1, %v9237_v7  ;;  %v925_v9 = vadd.f32 %v7015_v32, %v675_v24  ;;  %v9240_v1 = vld [vmem:[#allocation12_spill] sm:$0xff]  ;;  %v3443_v50 = vrot.slane %v7061_v35, %v6364_v19 }
 0x21f   : > { %5711 = vrcp.f32 %v2765_v61  ;;  %v2741_v14 = vmul.f32 %v7099_v40, %v7099_v40  ;;  %v1899_v12 = vmul.f32 %v9238_v44, %v6979_v3  ;;  %v3836_v61 = vmul.f32 %v3739_v46, %v6081_v30 }
 0x220   : > { %v7120_v28 = vpop.permute.xlu1 %1247  ;;  %v3711_v26 = vadd.f32 %v3686_v15, %v3561_v59  ;;  %v1674_v47 = vadd.f32 %v1649_v0, %v1424_v27  ;;  %v3112_v53 = vadd.f32 %v3087_v58, %v2962_v45  ;;  %v3237_v7 = vmul.f32 %v3143_v2, %v9240_v1  ;;  %v9242_v45 = vld [vmem:[#allocation19_spill] sm:$0xff] }
 0x221   : > { %9239 = vst [vmem:[#allocation70_spill] sm:$0xff] %v7120_v28  ;;  %5665 = vset.pattern.permute.xlu1 %v9105_v21  ;;  %v9241_v32 = vrot.slane %v6982_v29, %v6383_v54  ;;  %v2766_v44 = vadd.f32 1.0, %v2741_v14  ;;  %v3986_v27 = vmul.f32 %v3889_v36, %v6199_v63  ;;  %v1175_v0 = vadd.f32 %v1150_v31, %v925_v9 }
 0x222   : > { %543 = vperm.xlu1 %5665, %v7132_v23   ;;  %v3861_v30 = vadd.f32 %v3836_v61, %v3711_v26  ;;  %v3262_v46 = vadd.f32 %v3237_v7, %v3112_v53  ;;  %v3387_v59 = vmul.f32 %v3293_v16, %v9242_v45  ;;  %v3593_v15 = vrot.slane %v7061_v35, %v6378_v39 }
 0x223   : > { %v2149_v24 = vmul.f32 %v9241_v32, %v7063_v62  ;;  %v1924_v58 = vadd.f32 %v1899_v12, %v1674_v47  ;;  %v9243_v14 = vrot.slane %v6986_v43, %v6364_v19  ;;  %v3743_v26 = vrot.slane %v7061_v35, %v6383_v54 }
 0x224   : > { %v5708_v2 = vpop.eup %5707  ;;  %v4011_v32 = vadd.f32 %v3986_v27, %v3861_v30  ;;  %v2713_v63 = vmax.f32 %v7027_v22, 0.0  ;;  %v3412_v16 = vadd.f32 %v3387_v59, %v3262_v46  ;;  %v3537_v9 = vmul.f32 %v3443_v50, %v6156_v52  ;;  %v9246_v59 = vld [vmem:[#allocation52_spill] sm:$0xff] }
 0x225   : > { %v1650_v1 = vmul.f32 %v9243_v14, %v7031_v38  ;;  %v2813_v31 = vmul.f32 2.0, %v5708_v2  ;;  %v7146_v36 = vpop.permute.xlu1 %2239  ;;  %v2174_v61 = vadd.f32 %v2149_v24, %v1924_v58  ;;  %5713 = vrcp.f32 %v2766_v44 }
 0x226   : > { %v9244_v12 = vrot.slane %v6982_v29, %v6397_v34  ;;  %5454 = vmatmul.mubr.msk.f32.vlgmr.msra.gmra.mxu1 %vm4047_vm2, %v4011_v32  ;;  %5666 = vset.pattern.permute.xlu1 %v9089_v11  ;;  %v3893_v22 = vrot.slane %v7061_v35, %v6397_v34  ;;  %v3562_v52 = vadd.f32 %v3537_v9, %v3412_v16  ;;  %v2714_v24 = vmax.f32 %v7057_v6, 0.0  ;;  %v9249_v32 = vld [vmem:[#allocation31_spill] sm:$0xff] }
 0x227   : > { %v7157_v53 = vsub.f32 %v2713_v63, %v2813_v31  ;;  %771 = vperm.xlu1 %5666, %v7132_v23   ;;  %5456 = vmatprep.mubr.msk.f32.mxu1 %vm5863_vm0, %v9125_v13  ;;  %v3687_v50 = vmul.f32 %v3593_v15, %v6189_v60  ;;  %v1425_v29 = vadd.f32 %v7002_v55, %v1175_v0  ;;  %v9250_v63 = vld [vmem:[#allocation17_spill] sm:$0xff] }
 0x228   : > { %v2399_v47 = vmul.f32 %v9244_v12, %v7146_v36  ;;  %v5710_v7 = vpop.eup %5709  ;;  %v3837_v30 = vmul.f32 %v3743_v26, %v6214_v5  ;;  %v9247_v60 = vrot.slane %v6986_v43, %v6378_v39  ;;  %v3987_v6 = vmul.f32 %v3893_v22, %v6238_v51 }
 0x229   : > { %v2814_v35 = vmul.f32 2.0, %v5710_v7  ;;  %v3712_v27 = vadd.f32 %v3687_v50, %v3562_v52  ;;  %v2872_v46 = vrot.slane %v7157_v53, %v6338_v37  ;;  %v2997_v45 = vrot.slane %v7157_v53, %v6344_v4  ;;  %v9252_v7 = vld [vmem:[#allocation22_spill] sm:$0xff] }
 0x22a   : > { %v7165_v44 = vadd.f32 %v2399_v47, %v2174_v61  ;;  %v1900_v15 = vmul.f32 %v9247_v60, %v9246_v59  ;;  %v1675_v55 = vadd.f32 %v1650_v1, %v1425_v29  ;;  %v7179_v5 = vpop.permute.xlu1 %1001  ;;  %v3147_v0 = vrot.slane %v7157_v53, %v6346_v17 }
 0x22b   : > { %9248 = vst [vmem:[#allocation18_spill] sm:$0xff] %v7179_v5  ;;  %v7183_v2 = vsub.f32 %v2714_v24, %v2814_v35  ;;  %v3862_v58 = vadd.f32 %v3837_v30, %v3712_v27  ;;  %5667 = vset.pattern.permute.xlu1 %v9111_v49  ;;  %v3297_v14 = vrot.slane %v7157_v53, %v6357_v8  ;;  %v9254_v30 = vld [vmem:[#allocation20_spill] sm:$0xff] }
 0x22c   : > { %9245 = vst [vmem:[#allocation6_spill] sm:$0xff] %v7165_v44  ;;  %5410 = vmatmul.mubr.msk.f32.gmra.mxu0 %vm2445_vm1, %v7165_v44  ;;  %v5712_v1 = vpop.eup %5711  ;;  %1763 = vperm.xlu1 %5667, %v6929_v25   ;;  %v2095_v51 = vrot.slane %v6986_v43, %v6383_v54  ;;  %v2963_v26 = vmul.f32 %v2872_v46, %v9249_v32  ;;  %v9257_v32 = vld [vmem:[#allocation25_spill] sm:$0xff] }
 0x22d   : > { %5412 = vmatprep.mubr.msk.f32.mxu0 %vm5863_vm0, %v9125_v13  ;;  %v3088_v31 = vmul.f32 %v2997_v45, %v9250_v63  ;;  %v3447_v16 = vrot.slane %v7157_v53, %v6364_v19  ;;  %v9251_v9 = vrot.slane %v6986_v43, %v6397_v34  ;;  %v4012_v12 = vadd.f32 %v3987_v6, %v3862_v58  ;;  %v9256_v58 = vld [vmem:[#allocation45_spill] sm:$0xff] }
 0x22e   : > { %v3597_v47 = vrot.slane %v7157_v53, %v6378_v39  ;;  %v2815_v22 = vmul.f32 2.0, %v5712_v1  ;;  %v1925_v52 = vadd.f32 %v1900_v15, %v1675_v55  ;;  %v3238_v29 = vmul.f32 %v3147_v0, %v9252_v7  ;;  %v9255_v55 = vld [vmem:[#allocation33_spill] sm:$0xff] }
 0x22f   : > { %v2400_v61 = vmul.f32 %v9251_v9, %v6624_v57  ;;  %v3113_v50 = vadd.f32 %v3088_v31, %v2963_v26  ;;  %5457 = vmatmul.mubr.msk.f32.gmra.mxu1 %vm4047_vm2, %v4012_v12  ;;  %v7205_v24 = vpop.permute.xlu1 %1993  ;;  %v3388_v35 = vmul.f32 %v3297_v14, %v9254_v30  ;;  %v2876_v27 = vrot.slane %v7183_v2, %v6338_v37  ;;  %v9258_v26 = vld [vmem:[#allocation27_spill] sm:$0xff] }
 0x230   : > { %9253 = vst [vmem:[#allocation15_spill] sm:$0xff] %v7205_v24  ;;  %v3001_v43 = vrot.slane %v7183_v2, %v6344_v4  ;;  %v3151_v46 = vrot.slane %v7183_v2, %v6346_v17  ;;  %v2715_v45 = vmax.f32 %v7081_v48, 0.0  ;;  %v2150_v60 = vmul.f32 %v2095_v51, %v7205_v24  ;;  %5668 = vset.pattern.permute.xlu1 %v9097_v41 }
 0x231   : > { %5459 = vmatprep.mubr.msk.f32.mxu1 %vm5863_vm0, %v9125_v13  ;;  %v3263_v15 = vadd.f32 %v3238_v29, %v3113_v50  ;;  %v3538_v6 = vmul.f32 %v3447_v16, %v9255_v55  ;;  %v2617_v0 = vpop.f32.mrf.mxu0  ;;  %2259 = vperm.xlu1 %5668, %v6879_v10   ;;  %v3688_v14 = vmul.f32 %v3597_v47, %v9256_v58  ;;  %v9259_v10 = vld [vmem:[#allocation9_spill] sm:$0xff]  ;;  %v9263_v55 = vld [vmem:[#allocation39_spill] sm:$0xff] }
 0x232   : > { %v3747_v1 = vrot.slane %v7157_v53, %v6383_v54  ;;  %v2964_v48 = vmul.f32 %v2876_v27, %v9257_v32  ;;  %v3089_v51 = vmul.f32 %v3001_v43, %v9258_v26  ;;  %v7226_v63 = vsub.f32 %v2715_v45, %v2815_v22  ;;  %v5714_v16 = vpop.eup %5713 }
 0x233   : > { %v2175_v31 = vadd.f32 %v2150_v60, %v1925_v52  ;;  %v7229_v9 = vadd.f32 %v6947_v20, %v2617_v0  ;;  %v3413_v12 = vadd.f32 %v3388_v35, %v3263_v15  ;;  %v5390_v50 = vpop.f32.mrf.mxu0  ;;  %v3239_v29 = vmul.f32 %v3151_v46, %v9259_v10  ;;  %v9262_v46 = vld [vmem:[#allocation44_spill] sm:$0xff] }
 0x234   : > { %v3114_v7 = vadd.f32 %v3089_v51, %v2964_v48  ;;  %v3301_v47 = vrot.slane %v7183_v2, %v6357_v8  ;;  %v3451_v30 = vrot.slane %v7183_v2, %v6364_v19  ;;  %v7238_v27 = vpop.permute.xlu1 %523  ;;  %v3897_v35 = vrot.slane %v7157_v53, %v6397_v34 }
 0x235   : > { %v2742_v22 = vmul.f32 %v7229_v9, %v7229_v9  ;;  %9260 = vst [vmem:[#allocation8_spill] sm:$0xff] %v7238_v27  ;;  %v7240_v52 = vadd.f32 %v2400_v61, %v2175_v31  ;;  %v3563_v43 = vadd.f32 %v3538_v6, %v3413_v12  ;;  %v2716_v45 = vmax.f32 %v7099_v40, 0.0  ;;  %5669 = vset.pattern.permute.xlu1 %v9116_v18  ;;  %v9264_v40 = vld [vmem:[#allocation57_spill] sm:$0xff] }
 0x236   : > { %v3838_v60 = vmul.f32 %v3747_v1, %v9262_v46  ;;  %v3264_v15 = vadd.f32 %v3239_v29, %v3114_v7  ;;  %v3389_v0 = vmul.f32 %v3301_v47, %v9263_v55  ;;  %v2816_v58 = vmul.f32 2.0, %v5714_v16  ;;  %1517 = vperm.xlu1 %5669, %v6757_v56   ;;  %v7260_v56 = vpop.permute.xlu0 %1997  ;;  %v9268_v7 = vld [vmem:[#allocation51_spill] sm:$0xff]  ;;  %v9269_v29 = vld [vmem:[#allocation32_spill] sm:$0xff] }
 0x237   : > { %9261 = vst [vmem:[#allocation43_spill] sm:$0xff] %v7240_v52  ;;  %v2767_v32 = vadd.f32 1.0, %v2742_v22  ;;  %5413 = vmatmul.mubr.msk.f32.gmra.mxu0 %vm2445_vm1, %v7240_v52  ;;  %v3713_v61 = vadd.f32 %v3688_v14, %v3563_v43  ;;  %v3601_v53 = vrot.slane %v7183_v2, %v6378_v39  ;;  %v3539_v48 = vmul.f32 %v3451_v30, %v9264_v40  ;;  %v9266_v14 = vld [vmem:[#allocation86_spill] sm:$0xff]  ;;  %v9272_v55 = vld [vmem:[#allocation36_spill] sm:$0xff]  ;;  %v9289_v52 = vld [vmem:[#allocation75_spill] sm:$0xff] }
 0x238   : > { %v3414_v6 = vadd.f32 %v3389_v0, %v3264_v15  ;;  %v3751_v1 = vrot.slane %v7183_v2, %v6383_v54  ;;  %v2880_v26 = vrot.slane %v7226_v63, %v6338_v37  ;;  %5415 = vmatprep.mubr.msk.f32.mxu0 %vm5863_vm0, %v9125_v13  ;;  %9265 = vst [vmem:[#allocation10_spill] sm:$0xff] %v7260_v56  ;;  %v9270_v43 = vmov 6  }
 0x239   : > { %5715 = vrcp.f32 %v2767_v32  ;;  %v3863_v51 = vadd.f32 %v3838_v60, %v3713_v61  ;;  %v3988_v31 = vmul.f32 %v3897_v35, %v9266_v14  ;;  %v3901_v12 = vrot.slane %v7183_v2, %v6397_v34  ;;  %v7265_v16 = vpop.permute.xlu1 %1251  ;;  %v9271_v60 = vld [vmem:[#allocation7_spill] sm:$0xff] }
 0x23a   : > { %9267 = vst [vmem:[#allocation12_spill] sm:$0xff] %v7265_v16  ;;  %v3564_v50 = vadd.f32 %v3539_v48, %v3414_v6  ;;  %v3689_v10 = vmul.f32 %v3601_v53, %v9268_v7  ;;  %v2965_v47 = vmul.f32 %v2880_v26, %v9269_v29  ;;  %v3005_v30 = vrot.slane %v7226_v63, %v6344_v4  ;;  %v9274_v6 = vld [vmem:[#allocation42_spill] sm:$0xff]  ;;  %v9277_v7 = vld [vmem:[#allocation49_spill] sm:$0xff] }
 0x23b   : > { %v7271_v22 = vsub.f32 %v2716_v45, %v2816_v58  ;;  %5670 = vset.pattern.permute.xlu1 %v9270_v43  ;;  %v4013_v46 = vadd.f32 %v3988_v31, %v3863_v51  ;;  %v3155_v35 = vrot.slane %v7226_v63, %v6346_v17  ;;  %v3839_v15 = vmul.f32 %v3751_v1, %v9271_v60  ;;  %v9273_v45 = vld [vmem:[#allocation64_spill] sm:$0xff]  ;;  %v7288_v1 = vpop.permute.xlu0 %2009 }
 0x23c   : > { %2013 = vperm.xlu1 %5670, %v6929_v25   ;;  %v3714_v2 = vadd.f32 %v3689_v10, %v3564_v50  ;;  %v3090_v0 = vmul.f32 %v3005_v30, %v9272_v55  ;;  %v3305_v32 = vrot.slane %v7226_v63, %v6357_v8  ;;  %v3989_v58 = vmul.f32 %v3901_v12, %v9273_v45  ;;  %v9278_v30 = vld [vmem:[#allocation46_spill] sm:$0xff]  ;;  %v9280_v55 = vld [vmem:[#allocation55_spill] sm:$0xff] }
 0x23d   : > { %5460 = vmatmul.mubr.msk.f32.gmra.mxu1 %vm4047_vm2, %v4013_v46  ;;  %v3240_v40 = vmul.f32 %v3155_v35, %v9274_v6  ;;  %v3455_v48 = vrot.slane %v7226_v63, %v6364_v19  ;;  %9275 = vst [vmem:[#allocation19_spill] sm:$0xff] %v7288_v1  ;;  %v3605_v51 = vrot.slane %v7226_v63, %v6378_v39  ;;  %v9279_v35 = vld [vmem:[#allocation72_spill] sm:$0xff] }
 0x23e   : > { %5462 = vmatprep.mubr.msk.f32.mxu1 %vm5863_vm0, %v9125_v13  ;;  %v3864_v61 = vadd.f32 %v3839_v15, %v3714_v2  ;;  %v3115_v53 = vadd.f32 %v3090_v0, %v2965_v47  ;;  %v7290_v26 = vpop.permute.xlu1 %1747  ;;  %v2884_v14 = vrot.slane %v7271_v22, %v6338_v37  ;;  %v3009_v31 = vrot.slane %v7271_v22, %v6344_v4  ;;  %v7303_v47 = vld [vmem:[%s5943_s20 + $0xb0] sm:$0xff] }
 0x23f   : > { %9276 = vst [vmem:[#allocation52_spill] sm:$0xff] %v7290_v26  ;;  %v3390_v10 = vmul.f32 %v3305_v32, %v9277_v7  ;;  %v3159_v29 = vrot.slane %v7271_v22, %v6346_v17  ;;  %v3309_v60 = vrot.slane %v7271_v22, %v6357_v8  ;;  %v3540_v0 = vmul.f32 %v3455_v48, %v9280_v55  ;;  %v7325_v48 = vld [vmem:[%s6331_s27 + $0x78] sm:$0xff] }
 0x240   : > { %v4014_v12 = vadd.f32 %v3989_v58, %v3864_v61  ;;  %5672 = vset.pattern.permute.xlu1 %v9089_v11  ;;  %v3265_v50 = vadd.f32 %v3240_v40, %v3115_v53  ;;  %v2966_v46 = vmul.f32 %v2884_v14, %v9278_v30  ;;  %v3091_v2 = vmul.f32 %v3009_v31, %v9279_v35  ;;  %v9281_v58 = vld [vmem:[#allocation53_spill] sm:$0xff]  ;;  %v9282_v40 = vld [vmem:[#allocation62_spill] sm:$0xff] }
 0x241   : > { %775 = vperm.xlu1 %5672, %v7303_v47   ;;  %v3755_v32 = vrot.slane %v7226_v63, %v6383_v54  ;;  %v3241_v61 = vmul.f32 %v3159_v29, %v9281_v58  ;;  %v3459_v53 = vrot.slane %v7271_v22, %v6364_v19  ;;  %v3690_v14 = vmul.f32 %v3605_v51, %v9282_v40  ;;  %v9286_v30 = vld [vmem:[#allocation21_spill] sm:$0xff] }
 0x242   : > { %5463 = vmatmul.mubr.msk.f32.gmra.mxu1 %vm4047_vm2, %v4014_v12  ;;  %v3415_v15 = vadd.f32 %v3390_v10, %v3265_v50  ;;  %v3116_v45 = vadd.f32 %v3091_v2, %v2966_v46  ;;  %v3905_v31 = vrot.slane %v7226_v63, %v6397_v34  ;;  %v7327_v50 = vpop.permute.xlu0 %2021  ;;  %v9285_v7 = vmov 3   ;;  %v9287_v63 = vld [vmem:[#allocation69_spill] sm:$0xff] }
 0x243   : > { %5465 = vmatprep.mubr.msk.f32.mxu1 %vm5863_vm0, %v9125_v13  ;;  %v7322_v12 = vpop.permute.xlu1 %1005  ;;  %9284 = vst [vmem:[#allocation17_spill] sm:$0xff] %v7327_v50  ;;  %v3391_v29 = vmul.f32 %v3309_v60, %v9286_v30  ;;  %v3609_v46 = vrot.slane %v7271_v22, %v6378_v39  ;;  %v849_v51 = vrot.slane %v7325_v48, %v6344_v4  ;;  %v9288_v60 = vld [vmem:[#allocation66_spill] sm:$0xff] }
 0x244   : > { %v3565_v6 = vadd.f32 %v3540_v0, %v3415_v15  ;;  %9283 = vst [vmem:[#allocation31_spill] sm:$0xff] %v7322_v12  ;;  %v3266_v10 = vadd.f32 %v3241_v61, %v3116_v45  ;;  %v3840_v15 = vmul.f32 %v3755_v32, %v9287_v63  ;;  %v3759_v55 = vrot.slane %v7271_v22, %v6383_v54  ;;  %v9290_v63 = vld [vmem:[#allocation47_spill] sm:$0xff] }
 0x245   : > { %5673 = vset.pattern.permute.xlu1 %v9285_v7  ;;  %v2717_v0 = vmax.f32 %v7229_v9, 0.0  ;;  %v3541_v61 = vmul.f32 %v3459_v53, %v9288_v60  ;;  %v624_v40 = vrot.slane %v7325_v48, %v6338_v37  ;;  %v3990_v44 = vmul.f32 %v3905_v31, %v9289_v52  ;;  %v9292_v9 = vld [vmem:[#allocation136_spill] sm:$0xff] }
 0x246   : > { %v5716_v35 = vpop.eup %5715  ;;  %v3715_v2 = vadd.f32 %v3690_v14, %v3565_v6  ;;  %1271 = vperm.xlu1 %5673, %v7132_v23   ;;  %v3416_v58 = vadd.f32 %v3391_v29, %v3266_v10  ;;  %v3909_v32 = vrot.slane %v7271_v22, %v6397_v34  ;;  %v3691_v57 = vmul.f32 %v3609_v46, %v9290_v63  ;;  %v7356_v52 = vpop.permute.xlu0 %997 }
 0x247   : > { %v2817_v45 = vmul.f32 2.0, %v5716_v35  ;;  %v901_v10 = vmul.f32 %v849_v51, %v9292_v9  ;;  %v1099_v53 = vrot.slane %v7325_v48, %v6346_v17  ;;  %v9293_v35 = vld [vmem:[#allocation82_spill] sm:$0xff]  ;;  %9294 = vst [vmem:[#allocation20_spill] sm:$0xff] %v7356_v52  ;;  %v9300_v9 = vmov 2  }
 0x248   : > { %v3865_v30 = vadd.f32 %v3840_v15, %v3715_v2  ;;  %v3566_v14 = vadd.f32 %v3541_v61, %v3416_v58  ;;  %v7349_v24 = vpop.permute.xlu1 %1501  ;;  %v3841_v2 = vmul.f32 %v3759_v55, %v9293_v35  ;;  %v1349_v55 = vrot.slane %v7325_v48, %v6357_v8  ;;  %v9297_v61 = vld [vmem:[#allocation58_spill] sm:$0xff] }
 0x249   : > { %v7346_v6 = vsub.f32 %v2717_v0, %v2817_v45  ;;  %9291 = vst [vmem:[#allocation22_spill] sm:$0xff] %v7349_v24 }
 0x24a   : > { %v4015_v29 = vadd.f32 %v3990_v44, %v3865_v30  ;;  %5675 = vset.pattern.permute.xlu1 %v9097_v41  ;;  %v3716_v22 = vadd.f32 %v3691_v57, %v3566_v14  ;;  %v2622_v31 = vpop.f32.mrf.mxu0  ;;  %v9295_v44 = vld [vmem:[#allocation135_spill] sm:$0xff]  ;;  %v9296_v57 = vld [vmem:[#allocation89_spill] sm:$0xff]  ;;  %v9298_v14 = vld [vmem:[#allocation60_spill] sm:$0xff] }
 0x24b   : > { %2263 = vperm.xlu1 %5675, %v6929_v25   ;;  %v2888_v46 = vrot.slane %v7346_v6, %v6338_v37  ;;  %v3013_v51 = vrot.slane %v7346_v6, %v6344_v4  ;;  %v3163_v15 = vrot.slane %v7346_v6, %v6346_v17  ;;  %v676_v0 = vmul.f32 %v624_v40, %v9295_v44 }
 0x24c   : > { %5466 = vmatmul.mubr.msk.f32.gmra.mxu1 %vm4047_vm2, %v4015_v29  ;;  %v3991_v45 = vmul.f32 %v3909_v32, %v9296_v57  ;;  %v7371_v25 = vadd.f32 %v6947_v20, %v2622_v31  ;;  %v3866_v58 = vadd.f32 %v3841_v2, %v3716_v22  ;;  %v5393_v60 = vpop.f32.mrf.mxu0  ;;  %v3313_v40 = vrot.slane %v7346_v6, %v6357_v8  ;;  %v9301_v22 = vld [vmem:[#allocation11_spill] sm:$0xff] }
 0x24d   : > { %5468 = vmatprep.mubr.msk.f32.mxu1 %vm5863_vm0, %v9125_v13  ;;  %v2967_v30 = vmul.f32 %v2888_v46, %v9297_v61  ;;  %v3092_v63 = vmul.f32 %v3013_v51, %v9298_v14  ;;  %v926_v35 = vadd.f32 %v901_v10, %v676_v0  ;;  %v1151_v29 = vmul.f32 %v1099_v53, %v7356_v52  ;;  %v7382_v31 = vpop.permute.xlu1 %528 }
 0x24e   : > { %v2743_v32 = vmul.f32 %v7371_v25, %v7371_v25  ;;  %9299 = vst [vmem:[#allocation33_spill] sm:$0xff] %v7382_v31  ;;  %v4016_v57 = vadd.f32 %v3991_v45, %v3866_v58  ;;  %v3242_v60 = vmul.f32 %v3163_v15, %v9301_v22  ;;  %v3463_v46 = vrot.slane %v7346_v6, %v6364_v19  ;;  %v9302_v45 = vld [vmem:[#allocation73_spill] sm:$0xff] }
 0x24f   : > { %5676 = vset.pattern.permute.xlu1 %v9300_v9  ;;  %v3117_v2 = vadd.f32 %v3092_v63, %v2967_v30  ;;  %v1599_v51 = vrot.slane %v7325_v48, %v6364_v19  ;;  %v1401_v10 = vmul.f32 %v1349_v55, %v7120_v28  ;;  %v3392_v58 = vmul.f32 %v3313_v40, %v9302_v45  ;;  %v9304_v63 = vld [vmem:[#allocation59_spill] sm:$0xff]  ;;  %v9305_v40 = vld [vmem:[#allocation65_spill] sm:$0xff] }
 0x250   : > { %v2768_v53 = vadd.f32 1.0, %v2743_v32  ;;  %1025 = vperm.xlu1 %5676, %v7303_v47   ;;  %5469 = vmatmul.mubr.msk.f32.gmra.mxu1 %vm4047_vm2, %v4016_v57  ;;  %v3613_v15 = vrot.slane %v7346_v6, %v6378_v39  ;;  %v1176_v61 = vadd.f32 %v1151_v29, %v926_v35  ;;  %v1849_v30 = vrot.slane %v7325_v48, %v6378_v39  ;;  %v5814_v35 = vld [vmem:[%s5943_s20 + $0xa0] sm:$0xff] }
 0x251   : > { %v3267_v0 = vadd.f32 %v3242_v60, %v3117_v2  ;;  %5471 = vmatprep.mubr.msk.f32.mxu1 %vm5863_vm0, %v9125_v13  ;;  %v3542_v32 = vmul.f32 %v3463_v46, %v9304_v63  ;;  %v3763_v57 = vrot.slane %v7346_v6, %v6383_v54  ;;  %v1651_v2 = vmul.f32 %v1599_v51, %v9305_v40  ;;  %v9306_v60 = vld [vmem:[#allocation88_spill] sm:$0xff]  ;;  %v9307_v51 = vld [vmem:[#allocation102_spill] sm:$0xff] }
 0x252   : > { %5717 = vrcp.f32 %v2768_v53  ;;  %v7400_v55 = vpop.permute.xlu1 %759  ;;  %v1426_v22 = vadd.f32 %v1401_v10, %v1176_v61  ;;  %v3692_v53 = vmul.f32 %v3613_v15, %v9306_v60  ;;  %v3913_v45 = vrot.slane %v7346_v6, %v6397_v34 }
 0x253   : > { %9303 = vst [vmem:[#allocation45_spill] sm:$0xff] %v7400_v55  ;;  %v3417_v14 = vadd.f32 %v3392_v58, %v3267_v0  ;;  %v2099_v46 = vrot.slane %v7325_v48, %v6383_v54  ;;  %v1901_v0 = vmul.f32 %v1849_v30, %v7290_v26  ;;  %v3842_v10 = vmul.f32 %v3763_v57, %v9307_v51  ;;  %v9318_v26 = vld [vmem:[#allocation85_spill] sm:$0xff] }
 0x254   : > { %5678 = vset.pattern.permute.xlu1 %v9270_v43  ;;  %v1676_v61 = vadd.f32 %v1651_v2, %v1426_v22 }
 0x255   : > { %2017 = vperm.xlu1 %5678, %v5814_v35   ;;  %v3567_v29 = vadd.f32 %v3542_v32, %v3417_v14  ;;  %v9308_v32 = vld [vmem:[#allocation4_spill] sm:$0xff]  ;;  %v2151_v60 = vmul.f32 %v2099_v46, %v7260_v56 }
 0x256   : > { %v2627_v58 = vpop.f32.mrf.mxu0  ;;  %v3992_v35 = vmul.f32 %v3913_v45, %v9308_v32  ;;  %v1926_v28 = vadd.f32 %v1901_v0, %v1676_v61  ;;  %v7462_v61 = vld [vmem:[%s6331_s27 + $0x88] sm:$0xff] }
 0x257   : > { %v3717_v63 = vadd.f32 %v3692_v53, %v3567_v29  ;;  %v7416_v40 = vadd.f32 %v6947_v20, %v2627_v58  ;;  %v7418_v14 = vpop.permute.xlu1 %1751  ;;  %v7426_v29 = vld [vmem:[%s5943_s20 + $0xb8] sm:$0xff]  ;;  %v2349_v20 = vrot.slane %v7325_v48, %v6397_v34  ;;  %v2718_v48 = vmax.f32 %v7371_v25, 0.0 }
 0x258   : > { %v5396_v15 = vpop.f32.mrf.mxu0  ;;  %v2176_v53 = vadd.f32 %v2151_v60, %v1926_v28  ;;  %v857_v32 = vrot.slane %v7462_v61, %v6344_v4 }
 0x259   : > { %5679 = vset.pattern.permute.xlu1 %v9105_v21  ;;  %v3867_v6 = vadd.f32 %v3842_v10, %v3717_v63  ;;  %v2744_v30 = vmul.f32 %v7416_v40, %v7416_v40  ;;  %v7443_v63 = vld [vmem:[%s6331_s27 + $0x80] sm:$0xff] }
 0x25a   : > { %553 = vperm.xlu1 %5679, %v7426_v29   ;;  %v628_v15 = vrot.slane %v7443_v63, %v6338_v37 }
 0x25b   : > { %v4017_v57 = vadd.f32 %v3992_v35, %v3867_v6  ;;  %v2769_v2 = vadd.f32 1.0, %v2744_v30  ;;  %v853_v6 = vrot.slane %v7443_v63, %v6344_v4  ;;  %v9312_v35 = vld [vmem:[#allocation34_spill] sm:$0xff]  ;;  %v9313_v30 = vld [vmem:[#allocation71_spill] sm:$0xff] }
 0x25c   : > { %v7432_v22 = vpop.permute.xlu1 %2247 }
 0x25d   : > { %5472 = vmatmul.mubr.msk.f32.gmra.mxu1 %vm4047_vm2, %v4017_v57  ;;  %9309 = vst [vmem:[#allocation25_spill] sm:$0xff] %v7432_v22  ;;  %5719 = vrcp.f32 %v2769_v2  ;;  %v2401_v45 = vmul.f32 %v2349_v20, %v7432_v22  ;;  %v1103_v2 = vrot.slane %v7443_v63, %v6346_v17 }
 0x25e   : > { %5681 = vset.pattern.permute.xlu1 %v9285_v7  ;;  %5474 = vmatprep.mubr.msk.f32.mxu1 %vm5863_vm0, %v9125_v13 }
 0x25f   : > { %v5718_v46 = vpop.eup %5717  ;;  %1275 = vperm.xlu1 %5681, %v7303_v47   ;;  %v7440_v58 = vadd.f32 %v2401_v45, %v2176_v53 }
 0x260   : > { %v2818_v0 = vmul.f32 2.0, %v5718_v46  ;;  %v9315_v46 = vld [vmem:[#allocation78_spill] sm:$0xff] }
 0x261   : > { %9310 = vst [vmem:[#allocation27_spill] sm:$0xff] %v7440_v58  ;;  %5416 = vmatmul.mubr.msk.f32.gmra.mxu0 %vm2445_vm1, %v7440_v58  ;;  %v7449_v28 = vpop.permute.xlu1 %1505  ;;  %v9316_v58 = vld [vmem:[#allocation38_spill] sm:$0xff] }
 0x262   : > { %v7445_v51 = vsub.f32 %v2718_v48, %v2818_v0  ;;  %9311 = vst [vmem:[#allocation9_spill] sm:$0xff] %v7449_v28  ;;  %5418 = vmatprep.mubr.msk.f32.mxu0 %vm5863_vm0, %v9125_v13 }
 0x263   : > { %5682 = vset.pattern.permute.xlu1 %v9111_v49 }
 0x264   : > { %1771 = vperm.xlu1 %5682, %v7132_v23   ;;  %v2892_v7 = vrot.slane %v7445_v51, %v6338_v37  ;;  %v3017_v25 = vrot.slane %v7445_v51, %v6344_v4  ;;  %v3167_v10 = vrot.slane %v7445_v51, %v6346_v17  ;;  %v3317_v57 = vrot.slane %v7445_v51, %v6357_v8 }
 0x265   : > { %v3467_v0 = vrot.slane %v7445_v51, %v6364_v19 }
 0x266   : > { %v2968_v60 = vmul.f32 %v2892_v7, %v9312_v35  ;;  %v3093_v20 = vmul.f32 %v3017_v25, %v9313_v30  ;;  %v7476_v53 = vpop.permute.xlu1 %2001  ;;  %v3243_v48 = vmul.f32 %v3167_v10, %v9315_v46  ;;  %v677_v7 = vmul.f32 %v628_v15, %v9316_v58  ;;  %v9317_v30 = vld [vmem:[#allocation81_spill] sm:$0xff] }
 0x267   : > { %9314 = vst [vmem:[#allocation44_spill] sm:$0xff] %v7476_v53  ;;  %v902_v25 = vmul.f32 %v853_v6, %v7091_v33  ;;  %v1353_v35 = vrot.slane %v7443_v63, %v6357_v8  ;;  %v903_v22 = vmul.f32 %v857_v32, %v9317_v30  ;;  %v3617_v10 = vrot.slane %v7445_v51, %v6378_v39 }
 0x268   : > { %5684 = vset.pattern.permute.xlu1 %v9300_v9  ;;  %v3118_v45 = vadd.f32 %v3093_v20, %v2968_v60  ;;  %v3393_v9 = vmul.f32 %v3317_v57, %v9318_v26  ;;  %v1152_v20 = vmul.f32 %v1103_v2, %v7179_v5  ;;  %v632_v15 = vrot.slane %v7462_v61, %v6338_v37  ;;  %v9320_v57 = vld [vmem:[#allocation94_spill] sm:$0xff] }
 0x269   : > { %1029 = vperm.xlu1 %5684, %v7426_v29   ;;  %v1603_v6 = vrot.slane %v7443_v63, %v6364_v19  ;;  %v3767_v46 = vrot.slane %v7445_v51, %v6383_v54  ;;  %v2719_v32 = vmax.f32 %v7416_v40, 0.0  ;;  %v3543_v30 = vmul.f32 %v3467_v0, %v9320_v57  ;;  %v9321_v0 = vld [vmem:[#allocation101_spill] sm:$0xff] }
 0x26a   : > { %v3268_v56 = vadd.f32 %v3243_v48, %v3118_v45  ;;  %v5720_v60 = vpop.eup %5719  ;;  %v927_v33 = vadd.f32 %v902_v25, %v677_v7  ;;  %v1402_v2 = vmul.f32 %v1353_v35, %v7265_v16  ;;  %v1853_v5 = vrot.slane %v7443_v63, %v6378_v39  ;;  %v9322_v57 = vld [vmem:[#allocation105_spill] sm:$0xff] }
 0x26b   : > { %v2819_v45 = vmul.f32 2.0, %v5720_v60  ;;  %v7499_v48 = vpop.permute.xlu1 %763  ;;  %v3917_v58 = vrot.slane %v7445_v51, %v6397_v34  ;;  %v1107_v40 = vrot.slane %v7462_v61, %v6346_v17  ;;  %v3693_v7 = vmul.f32 %v3617_v10, %v9321_v0 }
 0x26c   : > { %9319 = vst [vmem:[#allocation39_spill] sm:$0xff] %v7499_v48  ;;  %v3418_v26 = vadd.f32 %v3393_v9, %v3268_v56  ;;  %v1177_v25 = vadd.f32 %v1152_v20, %v927_v33  ;;  %v1652_v35 = vmul.f32 %v1603_v6, %v7349_v24  ;;  %v2103_v9 = vrot.slane %v7443_v63, %v6383_v54 }
 0x26d   : > { %5685 = vset.pattern.permute.xlu1 %v9116_v18  ;;  %v7510_v60 = vsub.f32 %v2719_v32, %v2819_v45  ;;  %v3843_v16 = vmul.f32 %v3767_v46, %v9322_v57  ;;  %v678_v33 = vmul.f32 %v632_v15, %v7238_v27  ;;  %v1902_v20 = vmul.f32 %v1853_v5, %v7418_v14  ;;  %v9324_v45 = vld [vmem:[#allocation13_spill] sm:$0xff]  ;;  %v7537_v5 = vld [vmem:[%s5943_s20 + $0xc0] sm:$0xff] }
 0x26e   : > { %1525 = vperm.xlu1 %5685, %v7303_v47   ;;  %v3568_v56 = vadd.f32 %v3543_v30, %v3418_v26  ;;  %v1427_v10 = vadd.f32 %v1402_v2, %v1177_v25  ;;  %v3993_v46 = vmul.f32 %v3917_v58, %v9324_v45  ;;  %v1153_v44 = vmul.f32 %v1107_v40, %v7322_v12  ;;  %v9327_v58 = vld [vmem:[#allocation90_spill] sm:$0xff]  ;;  %v9329_v45 = vld [vmem:[#allocation23_spill] sm:$0xff] }
 0x26f   : > { %v2896_v51 = vrot.slane %v7510_v60, %v6338_v37  ;;  %v3021_v32 = vrot.slane %v7510_v60, %v6344_v4  ;;  %v3171_v30 = vrot.slane %v7510_v60, %v6346_v17  ;;  %v3321_v24 = vrot.slane %v7510_v60, %v6357_v8  ;;  %v9404_v27 = vld [vmem:[#allocation3_spill] sm:$0xff] }
 0x270   : > { %v3718_v52 = vadd.f32 %v3693_v7, %v3568_v56  ;;  %v7526_v6 = vpop.permute.xlu1 %1259  ;;  %v9325_v56 = vld [vmem:[#allocation84_spill] sm:$0xff]  ;;  %v9326_v7 = vld [vmem:[#allocation74_spill] sm:$0xff]  ;;  %v1677_v15 = vadd.f32 %v1652_v35, %v1427_v10  ;;  %v2152_v2 = vmul.f32 %v2103_v9, %v7476_v53  ;;  %v1357_v40 = vrot.slane %v7462_v61, %v6357_v8 }
 0x271   : > { %9323 = vst [vmem:[#allocation57_spill] sm:$0xff] %v7526_v6  ;;  %v2969_v0 = vmul.f32 %v2896_v51, %v9325_v56  ;;  %v3094_v57 = vmul.f32 %v3021_v32, %v9326_v7  ;;  %v3244_v25 = vmul.f32 %v3171_v30, %v9327_v58  ;;  %v3471_v51 = vrot.slane %v7510_v60, %v6364_v19  ;;  %v9331_v7 = vld [vmem:[#allocation28_spill] sm:$0xff] }
 0x272   : > { %5687 = vset.pattern.permute.xlu1 %v9105_v21  ;;  %v3868_v26 = vadd.f32 %v3843_v16, %v3718_v52  ;;  %v2353_v21 = vrot.slane %v7443_v63, %v6397_v34  ;;  %v928_v35 = vadd.f32 %v903_v22, %v678_v33  ;;  %v1927_v32 = vadd.f32 %v1902_v20, %v1677_v15  ;;  %v9330_v33 = vld [vmem:[#allocation104_spill] sm:$0xff] }
 0x273   : > { %558 = vperm.xlu1 %5687, %v7537_v5   ;;  %v3119_v52 = vadd.f32 %v3094_v57, %v2969_v0  ;;  %v1607_v9 = vrot.slane %v7462_v61, %v6364_v19  ;;  %v3621_v30 = vrot.slane %v7510_v60, %v6378_v39  ;;  %v3544_v20 = vmul.f32 %v3471_v51, %v9330_v33 }
 0x274   : > { %v4018_v16 = vadd.f32 %v3993_v46, %v3868_v26  ;;  %v3394_v46 = vmul.f32 %v3321_v24, %v9329_v45  ;;  %v1178_v26 = vadd.f32 %v1153_v44, %v928_v35  ;;  %v2177_v56 = vadd.f32 %v2152_v2, %v1927_v32  ;;  %v9336_v45 = vld [vmem:[#allocation91_spill] sm:$0xff] }
 0x275   : > { %v7550_v10 = vpop.permute.xlu1 %2251  ;;  %v3269_v63 = vadd.f32 %v3244_v25, %v3119_v52  ;;  %v3771_v24 = vrot.slane %v7510_v60, %v6383_v54  ;;  %v1403_v57 = vmul.f32 %v1357_v40, %v9331_v7  ;;  %v1653_v44 = vmul.f32 %v1607_v9, %v7449_v28  ;;  %v9335_v40 = vld [vmem:[#allocation110_spill] sm:$0xff]  ;;  %v9373_v28 = vld [vmem:[#allocation119_spill] sm:$0xff] }
 0x276   : > { %5475 = vmatmul.mubr.msk.f32.gmra.mxu1 %vm4047_vm2, %v4018_v16  ;;  %9328 = vst [vmem:[#allocation86_spill] sm:$0xff] %v7550_v10  ;;  %v2402_v0 = vmul.f32 %v2353_v21, %v7550_v10  ;;  %v9333_v21 = vld [vmem:[#allocation48_spill] sm:$0xff]  ;;  %v3921_v16 = vrot.slane %v7510_v60, %v6397_v34  ;;  %v1857_v52 = vrot.slane %v7462_v61, %v6378_v39 }
 0x277   : > { %5688 = vset.pattern.permute.xlu1 %v9089_v11  ;;  %5477 = vmatprep.mubr.msk.f32.mxu1 %vm5863_vm0, %v9125_v13  ;;  %v3419_v22 = vadd.f32 %v3394_v46, %v3269_v63  ;;  %v3694_v11 = vmul.f32 %v3621_v30, %v9333_v21  ;;  %v1428_v58 = vadd.f32 %v1403_v57, %v1178_v26  ;;  %v9337_v30 = vld [vmem:[#allocation54_spill] sm:$0xff] }
 0x278   : > { %783 = vperm.xlu1 %5688, %v7537_v5   ;;  %v7565_v15 = vadd.f32 %v2402_v0, %v2177_v56  ;;  %v3844_v35 = vmul.f32 %v3771_v24, %v9335_v40  ;;  %v2357_v60 = vrot.slane %v7462_v61, %v6397_v34  ;;  %v2107_v9 = vrot.slane %v7462_v61, %v6383_v54  ;;  %v7623_v40 = vld [vmem:[%s6331_s27 + $0x90] sm:$0xff] }
 0x279   : > { %v3569_v2 = vadd.f32 %v3544_v20, %v3419_v22  ;;  %v1678_v32 = vadd.f32 %v1653_v44, %v1428_v58  ;;  %v3994_v46 = vmul.f32 %v3921_v16, %v9336_v45  ;;  %v1903_v26 = vmul.f32 %v1857_v52, %v9337_v30  ;;  %v9339_v22 = vld [vmem:[#allocation98_spill] sm:$0xff] }
 0x27a   : > { %9332 = vst [vmem:[#allocation51_spill] sm:$0xff] %v7565_v15  ;;  %5419 = vmatmul.mubr.msk.f32.gmra.mxu0 %vm2445_vm1, %v7565_v15  ;;  %v7574_v25 = vpop.permute.xlu1 %1013  ;;  %v2403_v33 = vmul.f32 %v2357_v60, %v9339_v22  ;;  %v7597_v44 = vld [vmem:[%s8804_s3] ss:$0 sm:$0xff]  ;;  %v861_v60 = vrot.slane %v7623_v40, %v6344_v4 }
 0x27b   : > { %9334 = vst [vmem:[#allocation32_spill] sm:$0xff] %v7574_v25  ;;  %v3719_v51 = vadd.f32 %v3694_v11, %v3569_v2  ;;  %5421 = vmatprep.mubr.msk.f32.mxu0 %vm5863_vm0, %v9125_v13  ;;  %v1928_v20 = vadd.f32 %v1903_v26, %v1678_v32 }
 0x27c   : > { %5689 = vset.pattern.permute.xlu1 %v9111_v49  ;;  %v904_v26 = vmul.f32 %v861_v60, %v7400_v55  ;;  %v9348_v60 = vld [vmem:[#allocation99_spill] sm:$0xff] }
 0x27d   : > { %1775 = vperm.xlu1 %5689, %v7303_v47   ;;  %v3869_v63 = vadd.f32 %v3844_v35, %v3719_v51 }
 0x27f   : > { %v7587_v56 = vpop.permute.xlu1 %2005  ;;  %v4019_v0 = vadd.f32 %v3994_v46, %v3869_v63  ;;  %v636_v63 = vrot.slane %v7623_v40, %v6338_v37 }
 0x280   : > { %9338 = vst [vmem:[#allocation7_spill] sm:$0xff] %v7587_v56  ;;  %v2153_v24 = vmul.f32 %v2107_v9, %v7587_v56 }
 0x281   : > { %5690 = vset.pattern.permute.xlu1 %v9097_v41  ;;  %v2632_v57 = vpop.f32.mrf.mxu0  ;;  %5478 = vmatmul.mubr.msk.f32.gmra.mxu1 %vm4047_vm2, %v4019_v0  ;;  %v1111_v0 = vrot.slane %v7623_v40, %v6346_v17 }
 0x282   : > { %2271 = vperm.xlu1 %5690, %v7132_v23   ;;  %v2178_v61 = vadd.f32 %v2153_v24, %v1928_v20  ;;  %v2633_v2 = vadd.f32 %v7597_v44, %v2632_v57  ;;  %5480 = vmatprep.mubr.msk.f32.mxu1 %vm5863_vm0, %v9125_v13 }
 0x283   : > { %v5399_v21 = vpop.f32.mrf.mxu0 }
 0x284   : > { %v7602_v11 = vadd.f32 %v2403_v33, %v2178_v61  ;;  %v2745_v16 = vmul.f32 %v2633_v2, %v2633_v2  ;;  %v7604_v52 = vpop.permute.xlu1 %538  ;;  %v2720_v32 = vmax.f32 %v2633_v2, 0.0  ;;  %v7637_v33 = vpop.permute.xlu0 %1009  ;;  %v679_v61 = vmul.f32 %v636_v63, %v7382_v31 }
 0x285   : > { %9341 = vst [vmem:[#allocation64_spill] sm:$0xff] %v7604_v52  ;;  %9346 = vst [vmem:[#allocation55_spill] sm:$0xff] %v7637_v33  ;;  %v1361_v2 = vrot.slane %v7623_v40, %v6357_v8 }
 0x286   : > { %9340 = vst [vmem:[#allocation36_spill] sm:$0xff] %v7602_v11  ;;  %5692 = vset.pattern.permute.xlu1 %v9116_v18  ;;  %v2770_v23 = vadd.f32 1.0, %v2745_v16  ;;  %5422 = vmatmul.mubr.msk.f32.gmra.mxu0 %vm2445_vm1, %v7602_v11  ;;  %v1154_v11 = vmul.f32 %v1111_v0, %v7637_v33 }
 0x287   : > { %1529 = vperm.xlu1 %5692, %v7426_v29   ;;  %5424 = vmatprep.mubr.msk.f32.mxu0 %vm5863_vm0, %v9125_v13 }
 0x288   : > { %5721 = vrcp.f32 %v2770_v23  ;;  %v9347_v23 = vld [vmem:[#allocation97_spill] sm:$0xff] }
 0x289   : > { %v7612_v58 = vpop.permute.xlu1 %1263 }
 0x28a   : > { %9342 = vst [vmem:[#allocation42_spill] sm:$0xff] %v7612_v58 }
 0x28b   : > { %5693 = vset.pattern.permute.xlu1 %v9270_v43 }
 0x28c   : > { %2025 = vperm.xlu1 %5693, %v7303_v47  }
 0x28e   : > { %v7616_v51 = vpop.permute.xlu1 %1759 }
 0x28f   : > { %9343 = vst [vmem:[#allocation49_spill] sm:$0xff] %v7616_v51 }
 0x290   : > { %5694 = vset.pattern.permute.xlu1 %v9111_v49 }
 0x291   : > { %1779 = vperm.xlu1 %5694, %v7426_v29  }
 0x293   : > { %v7620_v18 = vpop.permute.xlu1 %1017 }
 0x294   : > { %9344 = vst [vmem:[#allocation46_spill] sm:$0xff] %v7620_v18 }
 0x295   : > { %5695 = vset.pattern.permute.xlu1 %v9097_v41  ;;  %v5722_v35 = vpop.eup %5721 }
 0x296   : > { %2275 = vperm.xlu1 %5695, %v7303_v47   ;;  %v2820_v9 = vmul.f32 2.0, %v5722_v35 }
 0x298   : > { %v2845_v45 = vsub.f32 %v2720_v32, %v2820_v9  ;;  %v7631_v46 = vpop.permute.xlu1 %1513  ;;  %v929_v9 = vadd.f32 %v904_v26, %v679_v61  ;;  %v9351_v61 = vld [vmem:[#allocation107_spill] sm:$0xff] }
 0x299   : > { %9345 = vst [vmem:[#allocation72_spill] sm:$0xff] %v7631_v46 }
 0x29a   : > { %5697 = vset.pattern.permute.xlu1 %v9270_v43  ;;  %v2637_v20 = vpop.f32.mrf.mxu0  ;;  %v2900_v47 = vrot.slane %v2845_v45, %v6338_v37  ;;  %v3025_v24 = vrot.slane %v2845_v45, %v6344_v4  ;;  %v3175_v57 = vrot.slane %v2845_v45, %v6346_v17  ;;  %v1179_v33 = vadd.f32 %v1154_v11, %v929_v9 }
 0x29b   : > { %2029 = vperm.xlu1 %5697, %v7426_v29   ;;  %v7647_v21 = vadd.f32 %v7597_v44, %v2637_v20  ;;  %v3325_v29 = vrot.slane %v2845_v45, %v6357_v8  ;;  %v9350_v20 = vld [vmem:[#allocation14_spill] sm:$0xff]  ;;  %v2111_v9 = vrot.slane %v7623_v40, %v6383_v54 }
 0x29c   : > { %v5402_v16 = vpop.f32.mrf.mxu0  ;;  %v2970_v35 = vmul.f32 %v2900_v47, %v9347_v23  ;;  %v3095_v32 = vmul.f32 %v3025_v24, %v9348_v60  ;;  %v3245_v31 = vmul.f32 %v3175_v57, %v9350_v20  ;;  %v1611_v47 = vrot.slane %v7623_v40, %v6364_v19 }
 0x29d   : > { %v2746_v15 = vmul.f32 %v7647_v21, %v7647_v21  ;;  %v7655_v63 = vpop.permute.xlu1 %543  ;;  %v3475_v16 = vrot.slane %v2845_v45, %v6364_v19  ;;  %v1404_v24 = vmul.f32 %v1361_v2, %v7526_v6  ;;  %v3395_v23 = vmul.f32 %v3325_v29, %v9351_v61  ;;  %v9356_v61 = vld [vmem:[#allocation118_spill] sm:$0xff] }
 0x29e   : > { %9349 = vst [vmem:[#allocation53_spill] sm:$0xff] %v7655_v63  ;;  %v3120_v55 = vadd.f32 %v3095_v32, %v2970_v35  ;;  %v3625_v60 = vrot.slane %v2845_v45, %v6378_v39  ;;  %v9353_v32 = vld [vmem:[#allocation61_spill] sm:$0xff]  ;;  %v3775_v2 = vrot.slane %v2845_v45, %v6383_v54  ;;  %v3925_v29 = vrot.slane %v2845_v45, %v6397_v34  ;;  %v9358_v45 = vld [vmem:[#allocation120_spill] sm:$0xff] }
 0x29f   : > { %5698 = vset.pattern.permute.xlu1 %v9111_v49  ;;  %v2771_v26 = vadd.f32 1.0, %v2746_v15  ;;  %v1861_v49 = vrot.slane %v7623_v40, %v6378_v39  ;;  %v3545_v20 = vmul.f32 %v3475_v16, %v9353_v32  ;;  %v9354_v15 = vld [vmem:[#allocation67_spill] sm:$0xff]  ;;  %v1429_v22 = vadd.f32 %v1404_v24, %v1179_v33 }
 0x2a0   : > { %1783 = vperm.xlu1 %5698, %v7537_v5   ;;  %v3270_v0 = vadd.f32 %v3245_v31, %v3120_v55  ;;  %v1654_v6 = vmul.f32 %v1611_v47, %v9354_v15  ;;  %v9355_v55 = vld [vmem:[#allocation114_spill] sm:$0xff]  ;;  %v2154_v32 = vmul.f32 %v2111_v9, %v7288_v1 }
 0x2a1   : > { %5723 = vrcp.f32 %v2771_v26  ;;  %v3695_v11 = vmul.f32 %v3625_v60, %v9355_v55  ;;  %v1904_v26 = vmul.f32 %v1861_v49, %v7616_v51  ;;  %v9369_v51 = vld [vmem:[#allocation113_spill] sm:$0xff] }
 0x2a2   : > { %v7668_v57 = vpop.permute.xlu1 %771  ;;  %v3420_v35 = vadd.f32 %v3395_v23, %v3270_v0  ;;  %v3845_v23 = vmul.f32 %v3775_v2, %v9356_v61  ;;  %v1679_v47 = vadd.f32 %v1654_v6, %v1429_v22  ;;  %v2361_v6 = vrot.slane %v7623_v40, %v6397_v34  ;;  %v7704_v40 = vld [vmem:[%s6331_s27 + $0x98] sm:$0xff] }
 0x2a3   : > { %9352 = vst [vmem:[#allocation62_spill] sm:$0xff] %v7668_v57 }
 0x2a4   : > { %5700 = vset.pattern.permute.xlu1 %v9270_v43  ;;  %v3570_v31 = vadd.f32 %v3545_v20, %v3420_v35  ;;  %v3995_v35 = vmul.f32 %v3925_v29, %v9358_v45  ;;  %v1929_v20 = vadd.f32 %v1904_v26, %v1679_v47  ;;  %v640_v47 = vrot.slane %v7704_v40, %v6338_v37  ;;  %v9362_v45 = vld [vmem:[#allocation35_spill] sm:$0xff] }
 0x2a5   : > { %2033 = vperm.xlu1 %5700, %v7537_v5  }
 0x2a6   : > { %v2642_v16 = vpop.f32.mrf.mxu0  ;;  %v3720_v0 = vadd.f32 %v3695_v11, %v3570_v31  ;;  %v2179_v31 = vadd.f32 %v2154_v32, %v1929_v20  ;;  %v9363_v32 = vld [vmem:[#allocation106_spill] sm:$0xff] }
 0x2a7   : > { %v7682_v33 = vadd.f32 %v7597_v44, %v2642_v16  ;;  %v7684_v43 = vpop.permute.xlu1 %1763 }
 0x2a8   : > { %9357 = vst [vmem:[#allocation21_spill] sm:$0xff] %v7684_v43  ;;  %v5405_v24 = vpop.f32.mrf.mxu0  ;;  %v3870_v60 = vadd.f32 %v3845_v23, %v3720_v0  ;;  %v7713_v0 = vld [vmem:[%s6331_s27 + $0xa0] sm:$0xff] }
 0x2a9   : > { %5701 = vset.pattern.permute.xlu1 %v9097_v41  ;;  %v2747_v49 = vmul.f32 %v7682_v33, %v7682_v33  ;;  %v869_v24 = vrot.slane %v7713_v0, %v6344_v4  ;;  %v1369_v30 = vrot.slane %v7713_v0, %v6357_v8 }
 0x2aa   : > { %2283 = vperm.xlu1 %5701, %v7537_v5   ;;  %v4020_v22 = vadd.f32 %v3995_v35, %v3870_v60  ;;  %v2721_v5 = vmax.f32 %v7647_v21, 0.0  ;;  %v865_v60 = vrot.slane %v7704_v40, %v6344_v4 }
 0x2ab   : > { %v2772_v2 = vadd.f32 1.0, %v2747_v49 }
 0x2ac   : > { %5481 = vmatmul.mubr.msk.f32.gmra.mxu1 %vm4047_vm2, %v4020_v22  ;;  %v7695_v41 = vpop.permute.xlu1 %2259 }
 0x2ad   : > { %9359 = vst [vmem:[#allocation69_spill] sm:$0xff] %v7695_v41  ;;  %5725 = vrcp.f32 %v2772_v2  ;;  %v2404_v55 = vmul.f32 %v2361_v6, %v7695_v41  ;;  %5483 = vmatprep.mubr.msk.f32.mxu1 %vm5863_vm0, %v9125_v13  ;;  %v1115_v6 = vrot.slane %v7704_v40, %v6346_v17  ;;  %v7731_v2 = vpop.permute.xlu0 %1021  ;;  %v9368_v41 = vld [vmem:[#allocation83_spill] sm:$0xff] }
 0x2ae   : > { %v5724_v11 = vpop.eup %5723  ;;  %9365 = vst [vmem:[#allocation82_spill] sm:$0xff] %v7731_v2 }
 0x2af   : > { %v2821_v29 = vmul.f32 2.0, %v5724_v11  ;;  %v7701_v9 = vadd.f32 %v2404_v55, %v2179_v31  ;;  %v9366_v55 = vld [vmem:[#allocation109_spill] sm:$0xff] }
 0x2b1   : > { %9360 = vst [vmem:[#allocation66_spill] sm:$0xff] %v7701_v9  ;;  %v2846_v26 = vsub.f32 %v2721_v5, %v2821_v29  ;;  %5425 = vmatmul.mubr.msk.f32.gmra.mxu0 %vm2445_vm1, %v7701_v9  ;;  %v7708_v16 = vpop.permute.xlu1 %1517  ;;  %v9367_v29 = vld [vmem:[#allocation40_spill] sm:$0xff]  ;;  %v7758_v56 = vpop.permute.xlu0 %1033 }
 0x2b2   : > { %9361 = vst [vmem:[#allocation75_spill] sm:$0xff] %v7708_v16  ;;  %5427 = vmatprep.mubr.msk.f32.mxu0 %vm5863_vm0, %v9125_v13  ;;  %v680_v9 = vmul.f32 %v640_v47, %v9367_v29  ;;  %v1119_v47 = vrot.slane %v7713_v0, %v6346_v17  ;;  %9372 = vst [vmem:[#allocation58_spill] sm:$0xff] %v7758_v56 }
 0x2b3   : > { %v2904_v61 = vrot.slane %v2846_v26, %v6338_v37  ;;  %v3029_v21 = vrot.slane %v2846_v26, %v6344_v4  ;;  %v3179_v23 = vrot.slane %v2846_v26, %v6346_v17  ;;  %v3329_v49 = vrot.slane %v2846_v26, %v6357_v8 }
 0x2b4   : > { %v3479_v5 = vrot.slane %v2846_v26, %v6364_v19 }
 0x2b5   : > { %v2971_v35 = vmul.f32 %v2904_v61, %v9362_v45  ;;  %v3096_v20 = vmul.f32 %v3029_v21, %v9363_v32  ;;  %v3246_v11 = vmul.f32 %v3179_v23, %v9366_v55  ;;  %v906_v61 = vmul.f32 %v869_v24, %v9368_v41 }
 0x2b6   : > { %v905_v21 = vmul.f32 %v865_v60, %v7499_v48  ;;  %v1365_v45 = vrot.slane %v7704_v40, %v6357_v8  ;;  %v644_v32 = vrot.slane %v7713_v0, %v6338_v37  ;;  %v3396_v15 = vmul.f32 %v3329_v49, %v9369_v51  ;;  %v9371_v51 = vld [vmem:[#allocation115_spill] sm:$0xff] }
 0x2b7   : > { %v7729_v22 = vpop.permute.xlu1 %2013  ;;  %v3121_v31 = vadd.f32 %v3096_v20, %v2971_v35  ;;  %v3629_v35 = vrot.slane %v2846_v26, %v6378_v39  ;;  %v1155_v20 = vmul.f32 %v1115_v6, %v7574_v25  ;;  %v1615_v24 = vrot.slane %v7704_v40, %v6364_v19 }
 0x2b8   : > { %9364 = vst [vmem:[#allocation47_spill] sm:$0xff] %v7729_v22  ;;  %v3779_v60 = vrot.slane %v2846_v26, %v6383_v54  ;;  %v2722_v55 = vmax.f32 %v7682_v33, 0.0  ;;  %v3546_v49 = vmul.f32 %v3479_v5, %v9371_v51  ;;  %v1405_v29 = vmul.f32 %v1365_v45, %v7612_v58  ;;  %v9374_v5 = vld [vmem:[#allocation123_spill] sm:$0xff] }
 0x2b9   : > { %v3271_v1 = vadd.f32 %v3246_v11, %v3121_v31  ;;  %v930_v11 = vadd.f32 %v905_v21, %v680_v9  ;;  %v1865_v6 = vrot.slane %v7704_v40, %v6378_v39  ;;  %v3929_v25 = vrot.slane %v2846_v26, %v6397_v34 }
 0x2ba   : > { %v5726_v23 = vpop.eup %5725  ;;  %v3696_v7 = vmul.f32 %v3629_v35, %v9373_v28  ;;  %v2115_v9 = vrot.slane %v7704_v40, %v6383_v54  ;;  %v3846_v21 = vmul.f32 %v3779_v60, %v9374_v5  ;;  %v9378_v60 = vld [vmem:[#allocation76_spill] sm:$0xff]  ;;  %v1156_v5 = vmul.f32 %v1119_v47, %v7620_v18 }
 0x2bb   : > { %v2822_v41 = vmul.f32 2.0, %v5726_v23  ;;  %v3421_v31 = vadd.f32 %v3396_v15, %v3271_v1  ;;  %v1180_v1 = vadd.f32 %v1155_v20, %v930_v11  ;;  %v1655_v15 = vmul.f32 %v1615_v24, %v7631_v46  ;;  %v9376_v20 = vld [vmem:[#allocation126_spill] sm:$0xff] }
 0x2bc   : > { %v7751_v48 = vpop.permute.xlu1 %775  ;;  %v1905_v28 = vmul.f32 %v1865_v6, %v7684_v43  ;;  %v3996_v24 = vmul.f32 %v3929_v25, %v9376_v20  ;;  %v2155_v12 = vmul.f32 %v2115_v9, %v7729_v22  ;;  %v9380_v25 = vld [vmem:[#allocation30_spill] sm:$0xff]  ;;  %v1619_v20 = vrot.slane %v7713_v0, %v6364_v19  ;;  %v9382_v9 = vld [vmem:[#allocation24_spill] sm:$0xff] }
 0x2bd   : > { %9370 = vst [vmem:[#allocation89_spill] sm:$0xff] %v7751_v48  ;;  %v2847_v33 = vsub.f32 %v2722_v55, %v2822_v41  ;;  %v3571_v23 = vadd.f32 %v3546_v49, %v3421_v31  ;;  %v681_v41 = vmul.f32 %v644_v32, %v7604_v52  ;;  %v1430_v55 = vadd.f32 %v1405_v29, %v1180_v1  ;;  %v9377_v49 = vld [vmem:[#allocation111_spill] sm:$0xff]  ;;  %v7782_v32 = vpop.permute.xlu0 %1267  ;;  %v9402_v52 = vld [vmem:[#allocation41_spill] sm:$0xff]  ;;  %v9403_v22 = vld [vmem:[#allocation68_spill] sm:$0xff] }
 0x2be   : > { %v2365_v29 = vrot.slane %v7704_v40, %v6397_v34  ;;  %9379 = vst [vmem:[#allocation11_spill] sm:$0xff] %v7782_v32 }
 0x2bf   : > { %v3721_v45 = vadd.f32 %v3696_v7, %v3571_v23  ;;  %v2908_v26 = vrot.slane %v2847_v33, %v6338_v37  ;;  %v3033_v51 = vrot.slane %v2847_v33, %v6344_v4  ;;  %v3183_v58 = vrot.slane %v2847_v33, %v6346_v17 }
 0x2c0   : > { %v3333_v23 = vrot.slane %v2847_v33, %v6357_v8  ;;  %v1680_v46 = vadd.f32 %v1655_v15, %v1430_v55  ;;  %v3633_v55 = vrot.slane %v2847_v33, %v6378_v39 }
 0x2c1   : > { %v7772_v35 = vpop.permute.xlu1 %1271  ;;  %v3871_v31 = vadd.f32 %v3846_v21, %v3721_v45  ;;  %v2972_v11 = vmul.f32 %v2908_v26, %v9377_v49  ;;  %v3097_v7 = vmul.f32 %v3033_v51, %v9378_v60  ;;  %v3247_v21 = vmul.f32 %v3183_v58, %v9380_v25  ;;  %v9387_v25 = vld [vmem:[#allocation129_spill] sm:$0xff] }
 0x2c2   : > { %9375 = vst [vmem:[#allocation60_spill] sm:$0xff] %v7772_v35  ;;  %v3483_v45 = vrot.slane %v2847_v33, %v6364_v19  ;;  %v931_v26 = vadd.f32 %v906_v61, %v681_v41  ;;  %v1930_v51 = vadd.f32 %v1905_v28, %v1680_v46  ;;  %v3397_v40 = vmul.f32 %v3333_v23, %v9382_v9  ;;  %v9383_v61 = vld [vmem:[#allocation122_spill] sm:$0xff] }
 0x2c3   : > { %v4021_v6 = vadd.f32 %v3996_v24, %v3871_v31  ;;  %v3122_v1 = vadd.f32 %v3097_v7, %v2972_v11  ;;  %v1406_v31 = vmul.f32 %v1369_v30, %v7782_v32  ;;  %v3783_v28 = vrot.slane %v2847_v33, %v6383_v54  ;;  %v9385_v23 = vld [vmem:[#allocation50_spill] sm:$0xff] }
 0x2c4   : > { %v1181_v24 = vadd.f32 %v1156_v5, %v931_v26  ;;  %v2180_v58 = vadd.f32 %v2155_v12, %v1930_v51  ;;  %v3547_v41 = vmul.f32 %v3483_v45, %v9383_v61  ;;  %v1656_v11 = vmul.f32 %v1619_v20, %v7708_v16  ;;  %v9388_v51 = vld [vmem:[#allocation93_spill] sm:$0xff] }
 0x2c5   : > { %5484 = vmatmul.mubr.msk.f32.gmra.mxu1 %vm4047_vm2, %v4021_v6  ;;  %v3272_v15 = vadd.f32 %v3247_v21, %v3122_v1  ;;  %v3697_v5 = vmul.f32 %v3633_v55, %v9385_v23  ;;  %v3933_v30 = vrot.slane %v2847_v33, %v6397_v34  ;;  %v1869_v12 = vrot.slane %v7713_v0, %v6378_v39 }
 0x2c6   : > { %v7789_v47 = vpop.permute.xlu1 %2263  ;;  %5486 = vmatprep.mubr.msk.f32.mxu1 %vm5863_vm0, %v9125_v13  ;;  %v3847_v21 = vmul.f32 %v3783_v28, %v9387_v25  ;;  %v2119_v26 = vrot.slane %v7713_v0, %v6383_v54 }
 0x2c7   : > { %9381 = vst [vmem:[#allocation73_spill] sm:$0xff] %v7789_v47  ;;  %v2405_v49 = vmul.f32 %v2365_v29, %v7789_v47  ;;  %v3422_v46 = vadd.f32 %v3397_v40, %v3272_v15  ;;  %v1431_v29 = vadd.f32 %v1406_v31, %v1181_v24  ;;  %v3997_v20 = vmul.f32 %v3933_v30, %v9388_v51  ;;  %v9389_v15 = vld [vmem:[#allocation56_spill] sm:$0xff] }
 0x2c8   : > { %v1906_v9 = vmul.f32 %v1869_v12, %v9389_v15  ;;  %v2369_v40 = vrot.slane %v7713_v0, %v6397_v34 }
 0x2c9   : > { %v7800_v60 = vadd.f32 %v2405_v49, %v2180_v58  ;;  %v3572_v7 = vadd.f32 %v3547_v41, %v3422_v46  ;;  %v1681_v45 = vadd.f32 %v1656_v11, %v1431_v29  ;;  %v9391_v46 = vld [vmem:[#allocation100_spill] sm:$0xff] }
 0x2ca   : > { %v2406_v61 = vmul.f32 %v2369_v40, %v9391_v46  ;;  %v7840_v29 = vld [vmem:[%s6331_s27 + $0xa8] sm:$0xff] }
 0x2cb   : > { %9384 = vst [vmem:[#allocation59_spill] sm:$0xff] %v7800_v60  ;;  %5428 = vmatmul.mubr.msk.f32.gmra.mxu0 %vm2445_vm1, %v7800_v60  ;;  %v7808_v6 = vpop.permute.xlu1 %1025  ;;  %v3722_v1 = vadd.f32 %v3697_v5, %v3572_v7  ;;  %v1931_v31 = vadd.f32 %v1906_v9, %v1681_v45  ;;  %v1123_v9 = vrot.slane %v7840_v29, %v6346_v17  ;;  %v9397_v60 = vld [vmem:[#allocation116_spill] sm:$0xff] }
 0x2cc   : > { %9386 = vst [vmem:[#allocation88_spill] sm:$0xff] %v7808_v6  ;;  %5430 = vmatprep.mubr.msk.f32.mxu0 %vm5863_vm0, %v9125_v13  ;;  %v2123_v32 = vrot.slane %v7840_v29, %v6383_v54 }
 0x2cd   : > { %v3872_v33 = vadd.f32 %v3847_v21, %v3722_v1  ;;  %v873_v1 = vrot.slane %v7840_v29, %v6344_v4  ;;  %v7849_v21 = vld [vmem:[%s8806_s5] ss:$0 sm:$0xff] }
 0x2cf   : > { %v4022_v24 = vadd.f32 %v3997_v20, %v3872_v33  ;;  %v907_v40 = vmul.f32 %v873_v1, %v7668_v57 }
 0x2d0   : > { %v7819_v55 = vpop.permute.xlu1 %2017 }
 0x2d1   : > { %9390 = vst [vmem:[#allocation102_spill] sm:$0xff] %v7819_v55  ;;  %v2156_v58 = vmul.f32 %v2119_v26, %v7819_v55  ;;  %v2647_v49 = vpop.f32.mrf.mxu0  ;;  %5487 = vmatmul.mubr.msk.f32.gmra.mxu1 %vm4047_vm2, %v4022_v24  ;;  %v648_v26 = vrot.slane %v7840_v29, %v6338_v37 }
 0x2d2   : > { %v2648_v28 = vadd.f32 %v7597_v44, %v2647_v49  ;;  %5489 = vmatprep.mubr.msk.f32.mxu1 %vm5863_vm0, %v9125_v13 }
 0x2d3   : > { %v2181_v41 = vadd.f32 %v2156_v58, %v1931_v31  ;;  %v5408_v11 = vpop.f32.mrf.mxu0 }
 0x2d4   : > { %v2748_v7 = vmul.f32 %v2648_v28, %v2648_v28  ;;  %v2723_v33 = vmax.f32 %v2648_v28, 0.0  ;;  %v7869_v11 = vld [vmem:[%s6331_s27 + $0xb0] sm:$0xff] }
 0x2d5   : > { %v7827_v0 = vadd.f32 %v2406_v61, %v2181_v41  ;;  %v7829_v23 = vpop.permute.xlu1 %553  ;;  %v682_v61 = vmul.f32 %v648_v26, %v7655_v63  ;;  %v1373_v41 = vrot.slane %v7840_v29, %v6357_v8  ;;  %v1157_v26 = vmul.f32 %v1123_v9, %v7731_v2  ;;  %v9398_v63 = vld [vmem:[#allocation117_spill] sm:$0xff]  ;;  %v7905_v2 = vld [vmem:[%s6331_s27 + $0xc0] sm:$0xff] }
 0x2d6   : > { %9393 = vst [vmem:[#allocation34_spill] sm:$0xff] %v7829_v23  ;;  %v2773_v5 = vadd.f32 1.0, %v2748_v7  ;;  %v652_v15 = vrot.slane %v7869_v11, %v6338_v37 }
 0x2d7   : > { %9392 = vst [vmem:[#allocation4_spill] sm:$0xff] %v7827_v0  ;;  %5431 = vmatmul.mubr.msk.f32.gmra.mxu0 %vm2445_vm1, %v7827_v0  ;;  %v1407_v9 = vmul.f32 %v1373_v41, %v7772_v35  ;;  %v1873_v41 = vrot.slane %v7840_v29, %v6378_v39 }
 0x2d8   : > { %5433 = vmatprep.mubr.msk.f32.mxu0 %vm5863_vm0, %v9125_v13  ;;  %5727 = vrcp.f32 %v2773_v5  ;;  %v683_v47 = vmul.f32 %v652_v15, %v9402_v52  ;;  %v877_v15 = vrot.slane %v7869_v11, %v6344_v4 }
 0x2da   : > { %v7835_v30 = vpop.permute.xlu1 %1275 }
 0x2db   : > { %9394 = vst [vmem:[#allocation71_spill] sm:$0xff] %v7835_v30 }
 0x2df   : > { %v7837_v12 = vpop.permute.xlu1 %1771 }
 0x2e4   : > { %v7844_v25 = vpop.permute.xlu1 %1029 }
 0x2e5   : > { %9395 = vst [vmem:[#allocation78_spill] sm:$0xff] %v7844_v25  ;;  %v5728_v45 = vpop.eup %5727 }
 0x2e6   : > { %v2823_v51 = vmul.f32 2.0, %v5728_v45  ;;  %v4189_v20 = vpop.f32.mrf.mxu1 }
 0x2e7   : > { %v7857_v24 = vadd.f32 %v7849_v21, %v4189_v20 }
 0x2e8   : > { %v7859_v31 = vsub.f32 %v2723_v33, %v2823_v51  ;;  %v5455_v58 = vpop.f32.mrf.mxu1  ;;  %v932_v33 = vadd.f32 %v907_v40, %v682_v61 }
 0x2e9   : > { %v7861_v49 = vpop.permute.xlu1 %1525  ;;  %v4338_v28 = vmul.f32 %v7857_v24, %v7857_v24  ;;  %v7882_v58 = vld [vmem:[%s6331_s27 + $0xb8] sm:$0xff] }
 0x2ea   : > { %9396 = vst [vmem:[#allocation85_spill] sm:$0xff] %v7861_v49  ;;  %v2912_v5 = vrot.slane %v7859_v31, %v6338_v37  ;;  %v3037_v1 = vrot.slane %v7859_v31, %v6344_v4  ;;  %v3187_v45 = vrot.slane %v7859_v31, %v6346_v17  ;;  %v3337_v55 = vrot.slane %v7859_v31, %v6357_v8 }
 0x2eb   : > { %v4363_v51 = vadd.f32 1.0, %v4338_v28 }
 0x2ec   : > { %v2652_v7 = vpop.f32.mrf.mxu0  ;;  %v2973_v57 = vmul.f32 %v2912_v5, %v9397_v60  ;;  %v3098_v46 = vmul.f32 %v3037_v1, %v9398_v63  ;;  %v1623_v60 = vrot.slane %v7840_v29, %v6364_v19  ;;  %v9399_v63 = vld [vmem:[#allocation16_spill] sm:$0xff]  ;;  %v881_v5 = vrot.slane %v7882_v58, %v6344_v4 }
 0x2ed   : > { %v7879_v20 = vadd.f32 %v7597_v44, %v2652_v7  ;;  %5729 = vrcp.f32 %v4363_v51  ;;  %v3248_v28 = vmul.f32 %v3187_v45, %v9399_v63  ;;  %v3487_v7 = vrot.slane %v7859_v31, %v6364_v19 }
 0x2ee   : > { %v5411_v0 = vpop.f32.mrf.mxu0  ;;  %v7893_v61 = vpop.permute.xlu1 %558  ;;  %v1182_v1 = vadd.f32 %v1157_v26, %v932_v33  ;;  %v3637_v63 = vrot.slane %v7859_v31, %v6378_v39  ;;  %v1135_v26 = vrot.slane %v7905_v2, %v6346_v17  ;;  %v1657_v43 = vmul.f32 %v1623_v60, %v9403_v22 }
 0x2ef   : > { %v2749_v40 = vmul.f32 %v7879_v20, %v7879_v20  ;;  %v3123_v0 = vadd.f32 %v3098_v46, %v2973_v57  ;;  %v4194_v35 = vpop.f32.mrf.mxu1  ;;  %v9400_v46 = vld [vmem:[#allocation125_spill] sm:$0xff]  ;;  %v7927_v10 = vmul.f32 %v881_v5, %v9404_v27  ;;  %v1381_v60 = vrot.slane %v7882_v58, %v6357_v8  ;;  %v7941_v5 = vpop.permute.xlu0 %1279 }
 0x2f0   : > { %v7908_v16 = vadd.f32 %v7849_v21, %v4194_v35  ;;  %v3398_v45 = vmul.f32 %v3337_v55, %v9400_v46  ;;  %v1432_v33 = vadd.f32 %v1407_v9, %v1182_v1  ;;  %v3787_v46 = vrot.slane %v7859_v31, %v6383_v54  ;;  %9406 = vst [vmem:[#allocation94_spill] sm:$0xff] %v7941_v5 }
 0x2f1   : > { %v2774_v51 = vadd.f32 1.0, %v2749_v40  ;;  %v3273_v57 = vadd.f32 %v3248_v28, %v3123_v0  ;;  %v5458_v40 = vpop.f32.mrf.mxu1  ;;  %v9401_v28 = vld [vmem:[#allocation63_spill] sm:$0xff]  ;;  %v1907_v9 = vmul.f32 %v1873_v41, %v7837_v12 }
 0x2f2   : > { %v4339_v18 = vmul.f32 %v7908_v16, %v7908_v16  ;;  %v3548_v55 = vmul.f32 %v3487_v7, %v9401_v28  ;;  %v9405_v40 = vld [vmem:[#allocation133_spill] sm:$0xff]  ;;  %v2157_v7 = vmul.f32 %v2123_v32, %v7327_v50  ;;  %v1127_v32 = vrot.slane %v7869_v11, %v6346_v17 }
 0x2f3   : > { %5731 = vrcp.f32 %v2774_v51  ;;  %v7919_v35 = vpop.permute.xlu1 %783  ;;  %v3423_v0 = vadd.f32 %v3398_v45, %v3273_v57  ;;  %v3698_v53 = vmul.f32 %v3637_v63, %v9405_v40  ;;  %v3937_v57 = vrot.slane %v7859_v31, %v6397_v34  ;;  %v7963_v27 = vpop.permute.xlu0 %1283 }
 0x2f4   : > { %v4364_v1 = vadd.f32 1.0, %v4339_v18  ;;  %v7935_v45 = vmul.f32 %v1135_v26, %v7758_v56  ;;  %v1682_v18 = vadd.f32 %v1657_v43, %v1432_v33  ;;  %v656_v31 = vrot.slane %v7882_v58, %v6338_v37 }
 0x2f5   : > { %v3573_v51 = vadd.f32 %v3548_v55, %v3423_v0  ;;  %v9407_v0 = vld [vmem:[#allocation137_spill] sm:$0xff]  ;;  %v1377_v26 = vrot.slane %v7869_v11, %v6357_v8  ;;  %v1627_v56 = vrot.slane %v7869_v11, %v6364_v19  ;;  %v1158_v52 = vmul.f32 %v1127_v32, %v7808_v6  ;;  %v7992_v32 = vld [vmem:[%s8807_s6] ss:$0 sm:$0xff] }
 0x2f6   : > { %5733 = vrcp.f32 %v4364_v1  ;;  %v3848_v28 = vmul.f32 %v3787_v46, %v9407_v0  ;;  %v1932_v43 = vadd.f32 %v1907_v9, %v1682_v18  ;;  %v9408_v1 = vld [vmem:[#allocation138_spill] sm:$0xff]  ;;  %v7959_v0 = vmul.f32 %v1381_v60, %v7941_v5 }
 0x2f7   : > { %v2657_v41 = vpop.f32.mrf.mxu0  ;;  %v3723_v63 = vadd.f32 %v3698_v53, %v3573_v51  ;;  %v1131_v53 = vrot.slane %v7882_v58, %v6346_v17  ;;  %v3998_v51 = vmul.f32 %v3937_v57, %v9408_v1  ;;  %v2373_v9 = vrot.slane %v7840_v29, %v6397_v34 }
 0x2f8   : > { %v7951_v55 = vadd.f32 %v7597_v44, %v2657_v41  ;;  %v7953_v40 = vpop.permute.xlu1 %1775  ;;  %v908_v41 = vmul.f32 %v877_v15, %v7751_v48  ;;  %v2182_v57 = vadd.f32 %v2157_v7, %v1932_v43 }
 0x2f9   : > { %v5414_v33 = vpop.f32.mrf.mxu0  ;;  %v3873_v46 = vadd.f32 %v3848_v28, %v3723_v63  ;;  %v4313_v28 = vmax.f32 %v7857_v24, 0.0 }
 0x2fa   : > { %v2750_v44 = vmul.f32 %v7951_v55, %v7951_v55  ;;  %v5730_v18 = vpop.eup %5729  ;;  %v933_v43 = vadd.f32 %v908_v41, %v683_v47  ;;  %v684_v47 = vmul.f32 %v656_v31, %v7829_v23  ;;  %v1159_v31 = vmul.f32 %v1131_v53, %v7844_v25 }
 0x2fb   : > { %v4023_v63 = vadd.f32 %v3998_v51, %v3873_v46  ;;  %v4413_v33 = vmul.f32 2.0, %v5730_v18 }
 0x2fc   : > { %v2775_v5 = vadd.f32 1.0, %v2750_v44 }
 0x2fd   : > { %v4199_v15 = vpop.f32.mrf.mxu1  ;;  %5490 = vmatmul.mubr.msk.f32.gmra.mxu1 %vm4047_vm2, %v4023_v63  ;;  %v7981_v48 = vpop.permute.xlu1 %2271  ;;  %v4438_v24 = vsub.f32 %v4313_v28, %v4413_v33  ;;  %v2127_v63 = vrot.slane %v7869_v11, %v6383_v54  ;;  %v2724_v28 = vmax.f32 %v7879_v20, 0.0  ;;  %v1408_v20 = vmul.f32 %v1377_v26, %v7835_v30 }
 0x2fe   : > { %9409 = vst [vmem:[#allocation101_spill] sm:$0xff] %v7981_v48  ;;  %5735 = vrcp.f32 %v2775_v5  ;;  %v7986_v51 = vadd.f32 %v7849_v21, %v4199_v15  ;;  %v2407_v44 = vmul.f32 %v2373_v9, %v7981_v48  ;;  %5492 = vmatprep.mubr.msk.f32.mxu1 %vm5863_vm0, %v9125_v13  ;;  %v8003_v15 = vpop.permute.xlu0 %1533  ;;  %v2381_v9 = vrot.slane %v7882_v58, %v6397_v34 }
 0x2ff   : > { %v5461_v18 = vpop.f32.mrf.mxu1  ;;  %v4470_v41 = vmul.f32 %v7992_v32, %v4438_v24  ;;  %v1183_v5 = vadd.f32 %v1158_v52, %v933_v43  ;;  %v1658_v24 = vmul.f32 %v1627_v56, %v7861_v49 }
 0x300   : > { %v5732_v7 = vpop.eup %5731  ;;  %v4340_v1 = vmul.f32 %v7986_v51, %v7986_v51  ;;  %v8007_v46 = vadd.f32 %v2407_v44, %v2182_v57 }
 0x301   : > { %v2824_v33 = vmul.f32 2.0, %v5732_v7  ;;  %v4495_v52 = vsel %vm2445_vm1, %v4470_v41, 0.0 }
 0x302   : > { %9410 = vst [vmem:[#allocation105_spill] sm:$0xff] %v8007_v46  ;;  %v4365_v60 = vadd.f32 1.0, %v4340_v1  ;;  %v4204_v29 = vpop.f32.mrf.mxu1  ;;  %5434 = vmatmul.mubr.msk.f32.gmra.mxu0 %vm2445_vm1, %v8007_v46  ;;  %v8020_v57 = vpop.permute.xlu1 %1529  ;;  %4496 = vadd.xlane.f32.xlu0 %v4495_v52  ;;  %v1433_v52 = vadd.f32 %v1408_v20, %v1183_v5  ;;  %v9412_v46 = vld [vmem:[#allocation124_spill] sm:$0xff] }
 0x303   : > { %v8016_v7 = vsub.f32 %v2724_v28, %v2824_v33  ;;  %v8025_v44 = vadd.f32 %v7849_v21, %v4204_v29  ;;  %5436 = vmatprep.mubr.msk.f32.mxu0 %vm5863_vm0, %v9125_v13  ;;  %v5734_v26 = vpop.eup %5733  ;;  %v8036_v29 = vpop.permute.xlu0 %2279  ;;  %v934_v28 = vadd.f32 %v7927_v10, %v684_v47  ;;  %v4314_v33 = vmax.f32 %v7908_v16, 0.0 }
 0x304   : > { %5737 = vrcp.f32 %v4365_v60  ;;  %v5464_v1 = vpop.f32.mrf.mxu1  ;;  %v4414_v41 = vmul.f32 2.0, %v5734_v26  ;;  %v8049_v10 = vmul.f32 %v2381_v9, %v8036_v29  ;;  %v1683_v16 = vadd.f32 %v1658_v24, %v1433_v52  ;;  %v9413_v26 = vld [vmem:[#allocation128_spill] sm:$0xff] }
 0x305   : > { %v2916_v43 = vrot.slane %v8016_v7, %v6338_v37  ;;  %v3041_v53 = vrot.slane %v8016_v7, %v6344_v4  ;;  %v3191_v56 = vrot.slane %v8016_v7, %v6346_v17  ;;  %v4341_v60 = vmul.f32 %v8025_v44, %v8025_v44  ;;  %v9411_v1 = vld [vmem:[#allocation37_spill] sm:$0xff] }
 0x306   : > { %v3341_v23 = vrot.slane %v8016_v7, %v6357_v8  ;;  %v1184_v49 = vadd.f32 %v1159_v31, %v934_v28  ;;  %v4439_v30 = vsub.f32 %v4314_v33, %v4414_v41  ;;  %v3491_v5 = vrot.slane %v8016_v7, %v6364_v19 }
 0x307   : > { %v2974_v18 = vmul.f32 %v2916_v43, %v9411_v1  ;;  %v3099_v25 = vmul.f32 %v3041_v53, %v9412_v46  ;;  %v4366_v6 = vadd.f32 1.0, %v4341_v60  ;;  %v8046_v48 = vpop.permute.xlu1 %2025  ;;  %v3249_v50 = vmul.f32 %v3191_v56, %v9413_v26  ;;  %v9417_v53 = vld [vmem:[#allocation132_spill] sm:$0xff] }
 0x308   : > { %v9414_v46 = vrot.slane %v7905_v2, %v6338_v37  ;;  %v9415_v31 = vrot.slane %v7869_v11, %v6378_v39  ;;  %v4471_v9 = vmul.f32 %v7992_v32, %v4439_v30  ;;  %v3399_v56 = vmul.f32 %v3341_v23, %v9417_v53 }
 0x309   : > { %v3124_v47 = vadd.f32 %v3099_v25, %v2974_v18  ;;  %5739 = vrcp.f32 %v4366_v6  ;;  %v9416_v25 = vrot.slane %v7905_v2, %v6344_v4  ;;  %v3641_v28 = vrot.slane %v8016_v7, %v6378_v39 }
 0x30a   : > { %v685_v20 = vmul.f32 %v9414_v46, %v7893_v61  ;;  %v1908_v43 = vmul.f32 %v9415_v31, %v7953_v40  ;;  %v2725_v41 = vmax.f32 %v7951_v55, 0.0  ;;  %v9418_v6 = vrot.slane %v7882_v58, %v6364_v19 }
 0x30b   : > { %v910_v18 = vmul.f32 %v9416_v25, %v7919_v35  ;;  %v3274_v24 = vadd.f32 %v3249_v50, %v3124_v47  ;;  %v5736_v33 = vpop.eup %5735  ;;  %v4498_v30 = vsel %vm2445_vm1, %v4471_v9, 0.0  ;;  %v2158_v52 = vmul.f32 %v2127_v63, %v8046_v48 }
 0x30c   : > { %v1659_v60 = vmul.f32 %v9418_v6, %v8020_v57  ;;  %v2825_v1 = vmul.f32 2.0, %v5736_v33  ;;  %v4209_v26 = vpop.f32.mrf.mxu1  ;;  %4499 = vadd.xlane.f32.xlu1 %v4498_v30  ;;  %v8077_v50 = vpop.permute.xlu1 %1779  ;;  %v3549_v47 = vmul.f32 %v3491_v5, %v6939_v42  ;;  %v3791_v55 = vrot.slane %v8016_v7, %v6383_v54 }
 0x30d   : > { %v3424_v23 = vadd.f32 %v3399_v56, %v3274_v24  ;;  %v1434_v46 = vadd.f32 %v7959_v0, %v1184_v49  ;;  %v1933_v31 = vadd.f32 %v1908_v43, %v1683_v16  ;;  %v8084_v25 = vadd.f32 %v7849_v21, %v4209_v26 }
 0x30e   : > { %v3941_v63 = vrot.slane %v8016_v7, %v6397_v34  ;;  %v935_v9 = vadd.f32 %v910_v18, %v685_v20  ;;  %v8088_v53 = vsub.f32 %v2725_v41, %v2825_v1  ;;  %v5467_v33 = vpop.f32.mrf.mxu1  ;;  %v3699_v24 = vmul.f32 %v3641_v28, %v6979_v3 }
 0x30f   : > { %v3574_v6 = vadd.f32 %v3549_v47, %v3424_v23  ;;  %v4315_v42 = vmax.f32 %v7986_v51, 0.0  ;;  %v1684_v5 = vadd.f32 %v1659_v60, %v1434_v46  ;;  %v4342_v49 = vmul.f32 %v8084_v25, %v8084_v25 }
 0x310   : > { %v2183_v0 = vadd.f32 %v2158_v52, %v1933_v31  ;;  %v3849_v43 = vmul.f32 %v3791_v55, %v7063_v62  ;;  %v2920_v7 = vrot.slane %v8088_v53, %v6338_v37  ;;  %v3045_v20 = vrot.slane %v8088_v53, %v6344_v4  ;;  %v4214_v41 = vpop.f32.mrf.mxu1  ;;  %v9421_v55 = vld [vmem:[#allocation130_spill] sm:$0xff]  ;;  %v9422_v31 = vld [vmem:[#allocation79_spill] sm:$0xff] }
 0x311   : > { %v3724_v16 = vadd.f32 %v3699_v24, %v3574_v6  ;;  %v5738_v18 = vpop.eup %5737  ;;  %v4367_v56 = vadd.f32 1.0, %v4342_v49  ;;  %v9419_v3 = vrot.slane %v7882_v58, %v6378_v39  ;;  %v8103_v28 = vpop.permute.xlu1 %2275  ;;  %v3999_v60 = vmul.f32 %v3941_v63, %v7146_v36 }
 0x312   : > { %v3195_v62 = vrot.slane %v8088_v53, %v6346_v17  ;;  %v4415_v30 = vmul.f32 2.0, %v5738_v18  ;;  %v8109_v52 = vadd.f32 %v7849_v21, %v4214_v41  ;;  %v9420_v1 = vrot.slane %v7869_v11, %v6397_v34  ;;  %v5470_v47 = vpop.f32.mrf.mxu1  ;;  %v9423_v18 = vld [vmem:[#allocation134_spill] sm:$0xff] }
 0x313   : > { %v1909_v51 = vmul.f32 %v9419_v3, %v8077_v50  ;;  %v3874_v23 = vadd.f32 %v3849_v43, %v3724_v16  ;;  %5741 = vrcp.f32 %v4367_v56  ;;  %v2975_v46 = vmul.f32 %v2920_v7, %v9421_v55 }
 0x314   : > { %v2408_v26 = vmul.f32 %v9420_v1, %v8103_v28  ;;  %v3100_v33 = vmul.f32 %v3045_v20, %v9422_v31  ;;  %v3345_v36 = vrot.slane %v8088_v53, %v6357_v8  ;;  %v4440_v63 = vsub.f32 %v4315_v42, %v4415_v30 }
 0x315   : > { %v4343_v6 = vmul.f32 %v8109_v52, %v8109_v52  ;;  %v3495_v11 = vrot.slane %v8088_v53, %v6364_v19  ;;  %v4316_v49 = vmax.f32 %v8025_v44, 0.0  ;;  %v4024_v16 = vadd.f32 %v3999_v60, %v3874_v23 }
 0x316   : > { %v8121_v24 = vadd.f32 %v2408_v26, %v2183_v0  ;;  %v3125_v43 = vadd.f32 %v3100_v33, %v2975_v46  ;;  %v3250_v7 = vmul.f32 %v3195_v62, %v9423_v18  ;;  %v5740_v56 = vpop.eup %5739  ;;  %v1934_v41 = vadd.f32 %v1909_v51, %v1684_v5  ;;  %v8129_v42 = vpop.permute.xlu1 %2029  ;;  %v9425_v51 = vld [vmem:[#allocation26_spill] sm:$0xff]  ;;  %v9427_v18 = vld [vmem:[#allocation15_spill] sm:$0xff] }
 0x317   : > { %v4368_v20 = vadd.f32 1.0, %v4343_v6  ;;  %v4472_v0 = vmul.f32 %v7992_v32, %v4440_v63  ;;  %v3645_v3 = vrot.slane %v8088_v53, %v6378_v39  ;;  %v4416_v30 = vmul.f32 2.0, %v5740_v56  ;;  %5493 = vmatmul.mubr.msk.f32.gmra.mxu1 %vm4047_vm2, %v4024_v16 }
 0x318   : > { %5437 = vmatmul.mubr.msk.f32.gmra.mxu0 %vm2445_vm1, %v8121_v24  ;;  %v9424_v44 = vrot.slane %v7882_v58, %v6383_v54  ;;  %v3275_v5 = vadd.f32 %v3250_v7, %v3125_v43  ;;  %v3400_v62 = vmul.f32 %v3345_v36, %v9425_v51  ;;  %v1635_v1 = vrot.slane %v7905_v2, %v6364_v19 }
 0x319   : > { %5439 = vmatprep.mubr.msk.f32.mxu0 %vm5863_vm0, %v9125_v13  ;;  %5743 = vrcp.f32 %v4368_v20  ;;  %v4501_v26 = vsel %vm2445_vm1, %v4472_v0, 0.0  ;;  %5495 = vmatprep.mubr.msk.f32.mxu1 %vm5863_vm0, %v9125_v13  ;;  %v3550_v23 = vmul.f32 %v3495_v11, %v7031_v38  ;;  %v4441_v47 = vsub.f32 %v4316_v49, %v4416_v30 }
 0x31a   : > { %v2159_v60 = vmul.f32 %v9424_v44, %v8129_v42  ;;  %4502 = vadd.xlane.f32.xlu0 %v4501_v26  ;;  %v3425_v55 = vadd.f32 %v3400_v62, %v3275_v5  ;;  %v3795_v46 = vrot.slane %v8088_v53, %v6383_v54  ;;  %v1185_v31 = vadd.f32 %v7935_v45, %v935_v9 }
 0x31b   : > { %v9426_v33 = vrot.slane %v7905_v2, %v6357_v8  ;;  %v3700_v63 = vmul.f32 %v3645_v3, %v9246_v59  ;;  %v8159_v38 = vpop.permute.xlu1 %1783  ;;  %v4473_v11 = vmul.f32 %v7992_v32, %v4441_v47  ;;  %v3945_v16 = vrot.slane %v8088_v53, %v6397_v34  ;;  %v9428_v3 = vld [vmem:[#allocation96_spill] sm:$0xff] }
 0x31c   : > { %v2184_v58 = vadd.f32 %v2159_v60, %v1934_v41  ;;  %v3575_v49 = vadd.f32 %v3550_v23, %v3425_v55  ;;  %v1885_v45 = vrot.slane %v7905_v2, %v6378_v39  ;;  %v1660_v9 = vmul.f32 %v1635_v1, %v8003_v15 }
 0x31d   : > { %v1410_v36 = vmul.f32 %v9426_v33, %v7963_v27  ;;  %v4504_v43 = vsel %vm2445_vm1, %v4473_v11, 0.0  ;;  %v4219_v59 = vpop.f32.mrf.mxu1  ;;  %v3850_v7 = vmul.f32 %v3795_v46, %v9427_v18  ;;  %v2135_v53 = vrot.slane %v7905_v2, %v6383_v54  ;;  %v8187_v33 = vld [vmem:[%s8804_s3] ss:$0 sm:$0xff] }
 0x31e   : > { %v8157_v6 = vadd.f32 %v8049_v10, %v2184_v58  ;;  %v3725_v10 = vadd.f32 %v3700_v63, %v3575_v49  ;;  %4505 = vadd.xlane.f32.xlu0 %v4504_v43  ;;  %v4220_v20 = vadd.f32 %v7849_v21, %v4219_v59  ;;  %v4000_v30 = vmul.f32 %v3945_v16, %v9428_v3 }
 0x31f   : > { %v1435_v56 = vadd.f32 %v1410_v36, %v1185_v31  ;;  %v5473_v41 = vpop.f32.mrf.mxu1  ;;  %v1910_v60 = vmul.f32 %v1885_v45, %v8159_v38  ;;  %v4317_v62 = vmax.f32 %v8084_v25, 0.0  ;;  %v2385_v46 = vrot.slane %v7905_v2, %v6397_v34 }
 0x320   : > { %5440 = vmatmul.mubr.msk.f32.gmra.mxu0 %vm2445_vm1, %v8157_v6  ;;  %v3875_v0 = vadd.f32 %v3850_v7, %v3725_v10  ;;  %v5742_v44 = vpop.eup %5741  ;;  %v4344_v5 = vmul.f32 %v4220_v20, %v4220_v20  ;;  %v8178_v51 = vpop.permute.xlu1 %2033  ;;  %v4318_v45 = vmax.f32 %v8109_v52, 0.0 }
 0x321   : > { %5442 = vmatprep.mubr.msk.f32.mxu0 %vm5863_vm0, %v9125_v13  ;;  %v4417_v1 = vmul.f32 2.0, %v5742_v44  ;;  %v1685_v23 = vadd.f32 %v1660_v9, %v1435_v56  ;;  %v2160_v58 = vmul.f32 %v2135_v53, %v8178_v51  ;;  %v2662_v55 = vpop.f32.mrf.mxu0 }
 0x322   : > { %v4025_v26 = vadd.f32 %v4000_v30, %v3875_v0  ;;  %v4369_v47 = vadd.f32 1.0, %v4344_v5  ;;  %v2663_v36 = vadd.f32 %v8187_v33, %v2662_v55  ;;  %v4319_v0 = vmax.f32 %v4220_v20, 0.0 }
 0x323   : > { %v4442_v31 = vsub.f32 %v4317_v62, %v4417_v1  ;;  %v1935_v25 = vadd.f32 %v1910_v60, %v1685_v23  ;;  %v5417_v63 = vpop.f32.mrf.mxu0 }
 0x324   : > { %5496 = vmatmul.mubr.msk.f32.gmra.mxu1 %vm4047_vm2, %v4025_v26  ;;  %5745 = vrcp.f32 %v4369_v47  ;;  %v2751_v2 = vmul.f32 %v2663_v36, %v2663_v36  ;;  %v2726_v62 = vmax.f32 %v2663_v36, 0.0 }
 0x325   : > { %5498 = vmatprep.mubr.msk.f32.mxu1 %vm5863_vm0, %v9125_v13  ;;  %v4474_v49 = vmul.f32 %v7992_v32, %v4442_v31  ;;  %v8194_v16 = vpop.permute.xlu1 %2283  ;;  %v2185_v43 = vadd.f32 %v2160_v58, %v1935_v25 }
 0x326   : > { %v5744_v11 = vpop.eup %5743  ;;  %v2410_v59 = vmul.f32 %v2385_v46, %v8194_v16  ;;  %v2776_v18 = vadd.f32 1.0, %v2751_v2 }
 0x327   : > { %v4418_v9 = vmul.f32 2.0, %v5744_v11  ;;  %v4507_v10 = vsel %vm2445_vm1, %v4474_v49, 0.0  ;;  %v9429_v49 = vld [vmem:[#allocation135_spill] sm:$0xff] }
 0x328   : > { %4508 = vadd.xlane.f32.xlu0 %v4507_v10  ;;  %v8199_v56 = vadd.f32 %v2410_v59, %v2185_v43  ;;  %5747 = vrcp.f32 %v2776_v18  ;;  %v9431_v18 = vld [vmem:[#allocation20_spill] sm:$0xff] }
 0x329   : > { %v4443_v7 = vsub.f32 %v4318_v45, %v4418_v9  ;;  %v9430_v45 = vld [vmem:[#allocation136_spill] sm:$0xff] }
 0x32a   : > { %5443 = vmatmul.mubr.msk.f32.gmra.mxu0 %vm2445_vm1, %v8199_v56 }
 0x32b   : > { %v4475_v53 = vmul.f32 %v7992_v32, %v4443_v7 }
 0x32d   : > { %v4510_v41 = vsel %vm2445_vm1, %v4475_v53, 0.0 }
 0x32e   : > { %4511 = vadd.xlane.f32.xlu0 %v4510_v41 }
 0x331   : > { %v5746_v52 = vpop.eup %5745 }
 0x332   : > { %v4419_v3 = vmul.f32 2.0, %v5746_v52 }
 0x334   : > { %v4444_v30 = vsub.f32 %v4319_v0, %v4419_v3  ;;  %v9432_v0 = vld [vmem:[#allocation70_spill] sm:$0xff] }
 0x335   : > { %v5748_v44 = vpop.eup %5747 }
 0x336   : > { %v4224_v60 = vpop.f32.mrf.mxu1  ;;  %v4476_v5 = vmul.f32 %v7992_v32, %v4444_v30  ;;  %v2826_v1 = vmul.f32 2.0, %v5748_v44 }
 0x337   : > { %v4225_v26 = vadd.f32 %v7849_v21, %v4224_v60 }
 0x338   : > { %v5476_v23 = vpop.f32.mrf.mxu1  ;;  %v4513_v47 = vsel %vm2445_vm1, %v4476_v5, 0.0  ;;  %v2851_v58 = vsub.f32 %v2726_v62, %v2826_v1  ;;  %v9433_v62 = vld [vmem:[#allocation65_spill] sm:$0xff] }
 0x339   : > { %v4345_v55 = vmul.f32 %v4225_v26, %v4225_v26  ;;  %4514 = vadd.xlane.f32.xlu0 %v4513_v47 }
 0x33a   : > { %v2667_v31 = vpop.f32.mrf.mxu0  ;;  %v2924_v20 = vrot.slane %v2851_v58, %v6338_v37  ;;  %v3049_v25 = vrot.slane %v2851_v58, %v6344_v4  ;;  %v3199_v63 = vrot.slane %v2851_v58, %v6346_v17  ;;  %v3349_v43 = vrot.slane %v2851_v58, %v6357_v8 }
 0x33b   : > { %v4370_v46 = vadd.f32 1.0, %v4345_v55  ;;  %v2668_v11 = vadd.f32 %v8187_v33, %v2667_v31  ;;  %v3499_v53 = vrot.slane %v2851_v58, %v6364_v19  ;;  %v3649_v30 = vrot.slane %v2851_v58, %v6378_v39  ;;  %v9434_v31 = vld [vmem:[#allocation52_spill] sm:$0xff] }
 0x33c   : > { %v5420_v36 = vpop.f32.mrf.mxu0  ;;  %v2976_v2 = vmul.f32 %v2924_v20, %v9429_v49  ;;  %v3101_v9 = vmul.f32 %v3049_v25, %v9430_v45  ;;  %v3251_v7 = vmul.f32 %v3199_v63, %v9431_v18  ;;  %v3401_v3 = vmul.f32 %v3349_v43, %v9432_v0 }
 0x33d   : > { %5749 = vrcp.f32 %v4370_v46  ;;  %v2752_v59 = vmul.f32 %v2668_v11, %v2668_v11  ;;  %v3551_v1 = vmul.f32 %v3499_v53, %v9433_v62  ;;  %v3799_v23 = vrot.slane %v2851_v58, %v6383_v54 }
 0x33e   : > { %v3126_v10 = vadd.f32 %v3101_v9, %v2976_v2  ;;  %v3701_v20 = vmul.f32 %v3649_v30, %v9434_v31  ;;  %v3949_v25 = vrot.slane %v2851_v58, %v6397_v34  ;;  %v9435_v2 = vld [vmem:[#allocation10_spill] sm:$0xff] }
 0x33f   : > { %v2777_v41 = vadd.f32 1.0, %v2752_v59  ;;  %v3851_v45 = vmul.f32 %v3799_v23, %v9435_v2  ;;  %v9437_v31 = vld [vmem:[#allocation38_spill] sm:$0xff] }
 0x340   : > { %v3276_v52 = vadd.f32 %v3251_v7, %v3126_v10  ;;  %v9436_v10 = vld [vmem:[#allocation25_spill] sm:$0xff] }
 0x341   : > { %5751 = vrcp.f32 %v2777_v41  ;;  %v4229_v44 = vpop.f32.mrf.mxu1  ;;  %v4001_v18 = vmul.f32 %v3949_v25, %v9436_v10  ;;  %v4320_v41 = vmax.f32 %v4225_v26, 0.0  ;;  %v9438_v25 = vld [vmem:[#allocation29_spill] sm:$0xff] }
 0x342   : > { %v4230_v60 = vadd.f32 %v7849_v21, %v4229_v44  ;;  %v3426_v5 = vadd.f32 %v3401_v3, %v3276_v52 }
 0x343   : > { %v5479_v47 = vpop.f32.mrf.mxu1 }
 0x344   : > { %v4346_v55 = vmul.f32 %v4230_v60, %v4230_v60  ;;  %v3576_v46 = vadd.f32 %v3551_v1, %v3426_v5  ;;  %v2727_v5 = vmax.f32 %v2668_v11, 0.0 }
 0x346   : > { %v4371_v63 = vadd.f32 1.0, %v4346_v55  ;;  %v2672_v36 = vpop.f32.mrf.mxu0  ;;  %v3726_v49 = vadd.f32 %v3701_v20, %v3576_v46 }
 0x347   : > { %v2673_v9 = vadd.f32 %v8187_v33, %v2672_v36 }
 0x348   : > { %5753 = vrcp.f32 %v4371_v63  ;;  %v5423_v43 = vpop.f32.mrf.mxu0  ;;  %v3876_v59 = vadd.f32 %v3851_v45, %v3726_v49  ;;  %v4321_v49 = vmax.f32 %v4230_v60, 0.0  ;;  %v9439_v45 = vld [vmem:[#allocation18_spill] sm:$0xff] }
 0x349   : > { %v2753_v53 = vmul.f32 %v2673_v9, %v2673_v9 }
 0x34a   : > { %v5750_v7 = vpop.eup %5749  ;;  %v4026_v0 = vadd.f32 %v4001_v18, %v3876_v59 }
 0x34b   : > { %v4420_v52 = vmul.f32 2.0, %v5750_v7  ;;  %v2778_v3 = vadd.f32 1.0, %v2753_v53  ;;  %v9440_v7 = vld [vmem:[#allocation12_spill] sm:$0xff] }
 0x34c   : > { %5499 = vmatmul.mubr.msk.f32.gmra.mxu1 %vm4047_vm2, %v4026_v0 }
 0x34d   : > { %v4445_v30 = vsub.f32 %v4320_v41, %v4420_v52  ;;  %5755 = vrcp.f32 %v2778_v3  ;;  %5501 = vmatprep.mubr.msk.f32.mxu1 %vm5863_vm0, %v9125_v13 }
 0x34e   : > { %v5752_v58 = vpop.eup %5751 }
 0x34f   : > { %v4477_v44 = vmul.f32 %v7992_v32, %v4445_v30  ;;  %v2827_v62 = vmul.f32 2.0, %v5752_v58  ;;  %v2728_v30 = vmax.f32 %v2673_v9, 0.0 }
 0x351   : > { %v4516_v1 = vsel %vm2445_vm1, %v4477_v44, 0.0  ;;  %v2852_v23 = vsub.f32 %v2727_v5, %v2827_v62  ;;  %v9441_v44 = vld [vmem:[#allocation22_spill] sm:$0xff] }
 0x352   : > { %4517 = vadd.xlane.f32.xlu1 %v4516_v1 }
 0x353   : > { %v2928_v26 = vrot.slane %v2852_v23, %v6338_v37  ;;  %v3053_v47 = vrot.slane %v2852_v23, %v6344_v4  ;;  %v3203_v55 = vrot.slane %v2852_v23, %v6346_v17  ;;  %v3353_v36 = vrot.slane %v2852_v23, %v6357_v8 }
 0x354   : > { %v3503_v59 = vrot.slane %v2852_v23, %v6364_v19  ;;  %v3653_v41 = vrot.slane %v2852_v23, %v6378_v39  ;;  %v3803_v3 = vrot.slane %v2852_v23, %v6383_v54  ;;  %v3953_v1 = vrot.slane %v2852_v23, %v6397_v34  ;;  %v9445_v23 = vld [vmem:[#allocation81_spill] sm:$0xff] }
 0x355   : > { %v5754_v46 = vpop.eup %5753  ;;  %v2977_v20 = vmul.f32 %v2928_v26, %v9437_v31  ;;  %v3102_v63 = vmul.f32 %v3053_v47, %v9438_v25  ;;  %v3252_v43 = vmul.f32 %v3203_v55, %v9439_v45  ;;  %v3402_v53 = vmul.f32 %v3353_v36, %v9440_v7  ;;  %v9443_v36 = vld [vmem:[#allocation86_spill] sm:$0xff] }
 0x356   : > { %v4421_v11 = vmul.f32 2.0, %v5754_v46  ;;  %v3552_v5 = vmul.f32 %v3503_v59, %v9441_v44  ;;  %v3702_v55 = vmul.f32 %v3653_v41, %v7418_v14  ;;  %v9442_v46 = vld [vmem:[#allocation44_spill] sm:$0xff] }
 0x357   : > { %v3127_v2 = vadd.f32 %v3102_v63, %v2977_v20  ;;  %v3852_v31 = vmul.f32 %v3803_v3, %v9442_v46  ;;  %v9450_v46 = vld [vmem:[#allocation7_spill] sm:$0xff] }
 0x358   : > { %v4446_v10 = vsub.f32 %v4321_v49, %v4421_v11  ;;  %v4002_v49 = vmul.f32 %v3953_v1, %v9443_v36 }
 0x359   : > { %v3277_v18 = vadd.f32 %v3252_v43, %v3127_v2  ;;  %v9444_v2 = vld [vmem:[#allocation8_spill] sm:$0xff] }
 0x35a   : > { %v5756_v52 = vpop.eup %5755  ;;  %v4478_v0 = vmul.f32 %v7992_v32, %v4446_v10 }
 0x35b   : > { %v2828_v58 = vmul.f32 2.0, %v5756_v52  ;;  %v3427_v60 = vadd.f32 %v3402_v53, %v3277_v18  ;;  %v9446_v18 = vld [vmem:[#allocation31_spill] sm:$0xff]  ;;  %v9447_v52 = vld [vmem:[#allocation28_spill] sm:$0xff] }
 0x35c   : > { %v4519_v62 = vsel %vm2445_vm1, %v4478_v0, 0.0 }
 0x35d   : > { %v2853_v26 = vsub.f32 %v2728_v30, %v2828_v58  ;;  %4520 = vadd.xlane.f32.xlu0 %v4519_v62  ;;  %v3577_v47 = vadd.f32 %v3552_v5, %v3427_v60  ;;  %v9448_v58 = vld [vmem:[#allocation9_spill] sm:$0xff]  ;;  %v9449_v62 = vld [vmem:[#allocation54_spill] sm:$0xff] }
 0x35f   : > { %v3727_v20 = vadd.f32 %v3702_v55, %v3577_v47  ;;  %v2932_v25 = vrot.slane %v2853_v26, %v6338_v37  ;;  %v3057_v9 = vrot.slane %v2853_v26, %v6344_v4  ;;  %v3207_v63 = vrot.slane %v2853_v26, %v6346_v17 }
 0x360   : > { %v3357_v59 = vrot.slane %v2853_v26, %v6357_v8  ;;  %v3507_v53 = vrot.slane %v2853_v26, %v6364_v19  ;;  %v3657_v3 = vrot.slane %v2853_v26, %v6378_v39  ;;  %v3807_v44 = vrot.slane %v2853_v26, %v6383_v54 }
 0x361   : > { %v3877_v11 = vadd.f32 %v3852_v31, %v3727_v20  ;;  %v2978_v45 = vmul.f32 %v2932_v25, %v9444_v2  ;;  %v3103_v43 = vmul.f32 %v3057_v9, %v9445_v23  ;;  %v3253_v7 = vmul.f32 %v3207_v63, %v9446_v18  ;;  %v9451_v63 = vld [vmem:[#allocation98_spill] sm:$0xff] }
 0x362   : > { %v3403_v0 = vmul.f32 %v3357_v59, %v9447_v52  ;;  %v3553_v60 = vmul.f32 %v3507_v53, %v9448_v58  ;;  %v3703_v1 = vmul.f32 %v3657_v3, %v9449_v62  ;;  %v3957_v47 = vrot.slane %v2853_v26, %v6397_v34 }
 0x363   : > { %v4027_v10 = vadd.f32 %v4002_v49, %v3877_v11  ;;  %v3128_v14 = vadd.f32 %v3103_v43, %v2978_v45  ;;  %v3853_v31 = vmul.f32 %v3807_v44, %v9450_v46 }
 0x364   : > { %v4003_v36 = vmul.f32 %v3957_v47, %v9451_v63 }
 0x365   : > { %5502 = vmatmul.mubr.msk.f32.gmra.mxu1 %vm4047_vm2, %v4027_v10  ;;  %v3278_v41 = vadd.f32 %v3253_v7, %v3128_v14 }
 0x366   : > { %5504 = vmatprep.mubr.msk.f32.mxu1 %vm5863_vm0, %v9125_v13 }
 0x367   : > { %v3428_v30 = vadd.f32 %v3403_v0, %v3278_v41 }
 0x369   : > { %v3578_v5 = vadd.f32 %v3553_v60, %v3428_v30 }
 0x36b   : > { %v3728_v55 = vadd.f32 %v3703_v1, %v3578_v5 }
 0x36c   : > { %v4234_v20 = vpop.f32.mrf.mxu1 }
 0x36d   : > { %v4235_v25 = vadd.f32 %v7849_v21, %v4234_v20  ;;  %v3878_v9 = vadd.f32 %v3853_v31, %v3728_v55 }
 0x36e   : > { %v5482_v49 = vpop.f32.mrf.mxu1 }
 0x36f   : > { %v4347_v11 = vmul.f32 %v4235_v25, %v4235_v25  ;;  %v4028_v2 = vadd.f32 %v4003_v36, %v3878_v9  ;;  %v4322_v18 = vmax.f32 %v4235_v25, 0.0  ;;  %v9452_v9 = vld [vmem:[#allocation33_spill] sm:$0xff] }
 0x370   : > { %v9453_v36 = vld [vmem:[#allocation45_spill] sm:$0xff] }
 0x371   : > { %v4372_v45 = vadd.f32 1.0, %v4347_v11  ;;  %v2677_v23 = vpop.f32.mrf.mxu0  ;;  %5505 = vmatmul.mubr.msk.f32.gmra.mxu1 %vm4047_vm2, %v4028_v2 }
 0x372   : > { %v2678_v43 = vadd.f32 %v8187_v33, %v2677_v23  ;;  %5507 = vmatprep.mubr.msk.f32.mxu1 %vm5863_vm0, %v9125_v13  ;;  %v9454_v23 = vld [vmem:[#allocation55_spill] sm:$0xff] }
 0x373   : > { %5757 = vrcp.f32 %v4372_v45  ;;  %v5426_v26 = vpop.f32.mrf.mxu0 }
 0x374   : > { %v2754_v59 = vmul.f32 %v2678_v43, %v2678_v43  ;;  %v2729_v3 = vmax.f32 %v2678_v43, 0.0 }
 0x376   : > { %v2779_v10 = vadd.f32 1.0, %v2754_v59 }
 0x378   : > { %5759 = vrcp.f32 %v2779_v10 }
 0x380   : > { %v5758_v14 = vpop.eup %5757 }
 0x381   : > { %v4422_v7 = vmul.f32 2.0, %v5758_v14  ;;  %v9455_v14 = vld [vmem:[#allocation57_spill] sm:$0xff] }
 0x383   : > { %v4447_v53 = vsub.f32 %v4322_v18, %v4422_v7 }
 0x385   : > { %v5760_v41 = vpop.eup %5759  ;;  %v4239_v52 = vpop.f32.mrf.mxu1  ;;  %v4479_v0 = vmul.f32 %v7992_v32, %v4447_v53 }
 0x386   : > { %v2829_v30 = vmul.f32 2.0, %v5760_v41  ;;  %v4240_v58 = vadd.f32 %v7849_v21, %v4239_v52 }
 0x387   : > { %v5485_v60 = vpop.f32.mrf.mxu1  ;;  %v4522_v44 = vsel %vm2445_vm1, %v4479_v0, 0.0  ;;  %v9456_v0 = vld [vmem:[#allocation67_spill] sm:$0xff] }
 0x388   : > { %v2854_v5 = vsub.f32 %v2729_v3, %v2829_v30  ;;  %v4348_v62 = vmul.f32 %v4240_v58, %v4240_v58  ;;  %4523 = vadd.xlane.f32.xlu1 %v4522_v44 }
 0x38a   : > { %v4373_v1 = vadd.f32 1.0, %v4348_v62  ;;  %v2936_v55 = vrot.slane %v2854_v5, %v6338_v37  ;;  %v3061_v46 = vrot.slane %v2854_v5, %v6344_v4  ;;  %v3211_v31 = vrot.slane %v2854_v5, %v6346_v17 }
 0x38b   : > { %v2682_v47 = vpop.f32.mrf.mxu0  ;;  %v3361_v11 = vrot.slane %v2854_v5, %v6357_v8  ;;  %v3511_v26 = vrot.slane %v2854_v5, %v6364_v19  ;;  %v3661_v7 = vrot.slane %v2854_v5, %v6378_v39  ;;  %v3811_v30 = vrot.slane %v2854_v5, %v6383_v54 }
 0x38c   : > { %v2683_v20 = vadd.f32 %v8187_v33, %v2682_v47  ;;  %5761 = vrcp.f32 %v4373_v1  ;;  %v2979_v63 = vmul.f32 %v2936_v55, %v9452_v9  ;;  %v3104_v49 = vmul.f32 %v3061_v46, %v9453_v36  ;;  %v9457_v1 = vld [vmem:[#allocation49_spill] sm:$0xff]  ;;  %v9458_v9 = vld [vmem:[#allocation19_spill] sm:$0xff] }
 0x38d   : > { %v5429_v25 = vpop.f32.mrf.mxu0  ;;  %v3254_v43 = vmul.f32 %v3211_v31, %v9454_v23  ;;  %v3404_v18 = vmul.f32 %v3361_v11, %v9455_v14  ;;  %v3554_v3 = vmul.f32 %v3511_v26, %v9456_v0  ;;  %v3704_v47 = vmul.f32 %v3661_v7, %v9457_v1  ;;  %v9459_v11 = vld [vmem:[#allocation69_spill] sm:$0xff]  ;;  %v9461_v1 = vld [vmem:[#allocation39_spill] sm:$0xff] }
 0x38e   : > { %v2755_v2 = vmul.f32 %v2683_v20, %v2683_v20  ;;  %v3129_v45 = vadd.f32 %v3104_v49, %v2979_v63  ;;  %v3961_v55 = vrot.slane %v2854_v5, %v6397_v34  ;;  %v3854_v63 = vmul.f32 %v3811_v30, %v9458_v9 }
 0x38f   : > { %v2730_v7 = vmax.f32 %v2683_v20, 0.0 }
 0x390   : > { %v2780_v59 = vadd.f32 1.0, %v2755_v2  ;;  %v3279_v10 = vadd.f32 %v3254_v43, %v3129_v45  ;;  %v4004_v2 = vmul.f32 %v3961_v55, %v9459_v11  ;;  %v4323_v43 = vmax.f32 %v4240_v58, 0.0  ;;  %v9463_v11 = vld [vmem:[#allocation42_spill] sm:$0xff] }
 0x391   : > { %v4244_v53 = vpop.f32.mrf.mxu1 }
 0x392   : > { %5763 = vrcp.f32 %v2780_v59  ;;  %v4245_v41 = vadd.f32 %v7849_v21, %v4244_v53  ;;  %v3429_v52 = vadd.f32 %v3404_v18, %v3279_v10 }
 0x393   : > { %v5488_v60 = vpop.f32.mrf.mxu1 }
 0x394   : > { %v4349_v44 = vmul.f32 %v4245_v41, %v4245_v41  ;;  %v3579_v62 = vadd.f32 %v3554_v3, %v3429_v52 }
 0x396   : > { %v4374_v46 = vadd.f32 1.0, %v4349_v44  ;;  %v3729_v25 = vadd.f32 %v3704_v47, %v3579_v62  ;;  %v9460_v44 = vld [vmem:[#allocation40_spill] sm:$0xff] }
 0x397   : > { %v2687_v31 = vpop.f32.mrf.mxu0 }
 0x398   : > { %v2688_v36 = vadd.f32 %v8187_v33, %v2687_v31  ;;  %5765 = vrcp.f32 %v4374_v46  ;;  %v3879_v49 = vadd.f32 %v3854_v63, %v3729_v25  ;;  %v4324_v46 = vmax.f32 %v4245_v41, 0.0  ;;  %v9462_v25 = vld [vmem:[#allocation32_spill] sm:$0xff] }
 0x399   : > { %v5432_v21 = vpop.f32.mrf.mxu0  ;;  %v5762_v45 = vpop.eup %5761 }
 0x39a   : > { %v2756_v23 = vmul.f32 %v2688_v36, %v2688_v36  ;;  %v4423_v26 = vmul.f32 2.0, %v5762_v45  ;;  %v4029_v59 = vadd.f32 %v4004_v2, %v3879_v49 }
 0x39c   : > { %v2781_v10 = vadd.f32 1.0, %v2756_v23  ;;  %v4448_v14 = vsub.f32 %v4323_v43, %v4423_v26  ;;  %5508 = vmatmul.mubr.msk.f32.gmra.mxu1 %vm4047_vm2, %v4029_v59  ;;  %v2731_v43 = vmax.f32 %v2688_v36, 0.0 }
 0x39d   : > { %5510 = vmatprep.mubr.msk.f32.mxu1 %vm5863_vm0, %v9125_v13 }
 0x39e   : > { %5767 = vrcp.f32 %v2781_v10  ;;  %v4480_v18 = vmul.f32 %v7992_v32, %v4448_v14  ;;  %v9464_v14 = vld [vmem:[#allocation72_spill] sm:$0xff] }
 0x39f   : > { %v5764_v5 = vpop.eup %5763 }
 0x3a0   : > { %v2830_v53 = vmul.f32 2.0, %v5764_v5  ;;  %v4525_v52 = vsel %vm2445_vm1, %v4480_v18, 0.0 }
 0x3a1   : > { %4526 = vadd.xlane.f32.xlu1 %v4525_v52 }
 0x3a2   : > { %v2855_v0 = vsub.f32 %v2730_v7, %v2830_v53 }
 0x3a4   : > { %v2940_v58 = vrot.slane %v2855_v0, %v6338_v37  ;;  %v3065_v3 = vrot.slane %v2855_v0, %v6344_v4  ;;  %v3215_v30 = vrot.slane %v2855_v0, %v6346_v17  ;;  %v3365_v55 = vrot.slane %v2855_v0, %v6357_v8 }
 0x3a5   : > { %v5766_v60 = vpop.eup %5765  ;;  %v3515_v63 = vrot.slane %v2855_v0, %v6364_v19  ;;  %v3665_v45 = vrot.slane %v2855_v0, %v6378_v39  ;;  %v3815_v5 = vrot.slane %v2855_v0, %v6383_v54  ;;  %v3965_v7 = vrot.slane %v2855_v0, %v6397_v34  ;;  %v9469_v0 = vld [vmem:[#allocation83_spill] sm:$0xff] }
 0x3a6   : > { %v2980_v62 = vmul.f32 %v2940_v58, %v9460_v44  ;;  %v3105_v47 = vmul.f32 %v3065_v3, %v9461_v1  ;;  %v4424_v20 = vmul.f32 2.0, %v5766_v60  ;;  %v3255_v9 = vmul.f32 %v3215_v30, %v9462_v25  ;;  %v9465_v58 = vld [vmem:[#allocation21_spill] sm:$0xff]  ;;  %v9466_v60 = vld [vmem:[#allocation47_spill] sm:$0xff] }
 0x3a7   : > { %v3405_v2 = vmul.f32 %v3365_v55, %v9463_v11  ;;  %v3555_v41 = vmul.f32 %v3515_v63, %v9464_v14  ;;  %v3705_v3 = vmul.f32 %v3665_v45, %v9465_v58  ;;  %v3855_v36 = vmul.f32 %v3815_v5, %v9466_v60  ;;  %v9467_v1 = vld [vmem:[#allocation73_spill] sm:$0xff] }
 0x3a8   : > { %v3130_v31 = vadd.f32 %v3105_v47, %v2980_v62  ;;  %v4449_v21 = vsub.f32 %v4324_v46, %v4424_v20  ;;  %v4005_v47 = vmul.f32 %v3965_v7, %v9467_v1  ;;  %v9468_v20 = vld [vmem:[#allocation64_spill] sm:$0xff] }
 0x3a9   : > { %v9475_v1 = vld [vmem:[#allocation100_spill] sm:$0xff] }
 0x3aa   : > { %v3280_v49 = vadd.f32 %v3255_v9, %v3130_v31  ;;  %v4481_v26 = vmul.f32 %v7992_v32, %v4449_v21 }
 0x3ab   : > { %v5768_v23 = vpop.eup %5767 }
 0x3ac   : > { %v2831_v59 = vmul.f32 2.0, %v5768_v23  ;;  %v3430_v10 = vadd.f32 %v3405_v2, %v3280_v49  ;;  %v4528_v18 = vsel %vm2445_vm1, %v4481_v26, 0.0  ;;  %v9470_v49 = vld [vmem:[#allocation46_spill] sm:$0xff]  ;;  %v9471_v23 = vld [vmem:[#allocation11_spill] sm:$0xff] }
 0x3ad   : > { %4529 = vadd.xlane.f32.xlu1 %v4528_v18  ;;  %v9473_v18 = vld [vmem:[#allocation56_spill] sm:$0xff] }
 0x3ae   : > { %v2856_v53 = vsub.f32 %v2731_v43, %v2831_v59  ;;  %v3580_v52 = vadd.f32 %v3555_v41, %v3430_v10  ;;  %v9472_v10 = vld [vmem:[#allocation75_spill] sm:$0xff] }
 0x3b0   : > { %v3730_v30 = vadd.f32 %v3705_v3, %v3580_v52  ;;  %v2944_v44 = vrot.slane %v2856_v53, %v6338_v37  ;;  %v3069_v62 = vrot.slane %v2856_v53, %v6344_v4  ;;  %v3219_v55 = vrot.slane %v2856_v53, %v6346_v17  ;;  %v9474_v3 = vld [vmem:[#allocation102_spill] sm:$0xff] }
 0x3b1   : > { %v3369_v9 = vrot.slane %v2856_v53, %v6357_v8  ;;  %v3519_v2 = vrot.slane %v2856_v53, %v6364_v19  ;;  %v3669_v26 = vrot.slane %v2856_v53, %v6378_v39  ;;  %v3819_v41 = vrot.slane %v2856_v53, %v6383_v54 }
 0x3b2   : > { %v3880_v46 = vadd.f32 %v3855_v36, %v3730_v30  ;;  %v2981_v31 = vmul.f32 %v2944_v44, %v9468_v20  ;;  %v3106_v25 = vmul.f32 %v3069_v62, %v9469_v0  ;;  %v3256_v11 = vmul.f32 %v3219_v55, %v9470_v49  ;;  %v8340_v36 = vld [vmem:[%s8806_s5] ss:$0 sm:$0xff] }
 0x3b3   : > { %v3406_v43 = vmul.f32 %v3369_v9, %v9471_v23  ;;  %v3556_v14 = vmul.f32 %v3519_v2, %v9472_v10  ;;  %v3706_v7 = vmul.f32 %v3669_v26, %v9473_v18  ;;  %v3969_v52 = vrot.slane %v2856_v53, %v6397_v34 }
 0x3b4   : > { %v4030_v63 = vadd.f32 %v4005_v47, %v3880_v46  ;;  %v3131_v21 = vadd.f32 %v3106_v25, %v2981_v31  ;;  %v3856_v30 = vmul.f32 %v3819_v41, %v9474_v3 }
 0x3b5   : > { %v4006_v47 = vmul.f32 %v3969_v52, %v9475_v1 }
 0x3b6   : > { %5511 = vmatmul.mubr.msk.f32.gmra.mxu1 %vm4047_vm2, %v4030_v63  ;;  %v3281_v45 = vadd.f32 %v3256_v11, %v3131_v21 }
 0x3b7   : > { %5513 = vmatprep.mubr.msk.f32.mxu1 %vm5863_vm0, %v9125_v13 }
 0x3b8   : > { %v3431_v59 = vadd.f32 %v3406_v43, %v3281_v45 }
 0x3ba   : > { %v3581_v5 = vadd.f32 %v3556_v14, %v3431_v59 }
 0x3bc   : > { %v3731_v58 = vadd.f32 %v3706_v7, %v3581_v5 }
 0x3bd   : > { %v4249_v60 = vpop.f32.mrf.mxu1 }
 0x3be   : > { %v4250_v44 = vadd.f32 %v8340_v36, %v4249_v60  ;;  %v3881_v62 = vadd.f32 %v3856_v30, %v3731_v58 }
 0x3bf   : > { %v5491_v55 = vpop.f32.mrf.mxu1 }
 0x3c0   : > { %v4350_v46 = vmul.f32 %v4250_v44, %v4250_v44  ;;  %v4031_v20 = vadd.f32 %v4006_v47, %v3881_v62  ;;  %v4325_v49 = vmax.f32 %v4250_v44, 0.0  ;;  %v9476_v47 = vld [vmem:[#allocation53_spill] sm:$0xff] }
 0x3c2   : > { %v4375_v31 = vadd.f32 1.0, %v4350_v46  ;;  %v2692_v0 = vpop.f32.mrf.mxu0  ;;  %5514 = vmatmul.mubr.msk.f32.gmra.mxu1 %vm4047_vm2, %v4031_v20  ;;  %v9477_v46 = vld [vmem:[#allocation62_spill] sm:$0xff] }
 0x3c3   : > { %v2693_v53 = vadd.f32 %v8187_v33, %v2692_v0  ;;  %5516 = vmatprep.mubr.msk.f32.mxu1 %vm5863_vm0, %v9125_v13 }
 0x3c4   : > { %5769 = vrcp.f32 %v4375_v31  ;;  %v5435_v25 = vpop.f32.mrf.mxu0 }
 0x3c5   : > { %v2757_v9 = vmul.f32 %v2693_v53, %v2693_v53  ;;  %v2732_v26 = vmax.f32 %v2693_v53, 0.0 }
 0x3c7   : > { %v2782_v63 = vadd.f32 1.0, %v2757_v9  ;;  %v9478_v9 = vld [vmem:[#allocation82_spill] sm:$0xff] }
 0x3c9   : > { %5771 = vrcp.f32 %v2782_v63 }
 0x3d1   : > { %v5770_v21 = vpop.eup %5769 }
 0x3d2   : > { %v4425_v11 = vmul.f32 2.0, %v5770_v21 }
 0x3d4   : > { %v4450_v2 = vsub.f32 %v4325_v49, %v4425_v11 }
 0x3d6   : > { %v5772_v45 = vpop.eup %5771  ;;  %v4482_v43 = vmul.f32 %v7992_v32, %v4450_v2  ;;  %v9479_v2 = vld [vmem:[#allocation60_spill] sm:$0xff] }
 0x3d7   : > { %v2832_v59 = vmul.f32 2.0, %v5772_v45  ;;  %v4254_v14 = vpop.f32.mrf.mxu1 }
 0x3d8   : > { %v2697_v23 = vpop.f32.mrf.mxu0  ;;  %v4255_v41 = vadd.f32 %v8340_v36, %v4254_v14  ;;  %v4531_v18 = vsel %vm2445_vm1, %v4482_v43, 0.0 }
 0x3d9   : > { %v2698_v10 = vadd.f32 %v8187_v33, %v2697_v23  ;;  %v2857_v7 = vsub.f32 %v2732_v26, %v2832_v59  ;;  %v5494_v58 = vpop.f32.mrf.mxu1  ;;  %4532 = vadd.xlane.f32.xlu1 %v4531_v18 }
 0x3da   : > { %v5438_v5 = vpop.f32.mrf.mxu0  ;;  %v4351_v3 = vmul.f32 %v4255_v41, %v4255_v41 }
 0x3db   : > { %v2758_v52 = vmul.f32 %v2698_v10, %v2698_v10  ;;  %v2948_v60 = vrot.slane %v2857_v7, %v6338_v37  ;;  %v3073_v32 = vrot.slane %v2857_v7, %v6344_v4  ;;  %v3223_v44 = vrot.slane %v2857_v7, %v6346_v17 }
 0x3dc   : > { %v4376_v62 = vadd.f32 1.0, %v4351_v3  ;;  %v3373_v31 = vrot.slane %v2857_v7, %v6357_v8  ;;  %v3523_v21 = vrot.slane %v2857_v7, %v6364_v19  ;;  %v3673_v23 = vrot.slane %v2857_v7, %v6378_v39 }
 0x3dd   : > { %v2783_v30 = vadd.f32 1.0, %v2758_v52  ;;  %v2982_v55 = vmul.f32 %v2948_v60, %v9476_v47  ;;  %v3107_v20 = vmul.f32 %v3073_v32, %v9477_v46  ;;  %v3257_v63 = vmul.f32 %v3223_v44, %v9478_v9  ;;  %v9480_v44 = vld [vmem:[#allocation17_spill] sm:$0xff] }
 0x3de   : > { %v3407_v45 = vmul.f32 %v3373_v31, %v9479_v2  ;;  %v3557_v14 = vmul.f32 %v3523_v21, %v9403_v22  ;;  %v3823_v5 = vrot.slane %v2857_v7, %v6383_v54  ;;  %v3707_v3 = vmul.f32 %v3673_v23, %v7837_v12  ;;  %v9481_v47 = vld [vmem:[#allocation101_spill] sm:$0xff] }
 0x3df   : > { %5773 = vrcp.f32 %v2783_v30  ;;  %v3132_v25 = vadd.f32 %v3107_v20, %v2982_v55  ;;  %v3973_v30 = vrot.slane %v2857_v7, %v6397_v34  ;;  %v4326_v9 = vmax.f32 %v4255_v41, 0.0  ;;  %v8387_v41 = vld [vmem:[%s8807_s6] ss:$0 sm:$0xff] }
 0x3e0   : > { %v2702_v1 = vpop.f32.mrf.mxu0  ;;  %5775 = vrcp.f32 %v4376_v62  ;;  %v3857_v62 = vmul.f32 %v3823_v5, %v9480_v44  ;;  %v9483_v5 = vld [vmem:[#allocation89_spill] sm:$0xff]  ;;  %v9484_v44 = vld [vmem:[#allocation88_spill] sm:$0xff] }
 0x3e1   : > { %v2703_v0 = vadd.f32 %v8187_v33, %v2702_v1  ;;  %v3282_v11 = vadd.f32 %v3257_v63, %v3132_v25  ;;  %v4007_v55 = vmul.f32 %v3973_v30, %v9481_v47 }
 0x3e2   : > { %v5441_v53 = vpop.f32.mrf.mxu0 }
 0x3e3   : > { %v2759_v49 = vmul.f32 %v2703_v0, %v2703_v0  ;;  %v3432_v59 = vadd.f32 %v3407_v45, %v3282_v11  ;;  %v2733_v53 = vmax.f32 %v2698_v10, 0.0 }
 0x3e4   : > { %v4259_v26 = vpop.f32.mrf.mxu1 }
 0x3e5   : > { %v2784_v43 = vadd.f32 1.0, %v2759_v49  ;;  %v8366_v18 = vadd.f32 %v8340_v36, %v4259_v26  ;;  %v3582_v58 = vadd.f32 %v3557_v14, %v3432_v59  ;;  %v9482_v59 = vld [vmem:[#allocation41_spill] sm:$0xff] }
 0x3e6   : > { %v5497_v52 = vpop.f32.mrf.mxu1 }
 0x3e7   : > { %5777 = vrcp.f32 %v2784_v43  ;;  %v4352_v60 = vmul.f32 %v8366_v18, %v8366_v18  ;;  %v3732_v32 = vadd.f32 %v3707_v3, %v3582_v58  ;;  %v2734_v3 = vmax.f32 %v2703_v0, 0.0 }
 0x3e9   : > { %v4377_v1 = vadd.f32 1.0, %v4352_v60  ;;  %v3882_v22 = vadd.f32 %v3857_v62, %v3732_v32 }
 0x3ea   : > { %v2707_v20 = vpop.f32.mrf.mxu0 }
 0x3eb   : > { %5779 = vrcp.f32 %v4377_v1  ;;  %v8375_v12 = vadd.f32 %v8187_v33, %v2707_v20  ;;  %v4032_v7 = vadd.f32 %v4007_v55, %v3882_v22  ;;  %v9485_v55 = vld [vmem:[#allocation71_spill] sm:$0xff] }
 0x3ec   : > { %v5774_v46 = vpop.eup %5773  ;;  %v5444_v21 = vpop.f32.mrf.mxu0 }
 0x3ed   : > { %v5776_v31 = vpop.eup %5775  ;;  %v2833_v25 = vmul.f32 2.0, %v5774_v46  ;;  %v2760_v11 = vmul.f32 %v8375_v12, %v8375_v12  ;;  %5517 = vmatmul.mubr.msk.f32.gmra.mxu1 %vm4047_vm2, %v4032_v7 }
 0x3ee   : > { %v4426_v63 = vmul.f32 2.0, %v5776_v31  ;;  %5519 = vmatprep.mubr.msk.f32.mxu1 %vm5863_vm0, %v9125_v13  ;;  %v4327_v31 = vmax.f32 %v8366_v18, 0.0 }
 0x3ef   : > { %v2858_v49 = vsub.f32 %v2733_v53, %v2833_v25  ;;  %v2785_v45 = vadd.f32 1.0, %v2760_v11 }
 0x3f0   : > { %v4451_v2 = vsub.f32 %v4326_v9, %v4426_v63  ;;  %v9486_v9 = vld [vmem:[#allocation85_spill] sm:$0xff] }
 0x3f1   : > { %v2952_v10 = vrot.slane %v2858_v49, %v6338_v37  ;;  %v3077_v33 = vrot.slane %v2858_v49, %v6344_v4  ;;  %v3227_v43 = vrot.slane %v2858_v49, %v6346_v17  ;;  %5781 = vrcp.f32 %v2785_v45  ;;  %v9487_v45 = vld [vmem:[#allocation34_spill] sm:$0xff] }
 0x3f2   : > { %v4483_v23 = vmul.f32 %v8387_v41, %v4451_v2  ;;  %v3377_v58 = vrot.slane %v2858_v49, %v6357_v8  ;;  %v3527_v1 = vrot.slane %v2858_v49, %v6364_v19  ;;  %v3677_v20 = vrot.slane %v2858_v49, %v6378_v39 }
 0x3f3   : > { %v2983_v14 = vmul.f32 %v2952_v10, %v9482_v59  ;;  %v3108_v52 = vmul.f32 %v3077_v33, %v9483_v5  ;;  %v3258_v62 = vmul.f32 %v3227_v43, %v9484_v44  ;;  %v3827_v21 = vrot.slane %v2858_v49, %v6383_v54  ;;  %v9488_v33 = vld [vmem:[#allocation3_spill] sm:$0xff] }
 0x3f4   : > { %v5778_v26 = vpop.eup %5777  ;;  %v4534_v60 = vsel %vm2445_vm1, %v4483_v23, 0.0  ;;  %v3408_v46 = vmul.f32 %v3377_v58, %v9485_v55  ;;  %v3558_v63 = vmul.f32 %v3527_v1, %v9486_v9  ;;  %v3977_v59 = vrot.slane %v2858_v49, %v6397_v34 }
 0x3f5   : > { %v2834_v30 = vmul.f32 2.0, %v5778_v26  ;;  %4535 = vadd.xlane.f32.xlu1 %v4534_v60  ;;  %v3133_v32 = vadd.f32 %v3108_v52, %v2983_v14  ;;  %v3708_v26 = vmul.f32 %v3677_v20, %v7953_v40  ;;  %v9489_v52 = vld [vmem:[#allocation78_spill] sm:$0xff]  ;;  %v3858_v60 = vmul.f32 %v3827_v21, %v8046_v48 }
 0x3f6   : > { %v4008_v40 = vmul.f32 %v3977_v59, %v8103_v28  ;;  %v2735_v48 = vmax.f32 %v8375_v12, 0.0 }
 0x3f7   : > { %v2859_v22 = vsub.f32 %v2734_v3, %v2834_v30  ;;  %v3283_v47 = vadd.f32 %v3258_v62, %v3133_v32  ;;  %v9490_v62 = vld [vmem:[#allocation94_spill] sm:$0xff] }
 0x3f8   : > { %v5780_v25 = vpop.eup %5779 }
 0x3f9   : > { %v2956_v53 = vrot.slane %v2859_v22, %v6338_v37  ;;  %v3081_v0 = vrot.slane %v2859_v22, %v6344_v4  ;;  %v3433_v7 = vadd.f32 %v3408_v46, %v3283_v47  ;;  %v3231_v11 = vrot.slane %v2859_v22, %v6346_v17 }
 0x3fa   : > { %v4427_v2 = vmul.f32 2.0, %v5780_v25  ;;  %v3381_v43 = vrot.slane %v2859_v22, %v6357_v8  ;;  %v3531_v3 = vrot.slane %v2859_v22, %v6364_v19  ;;  %v3681_v47 = vrot.slane %v2859_v22, %v6378_v39 }
 0x3fb   : > { %v2984_v10 = vmul.f32 %v2956_v53, %v9487_v45  ;;  %v3109_v23 = vmul.f32 %v3081_v0, %v9488_v33  ;;  %v3583_v18 = vadd.f32 %v3558_v63, %v3433_v7  ;;  %v3259_v58 = vmul.f32 %v3231_v11, %v9489_v52 }
 0x3fc   : > { %v4452_v14 = vsub.f32 %v4327_v31, %v4427_v2  ;;  %v3409_v1 = vmul.f32 %v3381_v43, %v9490_v62  ;;  %v3559_v31 = vmul.f32 %v3531_v3, %v8020_v57  ;;  %v3831_v53 = vrot.slane %v2859_v22, %v6383_v54 }
 0x3fd   : > { %v3134_v5 = vadd.f32 %v3109_v23, %v2984_v10  ;;  %v3733_v30 = vadd.f32 %v3708_v26, %v3583_v18  ;;  %v3709_v9 = vmul.f32 %v3681_v47, %v8077_v50  ;;  %v3981_v63 = vrot.slane %v2859_v22, %v6397_v34  ;;  %v9491_v18 = vld [vmem:[#allocation58_spill] sm:$0xff] }
 0x3fe   : > { %v4484_v32 = vmul.f32 %v8387_v41, %v4452_v14  ;;  %v5782_v49 = vpop.eup %5781  ;;  %v3859_v57 = vmul.f32 %v3831_v53, %v8129_v42 }
 0x3ff   : > { %v3284_v44 = vadd.f32 %v3259_v58, %v3134_v5  ;;  %v3883_v55 = vadd.f32 %v3858_v60, %v3733_v30  ;;  %v2835_v0 = vmul.f32 2.0, %v5782_v49  ;;  %v4009_v50 = vmul.f32 %v3981_v63, %v8036_v29 }
 0x400   : > { %v4537_v46 = vsel %vm2445_vm1, %v4484_v32, 0.0 }
 0x401   : > { %v3434_v20 = vadd.f32 %v3409_v1, %v3284_v44  ;;  %4538 = vadd.xlane.f32.xlu0 %v4537_v46  ;;  %v4033_v25 = vadd.f32 %v4008_v40, %v3883_v55  ;;  %v2860_v21 = vsub.f32 %v2735_v48, %v2835_v0 }
 0x403   : > { %v3584_v7 = vadd.f32 %v3559_v31, %v3434_v20  ;;  %5520 = vmatmul.mubr.msk.f32.gmra.mxu1 %vm4047_vm2, %v4033_v25  ;;  %v2960_v11 = vrot.slane %v2860_v21, %v6338_v37  ;;  %v3085_v12 = vrot.slane %v2860_v21, %v6344_v4  ;;  %v3235_v2 = vrot.slane %v2860_v21, %v6346_v17 }
 0x404   : > { %5522 = vmatprep.mubr.msk.f32.mxu1 %vm5863_vm0, %v9125_v13  ;;  %v3385_v33 = vrot.slane %v2860_v21, %v6357_v8  ;;  %v3535_v42 = vrot.slane %v2860_v21, %v6364_v19  ;;  %v3685_v4 = vrot.slane %v2860_v21, %v6378_v39  ;;  %v3835_v8 = vrot.slane %v2860_v21, %v6383_v54 }
 0x405   : > { %v3734_v28 = vadd.f32 %v3709_v9, %v3584_v7  ;;  %v2985_v22 = vmul.f32 %v2960_v11, %v7893_v61  ;;  %v3110_v10 = vmul.f32 %v3085_v12, %v7919_v35  ;;  %v3260_v26 = vmul.f32 %v3235_v2, %v9491_v18 }
 0x406   : > { %v3410_v37 = vmul.f32 %v3385_v33, %v7963_v27  ;;  %v3560_v35 = vmul.f32 %v3535_v42, %v8003_v15  ;;  %v3710_v14 = vmul.f32 %v3685_v4, %v8159_v38  ;;  %v3985_v19 = vrot.slane %v2860_v21, %v6397_v34 }
 0x407   : > { %v3884_v45 = vadd.f32 %v3859_v57, %v3734_v28  ;;  %v3135_v43 = vadd.f32 %v3110_v10, %v2985_v22  ;;  %v3860_v58 = vmul.f32 %v3835_v8, %v8178_v51 }
 0x408   : > { %v4010_v39 = vmul.f32 %v3985_v19, %v8194_v16 }
 0x409   : > { %v4034_v23 = vadd.f32 %v4009_v50, %v3884_v45  ;;  %v3285_v17 = vadd.f32 %v3260_v26, %v3135_v43 }
 0x40b   : > { %5523 = vmatmul.mubr.msk.f32.gmra.mxu1 %vm4047_vm2, %v4034_v23  ;;  %v3435_v61 = vadd.f32 %v3410_v37, %v3285_v17 }
 0x40c   : > { %5525 = vmatprep.mubr.msk.f32.mxu1 %vm5863_vm0, %v9125_v13  ;;  %v4264_v29 = vpop.f32.mrf.mxu1 }
 0x40d   : > { %v3585_v59 = vadd.f32 %v3560_v35, %v3435_v61  ;;  %v4265_v5 = vadd.f32 %v8340_v36, %v4264_v29 }
 0x40e   : > { %v5500_v52 = vpop.f32.mrf.mxu1 }
 0x40f   : > { %v3735_v13 = vadd.f32 %v3710_v14, %v3585_v59  ;;  %v4353_v27 = vmul.f32 %v4265_v5, %v4265_v5  ;;  %v4328_v60 = vmax.f32 %v4265_v5, 0.0 }
 0x411   : > { %v3885_v3 = vadd.f32 %v3860_v58, %v3735_v13  ;;  %v4378_v30 = vadd.f32 1.0, %v4353_v27 }
 0x413   : > { %v4035_v15 = vadd.f32 %v4010_v39, %v3885_v3  ;;  %5783 = vrcp.f32 %v4378_v30 }
 0x415   : > { %5526 = vmatmul.mubr.msk.f32.gmra.mxu1 %vm4047_vm2, %v4035_v15 }
 0x420   : > { %v5784_v54 = vpop.eup %5783 }
 0x421   : > { %v4428_v38 = vmul.f32 2.0, %v5784_v54 }
 0x423   : > { %v4453_v32 = vsub.f32 %v4328_v60, %v4428_v38  ;;  %v5006_v38 = vld [vmem:[%s8809_s8 + $0x8] sm:$0xff] }
 0x424   : > { %5528 = vmatprep.subr.mxu0 %v5006_v38 }
 0x425   : > { %v4269_v34 = vpop.f32.mrf.mxu1  ;;  %v4485_v44 = vmul.f32 %v8387_v41, %v4453_v32  ;;  %5529 = vmatpush3.msra.mxu0 %v5006_v38 }
 0x426   : > { %v4270_v62 = vadd.f32 %v8340_v36, %v4269_v34 }
 0x427   : > { %v5503_v1 = vpop.f32.mrf.mxu1  ;;  %v4540_v51 = vsel %vm2445_vm1, %v4485_v44, 0.0 }
 0x428   : > { %v4354_v47 = vmul.f32 %v4270_v62, %v4270_v62  ;;  %4541 = vadd.xlane.f32.xlu0 %v4540_v51  ;;  %v4329_v53 = vmax.f32 %v4270_v62, 0.0 }
 0x42a   : > { %v4379_v16 = vadd.f32 1.0, %v4354_v47 }
 0x42c   : > { %5785 = vrcp.f32 %v4379_v16 }
 0x431   : > { %v4274_v55 = vpop.f32.mrf.mxu1 }
 0x432   : > { %v4275_v40 = vadd.f32 %v8340_v36, %v4274_v55 }
 0x433   : > { %v5506_v49 = vpop.f32.mrf.mxu1 }
 0x434   : > { %v4355_v46 = vmul.f32 %v4275_v40, %v4275_v40  ;;  %v4330_v63 = vmax.f32 %v4275_v40, 0.0 }
 0x436   : > { %v4380_v20 = vadd.f32 1.0, %v4355_v46 }
 0x438   : > { %5787 = vrcp.f32 %v4380_v20 }
 0x439   : > { %v5786_v31 = vpop.eup %5785 }
 0x43a   : > { %v4429_v48 = vmul.f32 2.0, %v5786_v31 }
 0x43c   : > { %v4454_v0 = vsub.f32 %v4329_v53, %v4429_v48 }
 0x43e   : > { %v4486_v25 = vmul.f32 %v8387_v41, %v4454_v0 }
 0x440   : > { %v4543_v7 = vsel %vm2445_vm1, %v4486_v25, 0.0 }
 0x441   : > { %4544 = vadd.xlane.f32.xlu0 %v4543_v7 }
 0x445   : > { %v5788_v9 = vpop.eup %5787 }
 0x446   : > { %v4430_v21 = vmul.f32 2.0, %v5788_v9 }
 0x448   : > { %v4455_v28 = vsub.f32 %v4330_v63, %v4430_v21 }
 0x44a   : > { %v4487_v57 = vmul.f32 %v8387_v41, %v4455_v28 }
 0x44c   : > { %v4546_v11 = vsel %vm2445_vm1, %v4487_v57, 0.0 }
 0x44d   : > { %4547 = vadd.xlane.f32.xlu1 %v4546_v11 }
 0x45c   : > { %v4279_v12 = vpop.f32.mrf.mxu1 }
 0x45d   : > { %v4280_v2 = vadd.f32 %v8340_v36, %v4279_v12 }
 0x45e   : > { %v5509_v45 = vpop.f32.mrf.mxu1 }
 0x45f   : > { %v4356_v50 = vmul.f32 %v4280_v2, %v4280_v2  ;;  %v4331_v33 = vmax.f32 %v4280_v2, 0.0 }
 0x461   : > { %v4381_v22 = vadd.f32 1.0, %v4356_v50 }
 0x463   : > { %5789 = vrcp.f32 %v4381_v22 }
 0x470   : > { %v5790_v10 = vpop.eup %5789 }
 0x471   : > { %v4431_v23 = vmul.f32 2.0, %v5790_v10 }
 0x473   : > { %v4456_v43 = vsub.f32 %v4331_v33, %v4431_v23 }
 0x475   : > { %v4488_v26 = vmul.f32 %v8387_v41, %v4456_v43 }
 0x476   : > { %v4284_v18 = vpop.f32.mrf.mxu1 }
 0x477   : > { %v4285_v42 = vadd.f32 %v8340_v36, %v4284_v18  ;;  %v4549_v37 = vsel %vm2445_vm1, %v4488_v26, 0.0 }
 0x478   : > { %v5512_v17 = vpop.f32.mrf.mxu1  ;;  %4550 = vadd.xlane.f32.xlu0 %v4549_v37 }
 0x479   : > { %v4357_v4 = vmul.f32 %v4285_v42, %v4285_v42  ;;  %v4332_v5 = vmax.f32 %v4285_v42, 0.0  ;;  %v5005_v42 = vld [vmem:[%s8809_s8] sm:$0xff] }
 0x47a   : > { %5530 = vmatprep.subr.mxu0 %v5005_v42 }
 0x47b   : > { %v4382_v61 = vadd.f32 1.0, %v4357_v4  ;;  %5531 = vmatpush3.msra.mxu0 %v5005_v42 }
 0x47d   : > { %5791 = vrcp.f32 %v4382_v61 }
 0x482   : > { %v4289_v35 = vpop.f32.mrf.mxu1 }
 0x483   : > { %v4290_v8 = vadd.f32 %v8340_v36, %v4289_v35 }
 0x484   : > { %v5515_v29 = vpop.f32.mrf.mxu1 }
 0x485   : > { %v4358_v59 = vmul.f32 %v4290_v8, %v4290_v8  ;;  %v4333_v39 = vmax.f32 %v4290_v8, 0.0 }
 0x487   : > { %v4383_v14 = vadd.f32 1.0, %v4358_v59  ;;  %v5295_v59 = vld [vmem:[#allocation2] ss:$0 sm:$0xff] }
 0x489   : > { %5793 = vrcp.f32 %v4383_v14  ;;  %v4497_v14 = vpop.xlane.xlu0 %4496 }
 0x48a   : > { %v5792_v19 = vpop.eup %5791 }
 0x48b   : > { %v4432_v52 = vmul.f32 2.0, %v5792_v19 }
 0x48d   : > { %v4457_v13 = vsub.f32 %v4332_v5, %v4432_v52  ;;  %v4503_v19 = vpop.xlane.xlu0 %4502  ;;  %v9492_v5 = vld [vmem:[#allocation77_spill] sm:$0xff] }
 0x48e   : > { %v4570_v52 = vmul.f32 %v4497_v14, %v9492_v5 }
 0x48f   : > { %v4489_v58 = vmul.f32 %v8387_v41, %v4457_v13 }
 0x491   : > { %v4552_v27 = vsel %vm2445_vm1, %v4489_v58, 0.0  ;;  %v4506_v13 = vpop.xlane.xlu0 %4505  ;;  %v4500_v58 = vpop.xlane.xlu1 %4499 }
 0x492   : > { %4553 = vadd.xlane.f32.xlu1 %v4552_v27  ;;  %v4595_v27 = vsel %vm2445_vm1, %v4570_v52, 0.0  ;;  %v9506_v52 = vld [vmem:[#allocation43_spill] sm:$0xff] }
 0x496   : > { %v5794_v3 = vpop.eup %5793 }
 0x497   : > { %v4433_v30 = vmul.f32 2.0, %v5794_v3  ;;  %v4509_v3 = vpop.xlane.xlu0 %4508 }
 0x499   : > { %v4458_v15 = vsub.f32 %v4333_v39, %v4433_v30  ;;  %v4596_v39 = vrot.slane %v4595_v27, 4  ;;  %v4518_v30 = vpop.xlane.xlu1 %4517 }
 0x49b   : > { %v4490_v54 = vmul.f32 %v8387_v41, %v4458_v15  ;;  %v9493_v15 = vld [vmem:[#allocation80_spill] sm:$0xff]  ;;  %v4512_v38 = vpop.xlane.xlu0 %4511 }
 0x49d   : > { %v4555_v60 = vsel %vm2445_vm1, %v4490_v54, 0.0  ;;  %v4571_v54 = vmul.f32 %v4500_v58, %v9493_v15 }
 0x49e   : > { %4556 = vadd.xlane.f32.xlu1 %v4555_v60  ;;  %v4597_v60 = vadd.f32 %v4596_v39, %v4595_v27 }
 0x4ad   : > { %v4294_v32 = vpop.f32.mrf.mxu1 }
 0x4ae   : > { %v4295_v34 = vadd.f32 %v8340_v36, %v4294_v32  ;;  %v4602_v32 = vsel %vm2445_vm1, %v4571_v54, 0.0 }
 0x4af   : > { %v5518_v44 = vpop.f32.mrf.mxu1 }
 0x4b0   : > { %v4359_v62 = vmul.f32 %v4295_v34, %v4295_v34  ;;  %v4334_v16 = vmax.f32 %v4295_v34, 0.0  ;;  %v4598_v34 = vrot.slane %v4597_v60, 2 }
 0x4b2   : > { %v4384_v1 = vadd.f32 1.0, %v4359_v62  ;;  %v4515_v62 = vpop.xlane.xlu0 %4514 }
 0x4b4   : > { %5795 = vrcp.f32 %v4384_v1  ;;  %v4603_v1 = vrot.slane %v4602_v32, 4 }
 0x4c1   : > { %v5796_v51 = vpop.eup %5795 }
 0x4c2   : > { %v4434_v55 = vmul.f32 2.0, %v5796_v51  ;;  %v4599_v51 = vadd.f32 %v4598_v34, %v4597_v60  ;;  %v9507_v60 = vld [vmem:[#allocation27_spill] sm:$0xff] }
 0x4c3   : > { %v4299_v47 = vpop.f32.mrf.mxu1 }
 0x4c4   : > { %v4300_v40 = vadd.f32 %v8340_v36, %v4299_v47  ;;  %v4459_v46 = vsub.f32 %v4334_v16, %v4434_v55  ;;  %v4521_v16 = vpop.xlane.xlu0 %4520  ;;  %v4604_v55 = vadd.f32 %v4603_v1, %v4602_v32 }
 0x4c5   : > { %v5521_v49 = vpop.f32.mrf.mxu1 }
 0x4c6   : > { %v4360_v20 = vmul.f32 %v4300_v40, %v4300_v40  ;;  %v4491_v53 = vmul.f32 %v8387_v41, %v4459_v46  ;;  %v4335_v57 = vmax.f32 %v4300_v40, 0.0  ;;  %v9494_v40 = vld [vmem:[#allocation87_spill] sm:$0xff]  ;;  %v4600_v46 = vrot.slane %v4599_v51, 1 }
 0x4c7   : > { %v4572_v49 = vmul.f32 %v4503_v19, %v9494_v40  ;;  %v9505_v19 = vld [vmem:[#allocation6_spill] sm:$0xff] }
 0x4c8   : > { %v4385_v31 = vadd.f32 1.0, %v4360_v20  ;;  %v4558_v0 = vsel %vm2445_vm1, %v4491_v53, 0.0  ;;  %v9495_v20 = vld [vmem:[#allocation5_spill] sm:$0xff] }
 0x4c9   : > { %4559 = vadd.xlane.f32.xlu0 %v4558_v0 }
 0x4ca   : > { %5797 = vrcp.f32 %v4385_v31  ;;  %v4573_v31 = vmul.f32 %v4506_v13, %v9495_v20 }
 0x4cb   : > { %v4304_v48 = vpop.f32.mrf.mxu1 }
 0x4cc   : > { %v4305_v25 = vadd.f32 %v8340_v36, %v4304_v48  ;;  %v9496_v48 = vld [vmem:[#allocation92_spill] sm:$0xff] }
 0x4cd   : > { %v5524_v7 = vpop.f32.mrf.mxu1  ;;  %v4574_v0 = vmul.f32 %v4509_v3, %v9496_v48 }
 0x4ce   : > { %v4361_v9 = vmul.f32 %v4305_v25, %v4305_v25  ;;  %v4336_v43 = vmax.f32 %v4305_v25, 0.0  ;;  %v9497_v25 = vld [vmem:[#allocation95_spill] sm:$0xff] }
 0x4cf   : > { %v4575_v7 = vmul.f32 %v4512_v38, %v9497_v25 }
 0x4d0   : > { %v4386_v63 = vadd.f32 1.0, %v4361_v9  ;;  %v4539_v9 = vpop.xlane.xlu0 %4538 }
 0x4d1   : > { %v4584_v13 = vmul.f32 %v4539_v9, %v9506_v52 }
 0x4d2   : > { %5799 = vrcp.f32 %v4386_v63  ;;  %v4605_v63 = vrot.slane %v4604_v55, 2 }
 0x4d5   : > { %v4309_v28 = vpop.f32.mrf.mxu1 }
 0x4d6   : > { %v4310_v12 = vadd.f32 %v8340_v36, %v4309_v28 }
 0x4d7   : > { %v5798_v21 = vpop.eup %5797  ;;  %v5527_v2 = vpop.f32.mrf.mxu1 }
 0x4d8   : > { %v4435_v11 = vmul.f32 2.0, %v5798_v21  ;;  %v4362_v50 = vmul.f32 %v4310_v12, %v4310_v12  ;;  %v4337_v4 = vmax.f32 %v4310_v12, 0.0  ;;  %v9498_v21 = vld [vmem:[#allocation103_spill] sm:$0xff]  ;;  %v4609_v12 = vsel %vm2445_vm1, %v4572_v49, 0.0  ;;  %v9500_v2 = vld [vmem:[#allocation112_spill] sm:$0xff] }
 0x4d9   : > { %v4576_v28 = vmul.f32 %v4515_v62, %v9498_v21 }
 0x4da   : > { %v4460_v45 = vsub.f32 %v4335_v57, %v4435_v11  ;;  %v4387_v22 = vadd.f32 1.0, %v4362_v50  ;;  %v9499_v57 = vld [vmem:[#allocation108_spill] sm:$0xff]  ;;  %v8496_v50 = vadd.f32 %v4600_v46, %v4599_v51  ;;  %v9508_v46 = vld [vmem:[#allocation51_spill] sm:$0xff] }
 0x4db   : > { %v4577_v11 = vmul.f32 %v4518_v30, %v9499_v57 }
 0x4dc   : > { %v4492_v10 = vmul.f32 %v8387_v41, %v4460_v45  ;;  %5801 = vrcp.f32 %v4387_v22  ;;  %v4578_v45 = vmul.f32 %v4521_v16, %v9500_v2  ;;  %v4616_v22 = vsel %vm2445_vm1, %v4573_v31, 0.0 }
 0x4dd   : > { %v4617_v58 = vrot.slane %v4616_v22, 4  ;;  %v4693_v16 = vsel %vm2445_vm1, %v4584_v13, 0.0 }
 0x4de   : > { %v4561_v23 = vsel %vm2445_vm1, %v4492_v10, 0.0  ;;  %v9501_v10 = vld [vmem:[#allocation121_spill] sm:$0xff] }
 0x4df   : > { %v5800_v33 = vpop.eup %5799  ;;  %4562 = vadd.xlane.f32.xlu1 %v4561_v23 }
 0x4e0   : > { %v4436_v18 = vmul.f32 2.0, %v5800_v33 }
 0x4e2   : > { %v4461_v26 = vsub.f32 %v4336_v43, %v4436_v18  ;;  %v4623_v43 = vsel %vm2445_vm1, %v4574_v0, 0.0  ;;  %v4630_v18 = vsel %vm2445_vm1, %v4575_v7, 0.0 }
 0x4e3   : > { %v4624_v27 = vrot.slane %v4623_v43, 4  ;;  %v4631_v3 = vrot.slane %v4630_v18, 4 }
 0x4e4   : > { %v4493_v36 = vmul.f32 %v8387_v41, %v4461_v26  ;;  %v9502_v26 = vld [vmem:[#allocation127_spill] sm:$0xff] }
 0x4e5   : > { %v4625_v31 = vadd.f32 %v4624_v27, %v4623_v43 }
 0x4e6   : > { %v4564_v17 = vsel %vm2445_vm1, %v4493_v36, 0.0  ;;  %v9503_v36 = vld [vmem:[#allocation131_spill] sm:$0xff] }
 0x4e7   : > { %4565 = vadd.xlane.f32.xlu0 %v4564_v17 }
 0x4e9   : > { %v5802_v37 = vpop.eup %5801 }
 0x4ea   : > { %v4437_v61 = vmul.f32 2.0, %v5802_v37  ;;  %v4542_v37 = vpop.xlane.xlu0 %4541 }
 0x4ec   : > { %v4462_v35 = vsub.f32 %v4337_v4, %v4437_v61  ;;  %v4606_v4 = vadd.f32 %v4605_v63, %v4604_v55  ;;  %v4610_v61 = vrot.slane %v4609_v12, 4  ;;  %v4618_v55 = vadd.f32 %v4617_v58, %v4616_v22 }
 0x4ed   : > { %v4694_v63 = vrot.slane %v4693_v16, 4 }
 0x4ee   : > { %v4494_v8 = vmul.f32 %v8387_v41, %v4462_v35  ;;  %v4524_v41 = vpop.xlane.xlu1 %4523  ;;  %v4637_v35 = vsel %vm2445_vm1, %v4576_v28, 0.0  ;;  %v4545_v38 = vpop.xlane.xlu0 %4544  ;;  %v4607_v32 = vrot.slane %v4606_v4, 1  ;;  %v4611_v34 = vadd.f32 %v4610_v61, %v4609_v12 }
 0x4ef   : > { %v4579_v33 = vmul.f32 %v4524_v41, %v9501_v10  ;;  %v4638_v30 = vrot.slane %v4637_v35, 4  ;;  %v4585_v41 = vmul.f32 %v4542_v37, %v9507_v60  ;;  %v4586_v20 = vmul.f32 %v4545_v38, %v9508_v46 }
 0x4f0   : > { %v4567_v29 = vsel %vm2445_vm1, %v4494_v8, 0.0  ;;  %v4644_v8 = vsel %vm2445_vm1, %v4577_v11, 0.0  ;;  %v8519_v25 = vadd.f32 %v4607_v32, %v4606_v4  ;;  %v4612_v21 = vrot.slane %v4611_v34, 2 }
 0x4f1   : > { %4568 = vadd.xlane.f32.xlu1 %v4567_v29  ;;  %v4651_v29 = vsel %vm2445_vm1, %v4578_v45, 0.0  ;;  %v4658_v39 = vsel %vm2445_vm1, %v4579_v33, 0.0  ;;  %v4639_v48 = vadd.f32 %v4638_v30, %v4637_v35  ;;  %v4700_v0 = vsel %vm2445_vm1, %v4585_v41, 0.0 }
 0x4f2   : > { %v4527_v44 = vpop.xlane.xlu1 %4526  ;;  %v4652_v62 = vrot.slane %v4651_v29, 4  ;;  %v4659_v1 = vrot.slane %v4658_v39, 4  ;;  %v4701_v22 = vrot.slane %v4700_v0, 4  ;;  %v4707_v10 = vsel %vm2445_vm1, %v4586_v20, 0.0 }
 0x4f3   : > { %v4580_v42 = vmul.f32 %v4527_v44, %v9502_v26  ;;  %v4645_v44 = vrot.slane %v4644_v8, 4  ;;  %v4619_v33 = vrot.slane %v4618_v55, 2 }
 0x4f4   : > { %v4653_v57 = vadd.f32 %v4652_v62, %v4651_v29  ;;  %v4660_v11 = vadd.f32 %v4659_v1, %v4658_v39  ;;  %v4613_v29 = vadd.f32 %v4612_v21, %v4611_v34 }
 0x4f5   : > { %v4665_v15 = vsel %vm2445_vm1, %v4580_v42, 0.0  ;;  %v4646_v28 = vadd.f32 %v4645_v44, %v4644_v8  ;;  %v4708_v8 = vrot.slane %v4707_v10, 4 }
 0x4f6   : > { %v4530_v47 = vpop.xlane.xlu1 %4529  ;;  %v4666_v40 = vrot.slane %v4665_v15, 4  ;;  %v4654_v61 = vrot.slane %v4653_v57, 2  ;;  %v4661_v35 = vrot.slane %v4660_v11, 2  ;;  %v4614_v38 = vrot.slane %v4613_v29, 1 }
 0x4f7   : > { %v4581_v17 = vmul.f32 %v4530_v47, %v9503_v36  ;;  %v4695_v36 = vadd.f32 %v4694_v63, %v4693_v16  ;;  %v4647_v4 = vrot.slane %v4646_v28, 2  ;;  %v4709_v41 = vadd.f32 %v4708_v8, %v4707_v10 }
 0x4f8   : > { %v4667_v2 = vadd.f32 %v4666_v40, %v4665_v15  ;;  %v4662_v60 = vadd.f32 %v4661_v35, %v4660_v11  ;;  %v5822_v35 = vld [vmem:[%s6331_s27 + $0x8] sm:$0xff] }
 0x4f9   : > { %v4672_v54 = vsel %vm2445_vm1, %v4581_v17, 0.0  ;;  %v9509_v17 = vld [vmem:[#allocation36_spill] sm:$0xff]  ;;  %v4696_v39 = vrot.slane %v4695_v36, 2  ;;  %v4648_v15 = vadd.f32 %v4647_v4, %v4646_v28  ;;  %v9520_v4 = vld [vmem:[#allocation66_spill] sm:$0xff]  ;;  %v4778_v8 = vsel %vm2445_vm1, %v5822_v35, 0.0 }
 0x4fa   : > { %v4533_v53 = vpop.xlane.xlu1 %4532  ;;  %v4673_v49 = vrot.slane %v4672_v54, 4 }
 0x4fb   : > { %v4649_v46 = vrot.slane %v4648_v15, 1 }
 0x4fc   : > { %v4674_v45 = vadd.f32 %v4673_v49, %v4672_v54  ;;  %v4655_v54 = vadd.f32 %v4654_v61, %v4653_v57  ;;  %v4697_v49 = vadd.f32 %v4696_v39, %v4695_v36  ;;  %v5821_v36 = vld [vmem:[%s6331_s27] sm:$0xff] }
 0x4fd   : > { %4952 = vperm.xlu0 %5702, %v5295_v59   ;;  %v9504_v59 = vld [vmem:[#allocation139_spill] sm:$0xff]  ;;  %v8534_v10 = vadd.f32 %v4649_v46, %v4648_v15 }
 0x4fe   : > { %v4536_v23 = vpop.xlane.xlu1 %4535  ;;  %v4582_v14 = vmul.f32 %v4533_v53, %v9504_v59  ;;  %v4632_v53 = vadd.f32 %v4631_v3, %v4630_v18  ;;  %v4640_v18 = vrot.slane %v4639_v48, 2  ;;  %v4668_v59 = vrot.slane %v4667_v2, 2 }
 0x4ff   : > { %v4583_v5 = vmul.f32 %v4536_v23, %v9505_v19  ;;  %v4626_v23 = vrot.slane %v4625_v31, 2  ;;  %v4702_v19 = vadd.f32 %v4701_v22, %v4700_v0  ;;  %v4656_v20 = vrot.slane %v4655_v54, 1  ;;  %9515 = vst [vmem:[#allocation104_spill] sm:$0xff] %v8534_v10 }
 0x500   : > { %v4679_v51 = vsel %vm2445_vm1, %v4582_v14, 0.0  ;;  %v4633_v43 = vrot.slane %v4632_v53, 2  ;;  %v4675_v14 = vrot.slane %v4674_v45, 2  ;;  %v4641_v58 = vadd.f32 %v4640_v18, %v4639_v48 }
 0x501   : > { %v4686_v47 = vsel %vm2445_vm1, %v4583_v5, 0.0  ;;  %v4680_v7 = vrot.slane %v4679_v51, 4  ;;  %v4620_v5 = vadd.f32 %v4619_v33, %v4618_v55  ;;  %v4627_v52 = vadd.f32 %v4626_v23, %v4625_v31  ;;  %v4551_v22 = vpop.xlane.xlu0 %4550 }
 0x502   : > { %v4687_v9 = vrot.slane %v4686_v47, 4  ;;  %v4548_v12 = vpop.xlane.xlu1 %4547  ;;  %v4634_v13 = vadd.f32 %v4633_v43, %v4632_v53  ;;  %v4669_v32 = vadd.f32 %v4668_v59, %v4667_v2  ;;  %v4676_v44 = vadd.f32 %v4675_v14, %v4674_v45 }
 0x503   : > { %v4681_v26 = vadd.f32 %v4680_v7, %v4679_v51  ;;  %v4587_v37 = vmul.f32 %v4548_v12, %v9509_v17  ;;  %v4703_v34 = vrot.slane %v4702_v19, 2  ;;  %v4621_v62 = vrot.slane %v4620_v5, 1 }
 0x504   : > { %v4688_v42 = vadd.f32 %v4687_v9, %v4686_v47  ;;  %v4628_v1 = vrot.slane %v4627_v52, 1  ;;  %v4635_v51 = vrot.slane %v4634_v13, 1  ;;  %v4642_v16 = vrot.slane %v4641_v58, 1 }
 0x505   : > { %v4682_v27 = vrot.slane %v4681_v26, 2  ;;  %v4714_v30 = vsel %vm2445_vm1, %v4587_v37, 0.0  ;;  %v4663_v31 = vrot.slane %v4662_v60, 1  ;;  %v4710_v53 = vrot.slane %v4709_v41, 2 }
 0x506   : > { %v4689_v3 = vrot.slane %v4688_v42, 2  ;;  %v4715_v47 = vrot.slane %v4714_v30, 4  ;;  %v8524_v48 = vadd.f32 %v4614_v38, %v4613_v29  ;;  %v4670_v0 = vrot.slane %v4669_v32, 1  ;;  %v5823_v29 = vld [vmem:[%s6331_s27 + $0x10] sm:$0xff] }
 0x507   : > { %v4683_v55 = vadd.f32 %v4682_v27, %v4681_v26  ;;  %v4677_v7 = vrot.slane %v4676_v44, 1  ;;  %v4704_v9 = vadd.f32 %v4703_v34, %v4702_v19  ;;  %v8526_v63 = vadd.f32 %v4621_v62, %v4620_v5 }
 0x508   : > { %v4690_v40 = vadd.f32 %v4689_v3, %v4688_v42  ;;  %9510 = vst [vmem:[#allocation13_spill] sm:$0xff] %v8524_v48  ;;  %v8528_v21 = vadd.f32 %v4628_v1, %v4627_v52  ;;  %v8530_v28 = vadd.f32 %v4635_v51, %v4634_v13  ;;  %v4716_v57 = vadd.f32 %v4715_v47, %v4714_v30  ;;  %v5824_v52 = vld [vmem:[%s6331_s27 + $0x18] sm:$0xff]  ;;  %v5825_v3 = vld [vmem:[%s6331_s27 + $0x20] sm:$0xff]  ;;  %v5826_v30 = vld [vmem:[%s6331_s27 + $0x28] sm:$0xff] }
 0x509   : > { %9511 = vst [vmem:[#allocation84_spill] sm:$0xff] %v8526_v63  ;;  %v8532_v11 = vadd.f32 %v4642_v16, %v4641_v58  ;;  %v4684_v12 = vrot.slane %v4683_v55, 1  ;;  %v4698_v45 = vrot.slane %v4697_v49, 1  ;;  %v8536_v33 = vadd.f32 %v4656_v20, %v4655_v54 }
 0x50a   : > { %9512 = vst [vmem:[#allocation74_spill] sm:$0xff] %v8528_v21  ;;  %9513 = vst [vmem:[#allocation90_spill] sm:$0xff] %v8530_v28  ;;  %v4691_v2 = vrot.slane %v4690_v40, 1  ;;  %v8538_v23 = vadd.f32 %v4663_v31, %v4662_v60  ;;  %v4711_v43 = vadd.f32 %v4710_v53, %v4709_v41  ;;  %v8540_v18 = vadd.f32 %v4670_v0, %v4669_v32  ;;  %v5827_v41 = vld [vmem:[%s6331_s27 + $0x30] sm:$0xff]  ;;  %v5828_v32 = vld [vmem:[%s6331_s27 + $0x38] sm:$0xff] }
 0x50b   : > { %9514 = vst [vmem:[#allocation23_spill] sm:$0xff] %v8532_v11  ;;  %9516 = vst [vmem:[#allocation48_spill] sm:$0xff] %v8536_v33  ;;  %v8542_v26 = vadd.f32 %v4677_v7, %v4676_v44  ;;  %v4705_v42 = vrot.slane %v4704_v9, 1  ;;  %v4771_v17 = vsel %vm2445_vm1, %v5821_v36, 0.0  ;;  %v4717_v37 = vrot.slane %v4716_v57, 2  ;;  %v5831_v0 = vld [vmem:[%s6331_s27 + $0x50] sm:$0xff] }
 0x50c   : > { %9517 = vst [vmem:[#allocation110_spill] sm:$0xff] %v8538_v23  ;;  %9518 = vst [vmem:[#allocation91_spill] sm:$0xff] %v8540_v18  ;;  %v4588_v61 = vmul.f32 %v4551_v22, %v9520_v4  ;;  %v4785_v59 = vsel %vm2445_vm1, %v5823_v29, 0.0  ;;  %v8551_v14 = vadd.f32 %v4684_v12, %v4683_v55  ;;  %v8553_v19 = vadd.f32 %v4691_v2, %v4690_v40  ;;  %v5829_v55 = vld [vmem:[%s6331_s27 + $0x40] sm:$0xff] }
 0x50d   : > { %9519 = vst [vmem:[#allocation97_spill] sm:$0xff] %v8542_v26  ;;  %v8555_v5 = vadd.f32 %v4698_v45, %v4697_v49  ;;  %v4792_v13 = vsel %vm2445_vm1, %v5824_v52, 0.0  ;;  %v4712_v58 = vrot.slane %v4711_v43, 1  ;;  %v4772_v27 = vrot.slane %v4771_v17, 4  ;;  %v5830_v49 = vld [vmem:[%s6331_s27 + $0x48] sm:$0xff] }
 0x50e   : > { %9521 = vst [vmem:[#allocation99_spill] sm:$0xff] %v8551_v14  ;;  %9522 = vst [vmem:[#allocation14_spill] sm:$0xff] %v8553_v19  ;;  %v4799_v39 = vsel %vm2445_vm1, %v5825_v3, 0.0  ;;  %v4806_v15 = vsel %vm2445_vm1, %v5826_v30, 0.0  ;;  %v4779_v54 = vrot.slane %v4778_v8, 4  ;;  %v4786_v60 = vrot.slane %v4785_v59, 4 }
 0x50f   : > { %9523 = vst [vmem:[#allocation107_spill] sm:$0xff] %v8555_v5  ;;  %v4813_v38 = vsel %vm2445_vm1, %v5827_v41, 0.0  ;;  %v4820_v44 = vsel %vm2445_vm1, %v5828_v32, 0.0  ;;  %v8567_v34 = vadd.f32 %v4705_v42, %v4704_v9  ;;  %v4718_v62 = vadd.f32 %v4717_v37, %v4716_v57  ;;  %v5834_v30 = vld [vmem:[%s6331_s27 + $0x68] sm:$0xff] }
 0x510   : > { %v4721_v1 = vsel %vm2445_vm1, %v4588_v61, 0.0  ;;  %v4793_v51 = vrot.slane %v4792_v13, 4  ;;  %v4800_v47 = vrot.slane %v4799_v39, 4  ;;  %v4807_v16 = vrot.slane %v4806_v15, 4  ;;  %v5832_v61 = vld [vmem:[%s6331_s27 + $0x58] sm:$0xff] }
 0x511   : > { %9524 = vst [vmem:[#allocation61_spill] sm:$0xff] %v8567_v34  ;;  %v4827_v40 = vsel %vm2445_vm1, %v5829_v55, 0.0  ;;  %v4834_v46 = vsel %vm2445_vm1, %v5830_v49, 0.0  ;;  %v8574_v20 = vadd.f32 %v4712_v58, %v4711_v43  ;;  %v4814_v31 = vrot.slane %v4813_v38, 4  ;;  %v5833_v58 = vld [vmem:[%s6331_s27 + $0x60] sm:$0xff] }
 0x512   : > { %v4821_v53 = vrot.slane %v4820_v44, 4  ;;  %v4841_v7 = vsel %vm2445_vm1, %v5831_v0, 0.0  ;;  %v4722_v9 = vrot.slane %v4721_v1, 4  ;;  %v4773_v57 = vadd.f32 %v4772_v27, %v4771_v17 }
 0x513   : > { %9525 = vst [vmem:[#allocation114_spill] sm:$0xff] %v8574_v20  ;;  %v4780_v12 = vadd.f32 %v4779_v54, %v4778_v8  ;;  %v4787_v2 = vadd.f32 %v4786_v60, %v4785_v59  ;;  %v4719_v45 = vrot.slane %v4718_v62, 1  ;;  %v4794_v22 = vadd.f32 %v4793_v51, %v4792_v13 }
 0x514   : > { %v4828_v42 = vrot.slane %v4827_v40, 4  ;;  %v4835_v36 = vrot.slane %v4834_v46, 4  ;;  %v4801_v37 = vadd.f32 %v4800_v47, %v4799_v39  ;;  %v4808_v4 = vadd.f32 %v4807_v16, %v4806_v15 }
 0x515   : > { %v4842_v43 = vrot.slane %v4841_v7, 4  ;;  %v4848_v35 = vsel %vm2445_vm1, %v5832_v61, 0.0  ;;  %v4815_v29 = vadd.f32 %v4814_v31, %v4813_v38  ;;  %v4822_v52 = vadd.f32 %v4821_v53, %v4820_v44 }
 0x516   : > { %v4855_v3 = vsel %vm2445_vm1, %v5833_v58, 0.0  ;;  %v4862_v17 = vsel %vm2445_vm1, %v5834_v30, 0.0  ;;  %v4723_v8 = vadd.f32 %v4722_v9, %v4721_v1  ;;  %v4774_v59 = vrot.slane %v4773_v57, 2 }
 0x517   : > { %v4781_v27 = vrot.slane %v4780_v12, 2  ;;  %v4788_v13 = vrot.slane %v4787_v2, 2  ;;  %v8584_v54 = vadd.f32 %v4719_v45, %v4718_v62  ;;  %v4829_v39 = vadd.f32 %v4828_v42, %v4827_v40  ;;  %v5835_v45 = vld [vmem:[%s6331_s27 + $0x70] sm:$0xff] }
 0x518   : > { %v4836_v15 = vadd.f32 %v4835_v36, %v4834_v46  ;;  %v4849_v60 = vrot.slane %v4848_v35, 4  ;;  %v4795_v41 = vrot.slane %v4794_v22, 2  ;;  %v4843_v32 = vadd.f32 %v4842_v43, %v4841_v7 }
 0x519   : > { %9526 = vst [vmem:[#allocation118_spill] sm:$0xff] %v8584_v54  ;;  %v4856_v38 = vrot.slane %v4855_v3, 4  ;;  %v4863_v44 = vrot.slane %v4862_v17, 4  ;;  %v4802_v51 = vrot.slane %v4801_v37, 2  ;;  %v4809_v47 = vrot.slane %v4808_v4, 2 }
 0x51a   : > { %v4816_v16 = vrot.slane %v4815_v29, 2  ;;  %v4823_v55 = vrot.slane %v4822_v52, 2  ;;  %v4724_v49 = vrot.slane %v4723_v8, 2  ;;  %v4775_v31 = vadd.f32 %v4774_v59, %v4773_v57 }
 0x51b   : > { %v4782_v1 = vadd.f32 %v4781_v27, %v4780_v12  ;;  %v4789_v53 = vadd.f32 %v4788_v13, %v4787_v2  ;;  %v4830_v0 = vrot.slane %v4829_v39, 2  ;;  %v4837_v9 = vrot.slane %v4836_v15, 2 }
 0x51c   : > { %v4850_v62 = vadd.f32 %v4849_v60, %v4848_v35  ;;  %v4869_v40 = vsel %vm2445_vm1, %v5835_v45, 0.0  ;;  %v4796_v46 = vadd.f32 %v4795_v41, %v4794_v22  ;;  %v4844_v42 = vrot.slane %v4843_v32, 2 }
 0x51d   : > { %v4857_v36 = vadd.f32 %v4856_v38, %v4855_v3  ;;  %v4864_v7 = vadd.f32 %v4863_v44, %v4862_v17  ;;  %v4803_v43 = vadd.f32 %v4802_v51, %v4801_v37  ;;  %v4810_v61 = vadd.f32 %v4809_v47, %v4808_v4 }
 0x51e   : > { %v4817_v58 = vadd.f32 %v4816_v16, %v4815_v29  ;;  %v4824_v30 = vadd.f32 %v4823_v55, %v4822_v52  ;;  %v4725_v54 = vadd.f32 %v4724_v49, %v4723_v8  ;;  %v4776_v20 = vrot.slane %v4775_v31, 1  ;;  %v4554_v8 = vpop.xlane.xlu1 %4553 }
 0x51f   : > { %v4783_v34 = vrot.slane %v4782_v1, 1  ;;  %v4870_v57 = vrot.slane %v4869_v40, 4  ;;  %v4790_v12 = vrot.slane %v4789_v53, 1  ;;  %v4831_v2 = vadd.f32 %v4830_v0, %v4829_v39 }
 0x520   : > { %v4838_v59 = vadd.f32 %v4837_v9, %v4836_v15  ;;  %v4851_v27 = vrot.slane %v4850_v62, 2  ;;  %v4797_v35 = vrot.slane %v4796_v46, 1  ;;  %v4845_v13 = vadd.f32 %v4844_v42, %v4843_v32  ;;  %v5836_v9 = vld [vmem:[%s6331_s27 + $0x78] sm:$0xff] }
 0x521   : > { %v4858_v60 = vrot.slane %v4857_v36, 2  ;;  %v4865_v45 = vrot.slane %v4864_v7, 2  ;;  %v4804_v22 = vrot.slane %v4803_v43, 1  ;;  %v4811_v41 = vrot.slane %v4810_v61, 1 }
 0x522   : > { %v4818_v3 = vrot.slane %v4817_v58, 1  ;;  %v4825_v17 = vrot.slane %v4824_v30, 1  ;;  %v4726_v37 = vrot.slane %v4725_v54, 1  ;;  %v8588_v4 = vadd.f32 %v4776_v20, %v4775_v31 }
 0x523   : > { %v8590_v29 = vadd.f32 %v4783_v34, %v4782_v1  ;;  %v4871_v52 = vadd.f32 %v4870_v57, %v4869_v40  ;;  %v8592_v38 = vadd.f32 %v4790_v12, %v4789_v53  ;;  %v4832_v39 = vrot.slane %v4831_v2, 1  ;;  %v9528_v1 = vld [vmem:[#allocation59_spill] sm:$0xff] }
 0x524   : > { %v4839_v15 = vrot.slane %v4838_v59, 1  ;;  %v4852_v44 = vadd.f32 %v4851_v27, %v4850_v62  ;;  %v8594_v32 = vadd.f32 %v4797_v35, %v4796_v46  ;;  %v4846_v51 = vrot.slane %v4845_v13, 1  ;;  %v5840_v35 = vld [vmem:[%s6331_s27 + $0x98] sm:$0xff] }
 0x525   : > { %v4859_v47 = vadd.f32 %v4858_v60, %v4857_v36  ;;  %v8596_v16 = vadd.f32 %v4865_v45, %v4864_v7  ;;  %v8598_v55 = vadd.f32 %v4804_v22, %v4803_v43  ;;  %v8600_v20 = vadd.f32 %v4811_v41, %v4810_v61  ;;  %v5837_v36 = vld [vmem:[%s6331_s27 + $0x80] sm:$0xff] }
 0x526   : > { %v8602_v34 = vadd.f32 %v4818_v3, %v4817_v58  ;;  %v8604_v49 = vadd.f32 %v4825_v17, %v4824_v30  ;;  %v8606_v31 = vadd.f32 %v4726_v37, %v4725_v54  ;;  %v4589_v53 = vmul.f32 %v4554_v8, %v9528_v1  ;;  %v5838_v30 = vld [vmem:[%s6331_s27 + $0x88] sm:$0xff]  ;;  %v5841_v45 = vld [vmem:[%s6331_s27 + $0xa0] sm:$0xff]  ;;  %v5843_v37 = vld [vmem:[%s6331_s27 + $0xb0] sm:$0xff] }
 0x527   : > { %v4872_v0 = vrot.slane %v4871_v52, 2  ;;  %v4876_v62 = vsel %vm2445_vm1, %v5836_v9, 0.0  ;;  %v8611_v40 = vadd.f32 %v4832_v39, %v4831_v2  ;;  %v8613_v46 = vadd.f32 %v4839_v15, %v4838_v59  ;;  %v4557_v43 = vpop.xlane.xlu1 %4556  ;;  %v5839_v59 = vld [vmem:[%s6331_s27 + $0x90] sm:$0xff]  ;;  %v5842_v3 = vld [vmem:[%s6331_s27 + $0xa8] sm:$0xff]  ;;  %v5844_v1 = vld [vmem:[%s6331_s27 + $0xb8] sm:$0xff] }
 0x528   : > { %9527 = vst [vmem:[#allocation120_spill] sm:$0xff] %v8606_v31  ;;  %v4853_v42 = vrot.slane %v4852_v44, 1  ;;  %v4883_v7 = vsel %vm2445_vm1, %v5837_v36, 0.0  ;;  %v8617_v54 = vadd.f32 %v4846_v51, %v4845_v13  ;;  %v4860_v61 = vrot.slane %v4859_v47, 1  ;;  %v9529_v39 = vld [vmem:[#allocation4_spill] sm:$0xff]  ;;  %v5845_v36 = vld [vmem:[%s6331_s27 + $0xc0] sm:$0xff] }
 0x529   : > { %v4867_v58 = vrot.slane %v8596_v16, 1  ;;  %v4890_v57 = vsel %vm2445_vm1, %v5838_v30, 0.0  ;;  %v4877_v2 = vrot.slane %v4876_v62, 4  ;;  %v4897_v27 = vsel %vm2445_vm1, %v5839_v59, 0.0  ;;  %v9530_v59 = vld [vmem:[#allocation105_spill] sm:$0xff]  ;;  %s5303_s27 = sshll.u32 %s9551_s16, 5 }
 0x52a   : > { %v4904_v60 = vsel %vm2445_vm1, %v5840_v35, 0.0  ;;  %v4911_v13 = vsel %vm2445_vm1, %v5841_v45, 0.0  ;;  %v4728_v22 = vsel %vm2445_vm1, %v4589_v53, 0.0  ;;  %v4884_v41 = vrot.slane %v4883_v7, 4  ;;  %s385_s21 = scalar_lea.vmem %s8811_s10, %s5303_s27 }
 0x52b   : > { %v4918_v17 = vsel %vm2445_vm1, %v5842_v3, 0.0  ;;  %v4925_v8 = vsel %vm2445_vm1, %v5843_v37, 0.0  ;;  %v4590_v15 = vmul.f32 %v4557_v43, %v9529_v39  ;;  %v4891_v51 = vrot.slane %v4890_v57, 4 }
 0x52c   : > { %v4932_v9 = vsel %vm2445_vm1, %v5844_v1, 0.0  ;;  %v4939_v30 = vsel %vm2445_vm1, %v5845_v36, 0.0  ;;  %v4898_v45 = vrot.slane %v4897_v27, 4  ;;  %v4905_v53 = vrot.slane %v4904_v60, 4 }
 0x52d   : > { %v4912_v31 = vrot.slane %v4911_v13, 4  ;;  %v4729_v5 = vrot.slane %v4728_v22, 4  ;;  %v4878_v19 = vadd.f32 %v4877_v2, %v4876_v62  ;;  %v4919_v3 = vrot.slane %v4918_v17, 4 }
 0x52e   : > { %v4926_v14 = vrot.slane %v4925_v8, 4  ;;  %v8639_v26 = vadd.f32 %v4853_v42, %v4852_v44  ;;  %v4873_v37 = vadd.f32 %v4872_v0, %v4871_v52  ;;  %v4933_v43 = vrot.slane %v4932_v9, 4 }
 0x52f   : > { %v4940_v39 = vrot.slane %v4939_v30, 4  ;;  %v4735_v10 = vsel %vm2445_vm1, %v4590_v15, 0.0  ;;  %v8642_v1 = vadd.f32 %v4860_v61, %v4859_v47  ;;  %v4885_v11 = vadd.f32 %v4884_v41, %v4883_v7 }
 0x530   : > { %v4892_v36 = vadd.f32 %v4891_v51, %v4890_v57  ;;  %v4906_v18 = vadd.f32 %v4905_v53, %v4904_v60  ;;  %v4913_v23 = vadd.f32 %v4912_v31, %v4911_v13  ;;  %v4730_v33 = vadd.f32 %v4729_v5, %v4728_v22 }
 0x531   : > { %v4879_v62 = vrot.slane %v4878_v19, 2  ;;  %v4920_v2 = vadd.f32 %v4919_v3, %v4918_v17  ;;  %v4927_v28 = vadd.f32 %v4926_v14, %v4925_v8  ;;  %v4736_v44 = vrot.slane %v4735_v10, 4 }
 0x532   : > { %v8646_v52 = vadd.f32 %v4867_v58, %v8596_v16  ;;  %v4934_v0 = vadd.f32 %v4933_v43, %v4932_v9  ;;  %v4941_v42 = vadd.f32 %v4940_v39, %v4939_v30  ;;  %v4874_v61 = vrot.slane %v4873_v37, 1 }
 0x533   : > { %v4886_v7 = vrot.slane %v4885_v11, 2  ;;  %v4893_v57 = vrot.slane %v4892_v36, 2  ;;  %v4907_v60 = vrot.slane %v4906_v18, 2  ;;  %v4914_v31 = vrot.slane %v4913_v23, 2 }
 0x534   : > { %v4731_v5 = vrot.slane %v4730_v33, 2  ;;  %v4880_v13 = vadd.f32 %v4879_v62, %v4878_v19  ;;  %v4921_v22 = vrot.slane %v4920_v2, 2  ;;  %v4928_v14 = vrot.slane %v4927_v28, 2 }
 0x535   : > { %v4737_v17 = vadd.f32 %v4736_v44, %v4735_v10  ;;  %v4935_v58 = vrot.slane %v4934_v0, 2  ;;  %v4942_v8 = vrot.slane %v4941_v42, 2  ;;  %v8650_v30 = vadd.f32 %v4874_v61, %v4873_v37 }
 0x536   : > { %v4915_v3 = vadd.f32 %v4914_v31, %v4913_v23  ;;  %v4732_v43 = vadd.f32 %v4731_v5, %v4730_v33  ;;  %v4929_v19 = vadd.f32 %v4928_v14, %v4927_v28  ;;  %v4881_v10 = vrot.slane %v4880_v13, 1 }
 0x537   : > { %v4738_v62 = vrot.slane %v4737_v17, 2  ;;  %v4936_v44 = vadd.f32 %v4935_v58, %v4934_v0 }
 0x539   : > { %v8654_v28 = vadd.f32 %v4738_v62, %v4737_v17 }
 0x552   : > { %v4560_v12 = vpop.xlane.xlu0 %4559 }
 0x553   : > { %v4591_v35 = vmul.f32 %v4560_v12, %v9530_v59  ;;  %v4899_v59 = vadd.f32 %v4898_v45, %v4897_v27  ;;  %v4894_v45 = vadd.f32 %v4893_v57, %v4892_v36 }
 0x555   : > { %v4742_v12 = vsel %vm2445_vm1, %v4591_v35, 0.0  ;;  %v4900_v27 = vrot.slane %v4899_v59, 2  ;;  %v4887_v35 = vadd.f32 %v4886_v7, %v4885_v11  ;;  %v4937_v7 = vrot.slane %v4936_v44, 1 }
 0x556   : > { %v4743_v15 = vrot.slane %v4742_v12, 4 }
 0x557   : > { %v4901_v53 = vadd.f32 %v4900_v27, %v4899_v59  ;;  %v4888_v37 = vrot.slane %v4887_v35, 1  ;;  %v4916_v59 = vrot.slane %v4915_v3, 1  ;;  %v8679_v58 = vadd.f32 %v4937_v7, %v4936_v44  ;;  %v9531_v44 = vld [vmem:[#allocation13_spill] sm:$0xff] }
 0x558   : > { %v4744_v51 = vadd.f32 %v4743_v15, %v4742_v12  ;;  %v4895_v15 = vrot.slane %v4894_v45, 1 }
 0x559   : > { %v4902_v11 = vrot.slane %v4901_v53, 1  ;;  %v8670_v14 = vadd.f32 %v4916_v59, %v4915_v3 }
 0x55a   : > { %v4745_v63 = vrot.slane %v4744_v51, 2 }
 0x55b   : > { %v8664_v31 = vadd.f32 %v4902_v11, %v4901_v53 }
 0x568   : > { %v4563_v47 = vpop.xlane.xlu1 %4562 }
 0x569   : > { %v4592_v41 = vmul.f32 %v4563_v47, %v8121_v24  ;;  %v4908_v24 = vadd.f32 %v4907_v60, %v4906_v18  ;;  %v4922_v47 = vadd.f32 %v4921_v22, %v4920_v2  ;;  %v4733_v18 = vrot.slane %v4732_v43, 1 }
 0x56a   : > { %v4930_v2 = vrot.slane %v4929_v19, 1  ;;  %v8662_v60 = vadd.f32 %v4895_v15, %v4894_v45 }
 0x56b   : > { %v4749_v16 = vsel %vm2445_vm1, %v4592_v41, 0.0  ;;  %v4943_v41 = vadd.f32 %v4942_v8, %v4941_v42  ;;  %v4909_v36 = vrot.slane %v4908_v24, 1  ;;  %v4923_v23 = vrot.slane %v4922_v47, 1 }
 0x56c   : > { %v4750_v9 = vrot.slane %v4749_v16, 4  ;;  %v8656_v42 = vadd.f32 %v4745_v63, %v4744_v51  ;;  %v8668_v22 = vadd.f32 %v4733_v18, %v4732_v43  ;;  %v8674_v63 = vadd.f32 %v4930_v2, %v4929_v19  ;;  %v9536_v18 = vld [vmem:[#allocation110_spill] sm:$0xff] }
 0x56d   : > { %v4944_v0 = vrot.slane %v4943_v41, 1  ;;  %v8666_v5 = vadd.f32 %v4909_v36, %v4908_v24  ;;  %v8672_v17 = vadd.f32 %v4923_v23, %v4922_v47  ;;  %v9535_v36 = vld [vmem:[#allocation48_spill] sm:$0xff]  ;;  %v9537_v23 = vld [vmem:[#allocation91_spill] sm:$0xff] }
 0x56e   : > { %v4751_v39 = vadd.f32 %v4750_v9, %v4749_v16  ;;  %v4747_v51 = vrot.slane %v8656_v42, 1 }
 0x56f   : > { %v8681_v8 = vadd.f32 %v4944_v0, %v4943_v41  ;;  %v9540_v0 = vld [vmem:[#allocation97_spill] sm:$0xff] }
 0x570   : > { %v4566_v21 = vpop.xlane.xlu0 %4565  ;;  %v4752_v48 = vrot.slane %v4751_v39, 2 }
 0x571   : > { %v4593_v12 = vmul.f32 %v4566_v21, %v8157_v6  ;;  %v4882_v6 = vadd.f32 %v4881_v10, %v4880_v13  ;;  %v8660_v21 = vadd.f32 %v4888_v37, %v4887_v35  ;;  %v9533_v37 = vld [vmem:[#allocation74_spill] sm:$0xff] }
 0x572   : > { %v8658_v57 = vadd.f32 %v4752_v48, %v4751_v39  ;;  %v4740_v48 = vrot.slane %v8654_v28, 1 }
 0x573   : > { %v4756_v33 = vsel %vm2445_vm1, %v4593_v12, 0.0  ;;  %v9532_v12 = vld [vmem:[#allocation84_spill] sm:$0xff] }
 0x574   : > { %v4757_v61 = vrot.slane %v4756_v33, 4  ;;  %v4754_v9 = vrot.slane %v8658_v57, 1 }
 0x576   : > { %v4758_v27 = vadd.f32 %v4757_v61, %v4756_v33 }
 0x578   : > { %v4759_v13 = vrot.slane %v4758_v27, 2  ;;  %v8677_v16 = vpop.permute.xlu0 %4952 }
 0x579   : > { %v4955_v35 = vmul.f32 %v8677_v16, %v8588_v4  ;;  %v4956_v45 = vmul.f32 %v8677_v16, %v8590_v29  ;;  %v4957_v24 = vmul.f32 %v8677_v16, %v8592_v38  ;;  %v4958_v3 = vmul.f32 %v8677_v16, %v8594_v32 }
 0x57a   : > { %v4760_v53 = vadd.f32 %v4759_v13, %v4758_v27  ;;  %v4959_v43 = vmul.f32 %v8677_v16, %v8598_v55  ;;  %v4960_v39 = vmul.f32 %v8677_v16, %v8600_v20  ;;  %v4961_v4 = vmul.f32 %v8677_v16, %v8602_v34  ;;  %v4569_v19 = vpop.xlane.xlu1 %4568  ;;  %v9541_v27 = vld [vmem:[#allocation99_spill] sm:$0xff] }
 0x57b   : > { %v4962_v29 = vmul.f32 %v8677_v16, %v8604_v49  ;;  %v4963_v47 = vmul.f32 %v8677_v16, %v8611_v40  ;;  %v4964_v32 = vmul.f32 %v8677_v16, %v8613_v46  ;;  %v4965_v55 = vmul.f32 %v8677_v16, %v8617_v54 }
 0x57c   : > { %v4761_v38 = vrot.slane %v4760_v53, 1  ;;  %v4966_v20 = vmul.f32 %v8677_v16, %v8639_v26  ;;  %v4967_v34 = vmul.f32 %v8677_v16, %v8642_v1  ;;  %v4968_v49 = vmul.f32 %v8677_v16, %v8646_v52  ;;  %v9534_v52 = vld [vmem:[#allocation90_spill] sm:$0xff] }
 0x57d   : > { %v4969_v40 = vmul.f32 %v8677_v16, %v8650_v30  ;;  %v4970_v62 = vmul.f32 %v8677_v16, %v4882_v6  ;;  %v4594_v54 = vmul.f32 %v4569_v19, %v8199_v56  ;;  %v4980_v10 = vadd.f32 %v4955_v35, %v8496_v50  ;;  %v9538_v50 = vld [vmem:[#allocation23_spill] sm:$0xff]  ;;  %v9542_v35 = vld [vmem:[#allocation14_spill] sm:$0xff] }
 0x57e   : > { %v4762_v46 = vadd.f32 %v4761_v38, %v4760_v53  ;;  %v4981_v26 = vadd.f32 %v4956_v45, %v8519_v25  ;;  %v4982_v41 = vadd.f32 %v4957_v24, %v9531_v44  ;;  %v4983_v1 = vadd.f32 %v4958_v3, %v9532_v12  ;;  %v9539_v25 = vld [vmem:[#allocation104_spill] sm:$0xff] }
 0x57f   : > { %v4984_v15 = vadd.f32 %v4959_v43, %v9533_v37  ;;  %v4985_v11 = vadd.f32 %v4960_v39, %v9534_v52  ;;  %v4763_v30 = vsel %vm2445_vm1, %v4594_v54, 0.0  ;;  %v4988_v59 = vadd.f32 %v4963_v47, %v9535_v36  ;;  %v9543_v43 = vld [vmem:[#allocation107_spill] sm:$0xff]  ;;  %v9545_v37 = vld [vmem:[#allocation114_spill] sm:$0xff]  ;;  %v9547_v36 = vld [vmem:[#allocation120_spill] sm:$0xff] }
 0x580   : > { %v4989_v33 = vadd.f32 %v4964_v32, %v9536_v18  ;;  %v4990_v56 = vadd.f32 %v4965_v55, %v9537_v23  ;;  %v4764_v2 = vrot.slane %v4763_v30, 4  ;;  %v4986_v61 = vadd.f32 %v4961_v4, %v9538_v50 }
 0x581   : > { %v4987_v7 = vadd.f32 %v4962_v29, %v9539_v25  ;;  %v4991_v6 = vadd.f32 %v4966_v20, %v9540_v0  ;;  %v4992_v13 = vadd.f32 %v4967_v34, %v9541_v27  ;;  %v4993_v45 = vadd.f32 %v4968_v49, %v9542_v35 }
 0x582   : > { %v5040_v53 = vsel %vm5039_vm3, %v4981_v26, %v4980_v10  ;;  %v5053_v24 = vsel %vm5039_vm3, %v4989_v33, %v4988_v59  ;;  %v4765_v3 = vadd.f32 %v4764_v2, %v4763_v30  ;;  %v4994_v39 = vadd.f32 %v4969_v40, %v9543_v43  ;;  %v9544_v40 = vld [vmem:[#allocation61_spill] sm:$0xff] }
 0x583   : > { %v5042_v47 = vsel %vm5041_vm4, %v4982_v41, %v5040_v53  ;;  %v5054_v38 = vsel %vm5041_vm4, %v4990_v56, %v5053_v24  ;;  %v4971_v32 = vmul.f32 %v8677_v16, %v8660_v21  ;;  %v4972_v55 = vmul.f32 %v8677_v16, %v8662_v60 }
 0x584   : > { %v5044_v4 = vsel %vm5043_vm5, %v4983_v1, %v5042_v47  ;;  %v5055_v29 = vsel %vm5043_vm5, %v4991_v6, %v5054_v38  ;;  %v4766_v20 = vrot.slane %v4765_v3, 2  ;;  %v4973_v49 = vmul.f32 %v8677_v16, %v8664_v31 }
 0x585   : > { %v5046_v19 = vsel %vm5045_vm6, %v4984_v15, %v5044_v4  ;;  %v5056_v34 = vsel %vm5045_vm6, %v4992_v13, %v5055_v29  ;;  %v4995_v54 = vadd.f32 %v4970_v62, %v9544_v40  ;;  %v4974_v21 = vmul.f32 %v8677_v16, %v8666_v5 }
 0x586   : > { %v5048_v10 = vsel %vm5047_vm7, %v4985_v11, %v5046_v19  ;;  %v5057_v26 = vsel %vm5047_vm7, %v4993_v45, %v5056_v34  ;;  %v4767_v44 = vadd.f32 %v4766_v20, %v4765_v3  ;;  %v4975_v12 = vmul.f32 %v8677_v16, %v8670_v14  ;;  %v9546_v11 = vld [vmem:[#allocation118_spill] sm:$0xff] }
 0x587   : > { %v5050_v60 = vsel %vm5049_vm8, %v4986_v61, %v5048_v10  ;;  %v5058_v41 = vsel %vm5049_vm8, %v4994_v39, %v5057_v26  ;;  %v4976_v62 = vmul.f32 %v8677_v16, %v8672_v17  ;;  %v4996_v15 = vadd.f32 %v4971_v32, %v9545_v37 }
 0x588   : > { %v5052_v1 = vsel %vm5051_vm9, %v4987_v7, %v5050_v60  ;;  %v5059_v31 = vsel %vm5051_vm9, %v4995_v54, %v5058_v41  ;;  %v4768_v52 = vrot.slane %v4767_v44, 1  ;;  %v4978_v5 = vmul.f32 %v8677_v16, %v8679_v58 }
 0x589   : > { %5532 = vmatprep.mubr.msk.f32.mxu0 %vm2445_vm1, %v5052_v1  ;;  %v4997_v30 = vadd.f32 %v4972_v55, %v9546_v11  ;;  %v4998_v59 = vadd.f32 %v4973_v49, %v9547_v36  ;;  %v4741_v14 = vadd.f32 %v4740_v48, %v8654_v28  ;;  %v4977_v17 = vmul.f32 %v8677_v16, %v8674_v63 }
 0x58a   : > { %5533 = vmatmul.mubr.msk.f32.vlgmr.msra.gmra.mxu0 %vm2445_vm1, %v5059_v31  ;;  %v4748_v18 = vadd.f32 %v4747_v51, %v8656_v42  ;;  %v4769_v33 = vadd.f32 %v4768_v52, %v4767_v44  ;;  %v4999_v58 = vadd.f32 %v4974_v21, %v8668_v22  ;;  %v4755_v56 = vadd.f32 %v4754_v9, %v8658_v57 }
 0x58b   : > { %v5060_v23 = vsel %vm5039_vm3, %v4997_v30, %v4996_v15  ;;  %v5000_v28 = vadd.f32 %v4975_v12, %v4741_v14  ;;  %v5003_v63 = vadd.f32 %v4978_v5, %v4762_v46  ;;  %v4979_v42 = vmul.f32 %v8677_v16, %v8681_v8  ;;  %v5296_v16 = vld [vmem:[%s8810_s9] ss:$0 sm:$0xff] }
 0x58c   : > { %v5061_v48 = vsel %vm5041_vm4, %v4998_v59, %v5060_v23  ;;  %v5001_v2 = vadd.f32 %v4976_v62, %v4748_v18  ;;  %v5002_v51 = vadd.f32 %v4977_v17, %v4755_v56 }
 0x58d   : > { %v5062_v50 = vsel %vm5043_vm5, %v4999_v58, %v5061_v48  ;;  %v5004_v25 = vadd.f32 %v4979_v42, %v4769_v33 }
 0x58e   : > { %v5063_v22 = vsel %vm5045_vm6, %v5000_v28, %v5062_v50 }
 0x58f   : > { %v5064_v61 = vsel %vm5047_vm7, %v5001_v2, %v5063_v22 }
 0x590   : > { %v5065_v7 = vsel %vm5049_vm8, %v5002_v51, %v5064_v61 }
 0x591   : > { %v5066_v57 = vsel %vm5051_vm9, %v5003_v63, %v5065_v7 }
 0x592   : > { %5535 = vmatprep.mubr.msk.f32.mxu0 %vm2445_vm1, %v5066_v57 }
 0x593   : > { %5536 = vmatmul.mubr.msk.f32.gmra.mxu0 %vm2445_vm1, %v5004_v25 }
 0x64a   : > { %v5534_v8 = vpop.f32.mrf.mxu0 }
 0x64b   : > { %v5147_v9 = vadd.f32 %v5534_v8, %v5296_v16 }
 0x64c   : > { %v5141_v46 = vpop.f32.mrf.mxu0 }
 0x64d   : > { %5162 = vst.msk [vmem:[%s385_s21 + $0x8] sm:$0xff] %vm5160_vm10, %v5147_v9  ;;  %v5142_v0 = vadd.f32 %v5296_v16, %v5141_v46 }
 0x64f   : > { %5161 = vst.msk [vmem:[%s385_s21] sm:$0xff] %vm5160_vm10, %v5142_v0 }
 0x653   : > { %v5537_v6 = vpop.f32.mrf.mxu0 }
 0x654   : > { %v5157_v27 = vadd.f32 %v5537_v6, %v5296_v16 }
 0x655   : > { %v5151_v13 = vpop.f32.mrf.mxu0 }
 0x656   : > { %5165 = vst.msk [vmem:[%s385_s21 + $0x18] sm:$0x1] %vm5164_vm11, %v5157_v27  ;;  %v5152_v35 = vadd.f32 %v5296_v16, %v5151_v13 }
 0x658   : > { %5163 = vst.msk [vmem:[%s385_s21 + $0x10] sm:$0xff] %vm5160_vm10, %v5152_v35 }
 0x659 PF: > { %s22_s15 = sadd.s32 1, %s5852_s15  }
 0x65a   : > { %p19_p5 = scmp.ge.s32.totalorder %s22_s15, 4  }
 0x65c   :  { %21 = sbr.rel (!%p19_p5) target bundleno = 3 (0x3), region = 93 }

</bundles_post_ra>
